<compile_context>
chip_gen: v7x
topology: tpu7x:2x2x1
jax: 0.10.0
libtpu: 0.0.40
codegen_flags: <defaults>
</compile_context>

<pallas_src>
import functools

import numpy as np

import jax
import jax.numpy as jnp
from jax.experimental import pallas as pl
from jax.experimental.pallas import tpu as pltpu


# ------------------------------ Pallas kernel -------------------------------

def _nasnet_nc_cell_kernel(
    s0_ref, s1_ref,            # [M, W*Cpp], [M, W*Cp]   (M = Nb*H rows)
    p0w_ref, p1w_ref,          # [W*Cpp, WC], [W*Cp, WC]  bf16 (1x1, BN folded)
    pre_b_ref,                 # [2, 1, WC]               f32
    f5_ref, b5_ref,            # [2*2*5, WC, WC] bf16, [2*2, 1, WC] f32
    f3_ref, b3_ref,            # [3*2*3, WC, WC] bf16, [3*2, 1, WC] f32
    apband_ref,                # [WC, WC] bf16  (3-wide W band, weight 1)
    inv_cnt_ref,               # [M, WC] f32    (1 / #valid 3x3 taps)
    o_ref,                     # [5, M, WC]  -> states n2..n6
    *, H, W, C, Nb,
):
  WC = W * C
  M = Nb * H
  f32, bf16 = jnp.float32, jnp.bfloat16

  # Hoisted row-edge masks.  h_local = iota % H so sublane rolls never leak
  # rows between the Nb batch images stacked along the M dimension.
  h_local = jax.lax.broadcasted_iota(jnp.int32, (M, WC), 0) % H
  row_mask = {dh: (h_local < H - dh) if dh > 0 else (h_local >= -dh)
              for dh in (-2, -1, 1, 2)}

  def row_shift(x, dh):
    # y[m, :] = x[m + dh, :], zero outside the current image.
    if dh == 0:
      return x
    y = pltpu.roll(x, shift=(-dh) % M, axis=0)
    return jnp.where(row_mask[dh], y, 0.0)

  def pw(x, w_ref, bias):
    # 1x1 conv + folded BN as a block-diagonal bf16 MXU matmul.
    return jnp.dot(x.astype(bf16), w_ref[...],
                   preferred_element_type=f32) + bias

  def sep_conv(x, f_ref, b_ref, inst, K):
    # SepConv: (ReLU -> dw KxK -> 1x1 -> BN) twice.  The W-direction of the
    # depthwise conv and the following 1x1+BN are pre-folded into K banded
    # [WC, WC] matrices, so each half is K MXU matmuls accumulated in f32.
    P = K // 2
    y = x
    for half in range(2):
      base = (inst * 2 + half) * K
      z = jnp.maximum(y, 0.0)
      acc = jnp.zeros((M, WC), f32)
      for a in range(K):
        xa = row_shift(z, a - P).astype(bf16)
        acc = acc + jnp.dot(xa, f_ref[base + a], preferred_element_type=f32)
      y = acc + b_ref[inst * 2 + half]
    return y

  inv_cnt = inv_cnt_ref[...]          # hoisted: used by both avg pools

  def avg_pool3(x):
    # 3x3 avg pool, stride 1, count_include_pad=False: sum the 3 row shifts,
    # one banded matmul for the W direction, then multiply by 1/valid-count.
    s = row_shift(x, -1) + x + row_shift(x, 1)
    return jnp.dot(s.astype(bf16), apband_ref[...],
                   preferred_element_type=f32) * inv_cnt

  # Preprocess: ReLUConvBN 1x1 on both inputs.
  x0 = pw(jnp.maximum(s0_ref[...], 0.0), p0w_ref, pre_b_ref[0])
  x1 = pw(jnp.maximum(s1_ref[...], 0.0), p1w_ref, pre_b_ref[1])

  o_ref[0] = sep_conv(x1, f5_ref, b5_ref, 0, 5) + sep_conv(x0, f3_ref, b3_ref, 0, 3)  # n2
  o_ref[1] = sep_conv(x0, f5_ref, b5_ref, 1, 5) + sep_conv(x0, f3_ref, b3_ref, 1, 3)  # n3
  o_ref[2] = avg_pool3(x1) + x0                                                       # n4
  o_ref[3] = avg_pool3(x0) * 2.0                                                      # n5
  o_ref[4] = sep_conv(x1, f3_ref, b3_ref, 2, 3) + x1                                  # n6


# ------------------------------- forward ------------------------------------

def nasnet_nc_forward(packed, s0, s1, drop_prob=0.0):
  """NASNet normal-cell forward.  s0: [N,H,W,Cpp], s1: [N,H,W,Cp] (NHWC)."""
  # TODO(synk): drop_path (training-only stochastic depth) is a no-op in eval
  # mode and is not implemented.
  del drop_prob
  N, H, W, Cpp = s0.shape
  Cp = s1.shape[-1]
  WC = packed["inv_cnt"].shape[-1]
  C = WC // W

  # Stack Nb images into the matmul M dimension (target <= 256 rows), but keep
  # the grid >= 2 when N >= 2 so both v7x TensorCores stay busy.
  nb = 1
  for d in range(1, N + 1):
    if N % d == 0 and d * H <= 256 and (N // d >= 2 or N == 1):
      nb = d
  M = nb * H
  grid = N // nb

  # Lane-dense activation slabs: rows = N*H, lanes = W*Cin.
  s0m = s0.reshape(N * H, W * Cpp)
  s1m = s1.reshape(N * H, W * Cp)
  inv_cnt = jnp.tile(packed["inv_cnt"], (nb, 1))          # [M, WC]

  weights = [packed["p0w"], packed["p1w"], packed["pre_b"],
             packed["f5"], packed["b5"], packed["f3"], packed["b3"],
             packed["ap_band"], inv_cnt]

  def _full_spec(x):
    nd = x.ndim
    return pl.BlockSpec(x.shape, lambda i, _nd=nd: (0,) * _nd)

  # 2 sep5 * 2 halves * 5 + 3 sep3 * 2 halves * 3 + 2 avg pools  [WC x WC] dots
  n_wc_mm = 2 * 2 * 5 + 3 * 2 * 3 + 2
  flops = 2 * N * H * WC * (W * Cpp + W * Cp + n_wc_mm * WC)
  bytes_accessed = 4 * (N * H * (W * Cpp + W * Cp) + 5 * N * H * WC) + sum(
      int(np.prod(w.shape)) * int(w.dtype.itemsize) for w in weights)

  out = pl.pallas_call(
      functools.partial(_nasnet_nc_cell_kernel, H=H, W=W, C=C, Nb=nb),
      out_shape=jax.ShapeDtypeStruct((5, N * H, WC), jnp.float32),
      grid=(grid,),
      in_specs=[
          pl.BlockSpec((M, W * Cpp), lambda i: (i, 0)),
          pl.BlockSpec((M, W * Cp), lambda i: (i, 0)),
      ] + [_full_spec(w) for w in weights],
      out_specs=pl.BlockSpec((5, M, WC), lambda i: (0, i, 0)),
      compiler_params=pltpu.CompilerParams(
          dimension_semantics=("parallel",)),
      cost_estimate=pl.CostEstimate(flops=flops, transcendentals=0,
                                    bytes_accessed=bytes_accessed),
  )(s0m, s1m, *weights)

  # [5, N*H, W*C] -> NHWC concat([n2..n6], channel).  This channel-group
  # interleave is the only post-kernel op; a consumer accepting the grouped
  # [5, N, H, W, C] layout (or folding the permutation into its own input
  # matmul) can skip it.
  out = out.reshape(5, N, H, W, C).transpose(1, 2, 3, 0, 4)
  return out.reshape(N, H, W, 5 * C)


# ------------------------------ parameters ----------------------------------

def _conv_bn_params(key, cin, cout):
  k1, k2, k3 = jax.random.split(key, 3)
  w = 0.1 * jax.random.normal(k1, (cin, cout), jnp.float32)
  gamma = 1.0 + 0.1 * jax.random.normal(k2, (cout,), jnp.float32)
  beta = 0.1 * jax.random.normal(k3, (cout,), jnp.float32)
  eps = 1e-5
  # eval-mode BN (running_mean=0, running_var=1) folded to scale/bias
  return dict(w=w, scale=gamma / jnp.sqrt(1.0 + eps), bias=beta)


def _sep_conv_params(key, C, K):
  k1, k2, k3, k4 = jax.random.split(key, 4)
  return dict(
      dw1=0.1 * jax.random.normal(k1, (K, K, C), jnp.float32),
      pw1=_conv_bn_params(k2, C, C),
      dw2=0.1 * jax.random.normal(k3, (K, K, C), jnp.float32),
      pw2=_conv_bn_params(k4, C, C),
  )


def init_nasnet_nc_params(key, pre_input_channel, input_channel, out_channel):
  # genotype 'NASNet': len(normal_concat) == 5
  C = out_channel // 5 // 2 * 2
  keys = jax.random.split(key, 7)
  params = dict(
      pre0=_conv_bn_params(keys[0], pre_input_channel, C),
      pre1=_conv_bn_params(keys[1], input_channel, C),
      sep5_s1=_sep_conv_params(keys[2], C, 5),    # ('sep_conv_5x5', 1)
      sep3_s0a=_sep_conv_params(keys[3], C, 3),   # ('sep_conv_3x3', 0)
      sep5_s0=_sep_conv_params(keys[4], C, 5),    # ('sep_conv_5x5', 0)
      sep3_s0b=_sep_conv_params(keys[5], C, 3),   # ('sep_conv_3x3', 0)
      sep3_s1=_sep_conv_params(keys[6], C, 3),    # ('sep_conv_3x3', 1)
  )
  return params, C


def pack_nasnet_nc_params(params, H, W, mxu_dtype=jnp.bfloat16):
  """Host-side packing of lane-dense kernel operands (numpy, done once):
     * 1x1 convs (BN folded) -> block-diagonal [W*Cin, W*C] bf16 matrices,
     * each SepConv half -> K banded [W*C, W*C] bf16 matrices where the
       W-direction depthwise taps AND the following 1x1+BN are folded in,
     * avg pool -> weight-1 tri-band [W*C, W*C] + reciprocal valid-count plane.
     NOTE: these matrices grow as O((W*C)^2); for large W*C (>~1024) they
     should be W-tiled (per-W-block [C,C] matmuls) to stay inside v7x VMEM."""
  C = int(np.asarray(params["pre0"]["w"]).shape[1])
  WC = W * C

  def fold(cb):                      # fold BN scale into the 1x1 weight
    return np.asarray(cb["w"], np.float32) * np.asarray(cb["scale"],
                                                        np.float32)[None, :]

  def bias_tile(cb):
    return np.tile(np.asarray(cb["bias"], np.float32), W).reshape(1, WC)

  def pw_block(cb):
    return np.kron(np.eye(W, dtype=np.float32), fold(cb))  # [W*Cin, W*C]

  def fused_band(dw, cb):
    # [K, WC, WC]: mats[a][(w+d)*C + c, w*C + c'] = dw[a, d+P, c] * Wfold[c, c']
    dw = np.asarray(dw, np.float32)
    K = dw.shape[0]
    P = K // 2
    wf = fold(cb)
    mats = np.zeros((K, WC, WC), np.float32)
    for a in range(K):
      for b in range(K):
        blk = dw[a, b][:, None] * wf                         # [C, C]
        mats[a] += np.kron(np.eye(W, k=-(b - P), dtype=np.float32), blk)
    return mats

  def sep_pack(sp):
    f = np.concatenate([fused_band(sp["dw1"], sp["pw1"]),
                        fused_band(sp["dw2"], sp["pw2"])], axis=0)  # [2K,WC,WC]
    b = np.concatenate([bias_tile(sp["pw1"]),
                        bias_tile(sp["pw2"])], axis=0)[:, None, :]  # [2,1,WC]
    return f, b

  f5_list, b5_list = [], []
  for name in ("sep5_s1", "sep5_s0"):
    f, b = sep_pack(params[name])
    f5_list.append(f)
    b5_list.append(b)
  f3_list, b3_list = [], []
  for name in ("sep3_s0a", "sep3_s0b", "sep3_s1"):
    f, b = sep_pack(params[name])
    f3_list.append(f)
    b3_list.append(b)

  tri = (np.eye(W) + np.eye(W, k=1) + np.eye(W, k=-1)).astype(np.float32)
  ap_band = np.kron(tri, np.eye(C, dtype=np.float32))        # [WC, WC]

  # 3x3 avg pool, count_include_pad=False -> reciprocal valid counts.
  hv = np.minimum(np.arange(H) + 2, H) - np.maximum(np.arange(H) - 1, 0)
  wv = np.minimum(np.arange(W) + 2, W) - np.maximum(np.arange(W) - 1, 0)
  inv_cnt = (1.0 / np.outer(hv, wv)).astype(np.float32)      # [H, W]
  inv_cnt = np.repeat(inv_cnt[:, :, None], C, axis=2).reshape(H, WC)

  return dict(
      p0w=jnp.asarray(pw_block(params["pre0"]), mxu_dtype),
      p1w=jnp.asarray(pw_block(params["pre1"]), mxu_dtype),
      pre_b=jnp.asarray(np.stack([bias_tile(params["pre0"]),
                                  bias_tile(params["pre1"])], 0), jnp.float32),
      f5=jnp.asarray(np.concatenate(f5_list, 0), mxu_dtype),   # [20, WC, WC]
      b5=jnp.asarray(np.concatenate(b5_list, 0), jnp.float32), # [4, 1, WC]
      f3=jnp.asarray(np.concatenate(f3_list, 0), mxu_dtype),   # [18, WC, WC]
      b3=jnp.asarray(np.concatenate(b3_list, 0), jnp.float32), # [6, 1, WC]
      ap_band=jnp.asarray(ap_band, mxu_dtype),
      inv_cnt=jnp.asarray(inv_cnt, jnp.float32),
  )


# --------------------------- pure-JAX reference -----------------------------

def nasnet_nc_reference(params, s0, s1):
  P = jax.lax.Precision.HIGHEST

  def pw_bn(x, cb):
    y = jnp.einsum("nhwi,io->nhwo", x, cb["w"], precision=P)
    return y * cb["scale"] + cb["bias"]

  def dw(x, k):
    K, _, C = k.shape
    return jax.lax.conv_general_dilated(
        x, k.reshape(K, K, 1, C), (1, 1), "SAME",
        dimension_numbers=("NHWC", "HWIO", "NHWC"),
        feature_group_count=C, precision=P)

  def sep(x, sp):
    y = pw_bn(dw(jax.nn.relu(x), sp["dw1"]), sp["pw1"])
    return pw_bn(dw(jax.nn.relu(y), sp["dw2"]), sp["pw2"])

  def avg_pool(x):
    s = jax.lax.reduce_window(x, 0.0, jax.lax.add, (1, 3, 3, 1), (1, 1, 1, 1), "SAME")
    c = jax.lax.reduce_window(jnp.ones_like(x), 0.0, jax.lax.add,
                              (1, 3, 3, 1), (1, 1, 1, 1), "SAME")
    return s / c

  x0 = pw_bn(jax.nn.relu(s0), params["pre0"])
  x1 = pw_bn(jax.nn.relu(s1), params["pre1"])
  n2 = sep(x1, params["sep5_s1"]) + sep(x0, params["sep3_s0a"])
  n3 = sep(x0, params["sep5_s0"]) + sep(x0, params["sep3_s0b"])
  ap0 = avg_pool(x0)
  n4 = avg_pool(x1) + x0
  n5 = ap0 + ap0
  n6 = sep(x1, params["sep3_s1"]) + x1
  return jnp.concatenate([n2, n3, n4, n5, n6], axis=-1)


# --------------------------------- main --------------------------------------

if __name__ == "__main__":
  key = jax.random.PRNGKey(0)
  k_params, k0, k1 = jax.random.split(key, 3)

  N, H, W = 2, 16, 16
  pre_input_channel, input_channel, out_channel = 16, 16, 40

  params, C = init_nasnet_nc_params(k_params, pre_input_channel, input_channel,
                                    out_channel)
  packed = pack_nasnet_nc_params(params, H, W)

  # layout: NHWC (a PyTorch NCHW tensor [N, C, H, W] == transpose(0, 2, 3, 1))
  s0 = jax.random.normal(k0, (N, H, W, pre_input_channel), jnp.float32)
  s1 = jax.random.normal(k1, (N, H, W, input_channel), jnp.float32)

  fwd = jax.jit(nasnet_nc_forward)
  out = jax.block_until_ready(fwd(packed, s0, s1))

  assert out.shape == (N, H, W, 5 * C), out.shape
  assert bool(jnp.all(jnp.isfinite(out)))

  # Non-negotiable pure-JAX reference check (eval-mode PyTorch semantics).
  # Tolerance sized for bf16 MXU operands with f32 accumulation
  # (reference magnitudes are O(1), observed error is a few 1e-3).
  ref = jax.block_until_ready(jax.jit(nasnet_nc_reference)(params, s0, s1))
  err = float(jnp.max(jnp.abs(out - ref)))
  assert err < 2e-2, f"max abs error vs reference: {err}"

  print("KERNEL_OK")
</pallas_src>

<mosaic_0001>
module attributes {stable_mosaic.version = 11 : i64} {
  func.func @_nasnet_nc_cell_kernel(%arg0: i32, %arg1: memref<16x256xf32, #tpu.memory_space<vmem>>, %arg2: memref<16x256xf32, #tpu.memory_space<vmem>>, %arg3: memref<256x128xbf16, #tpu.memory_space<vmem>>, %arg4: memref<256x128xbf16, #tpu.memory_space<vmem>>, %arg5: memref<2x1x128xf32, #tpu.memory_space<vmem>>, %arg6: memref<20x128x128xbf16, #tpu.memory_space<vmem>>, %arg7: memref<4x1x128xf32, #tpu.memory_space<vmem>>, %arg8: memref<18x128x128xbf16, #tpu.memory_space<vmem>>, %arg9: memref<6x1x128xf32, #tpu.memory_space<vmem>>, %arg10: memref<128x128xbf16, #tpu.memory_space<vmem>>, %arg11: memref<16x128xf32, #tpu.memory_space<vmem>>, %arg12: memref<5x16x128xf32, #tpu.memory_space<vmem>>) attributes {dimension_semantics = [#tpu.dimension_semantics<parallel>], iteration_bounds = array<i64: 2>, scalar_prefetch = 0 : i64, scratch_operands = 0 : i64, tpu.core_type = #tpu.core_type<tc>, window_params = [{transform_indices = @transform_0, window_bounds = array<i64: 16, 256>}, {transform_indices = @transform_1, window_bounds = array<i64: 16, 256>}, {pipeline_mode = #tpu.pipeline_mode<synchronous>, transform_indices = @transform_2, window_bounds = array<i64: 256, 128>}, {pipeline_mode = #tpu.pipeline_mode<synchronous>, transform_indices = @transform_3, window_bounds = array<i64: 256, 128>}, {pipeline_mode = #tpu.pipeline_mode<synchronous>, transform_indices = @transform_4, window_bounds = array<i64: 2, 1, 128>}, {pipeline_mode = #tpu.pipeline_mode<synchronous>, transform_indices = @transform_5, window_bounds = array<i64: 20, 128, 128>}, {pipeline_mode = #tpu.pipeline_mode<synchronous>, transform_indices = @transform_6, window_bounds = array<i64: 4, 1, 128>}, {pipeline_mode = #tpu.pipeline_mode<synchronous>, transform_indices = @transform_7, window_bounds = array<i64: 18, 128, 128>}, {pipeline_mode = #tpu.pipeline_mode<synchronous>, transform_indices = @transform_8, window_bounds = array<i64: 6, 1, 128>}, {pipeline_mode = #tpu.pipeline_mode<synchronous>, transform_indices = @transform_9, window_bounds = array<i64: 128, 128>}, {pipeline_mode = #tpu.pipeline_mode<synchronous>, transform_indices = @transform_10, window_bounds = array<i64: 16, 128>}, {transform_indices = @transform_11, window_bounds = array<i64: 5, 16, 128>}]} {
    %0 = tpu.iota {dimensions = array<i32: 0>} : vector<16x128xi32>
    %c16_i32 = arith.constant 16 : i32
    %c0_i32 = arith.constant 0 : i32
    %1 = arith.cmpi eq, %c16_i32, %c0_i32 : i32
    %c1_i32 = arith.constant 1 : i32
    %2 = arith.select %1, %c1_i32, %c16_i32 : i32
    %3 = vector.broadcast %2 : i32 to vector<16x128xi32>
    %4 = arith.remsi %0, %3 : vector<16x128xi32>
    %c0_i32_0 = arith.constant 0 : i32
    %5 = vector.broadcast %c0_i32_0 : i32 to vector<16x128xi32>
    %6 = arith.cmpi ne, %4, %5 : vector<16x128xi32>
    %c0_i32_1 = arith.constant 0 : i32
    %7 = vector.broadcast %c0_i32_1 : i32 to vector<16x128xi32>
    %8 = arith.cmpi slt, %4, %7 : vector<16x128xi32>
    %c0_i32_2 = arith.constant 0 : i32
    %9 = arith.cmpi slt, %2, %c0_i32_2 : i32
    %10 = vector.broadcast %9 : i1 to vector<16x128xi1>
    %11 = vector.broadcast %10 : vector<16x128xi1> to vector<16x128xi1>
    %12 = arith.xori %8, %11 : vector<16x128xi1>
    %13 = arith.andi %12, %6 : vector<16x128xi1>
    %14 = vector.broadcast %2 : i32 to vector<16x128xi32>
    %15 = arith.addi %4, %14 : vector<16x128xi32>
    %16 = arith.select %13, %15, %4 : vector<16x128xi1>, vector<16x128xi32>
    %c2_i32 = arith.constant 2 : i32
    %17 = vector.broadcast %c2_i32 : i32 to vector<16x128xi32>
    %18 = arith.cmpi sge, %16, %17 : vector<16x128xi32>
    %c1_i32_3 = arith.constant 1 : i32
    %19 = vector.broadcast %c1_i32_3 : i32 to vector<16x128xi32>
    %20 = arith.cmpi sge, %16, %19 : vector<16x128xi32>
    %c15_i32 = arith.constant 15 : i32
    %21 = vector.broadcast %c15_i32 : i32 to vector<16x128xi32>
    %22 = arith.cmpi slt, %16, %21 : vector<16x128xi32>
    %c14_i32 = arith.constant 14 : i32
    %23 = vector.broadcast %c14_i32 : i32 to vector<16x128xi32>
    %24 = arith.cmpi slt, %16, %23 : vector<16x128xi32>
    %c0 = arith.constant 0 : index
    %c0_4 = arith.constant 0 : index
    %25 = vector.load %arg11[%c0, %c0_4] : memref<16x128xf32, #tpu.memory_space<vmem>>, vector<16x128xf32>
    %c0_5 = arith.constant 0 : index
    %c0_6 = arith.constant 0 : index
    %26 = vector.load %arg1[%c0_5, %c0_6] : memref<16x256xf32, #tpu.memory_space<vmem>>, vector<16x256xf32>
    %cst = arith.constant 0.000000e+00 : f32
    %27 = vector.broadcast %cst : f32 to vector<16x256xf32>
    %28 = arith.maximumf %26, %27 : vector<16x256xf32>
    %c0_7 = arith.constant 0 : index
    %c0_8 = arith.constant 0 : index
    %c0_9 = arith.constant 0 : index
    %29 = vector.load %arg5[%c0_7, %c0_8, %c0_9] : memref<2x1x128xf32, #tpu.memory_space<vmem>>, vector<1x1x128xf32>
    %30 = vector.shape_cast %29 : vector<1x1x128xf32> to vector<1x128xf32>
    %31 = arith.truncf %28 : vector<16x256xf32> to vector<16x256xbf16>
    %c0_10 = arith.constant 0 : index
    %c0_11 = arith.constant 0 : index
    %32 = vector.load %arg3[%c0_10, %c0_11] : memref<256x128xbf16, #tpu.memory_space<vmem>>, vector<256x128xbf16>
    %cst_12 = arith.constant dense<0.000000e+00> : vector<16x128xf32>
    %33 = tpu.matmul %31, %32, %cst_12 {dimension_numbers = #tpu.dot_dimension_numbers<[1], [0], [0], [1], [0, 0, 1, 1], [], []>} : vector<16x256xbf16>, vector<256x128xbf16>, vector<16x128xf32> -> vector<16x128xf32>
    %34 = vector.broadcast %30 : vector<1x128xf32> to vector<16x128xf32>
    %35 = arith.addf %33, %34 : vector<16x128xf32>
    %c0_13 = arith.constant 0 : index
    %c0_14 = arith.constant 0 : index
    %36 = vector.load %arg2[%c0_13, %c0_14] : memref<16x256xf32, #tpu.memory_space<vmem>>, vector<16x256xf32>
    %cst_15 = arith.constant 0.000000e+00 : f32
    %37 = vector.broadcast %cst_15 : f32 to vector<16x256xf32>
    %38 = arith.maximumf %36, %37 : vector<16x256xf32>
    %c1 = arith.constant 1 : index
    %c0_16 = arith.constant 0 : index
    %c0_17 = arith.constant 0 : index
    %39 = vector.load %arg5[%c1, %c0_16, %c0_17] : memref<2x1x128xf32, #tpu.memory_space<vmem>>, vector<1x1x128xf32>
    %40 = vector.shape_cast %39 : vector<1x1x128xf32> to vector<1x128xf32>
    %41 = arith.truncf %38 : vector<16x256xf32> to vector<16x256xbf16>
    %c0_18 = arith.constant 0 : index
    %c0_19 = arith.constant 0 : index
    %42 = vector.load %arg4[%c0_18, %c0_19] : memref<256x128xbf16, #tpu.memory_space<vmem>>, vector<256x128xbf16>
    %cst_20 = arith.constant dense<0.000000e+00> : vector<16x128xf32>
    %43 = tpu.matmul %41, %42, %cst_20 {dimension_numbers = #tpu.dot_dimension_numbers<[1], [0], [0], [1], [0, 0, 1, 1], [], []>} : vector<16x256xbf16>, vector<256x128xbf16>, vector<16x128xf32> -> vector<16x128xf32>
    %44 = vector.broadcast %40 : vector<1x128xf32> to vector<16x128xf32>
    %45 = arith.addf %43, %44 : vector<16x128xf32>
    %cst_21 = arith.constant 0.000000e+00 : f32
    %46 = vector.broadcast %cst_21 : f32 to vector<16x128xf32>
    %47 = arith.maximumf %45, %46 : vector<16x128xf32>
    %cst_22 = arith.constant 0.000000e+00 : f32
    %48 = vector.broadcast %cst_22 : f32 to vector<16x128xf32>
    %c2_i32_23 = arith.constant 2 : i32
    %49 = tpu.dynamic_rotate %47 by %c2_i32_23 dim 0 : vector<16x128xf32>, i32 -> vector<16x128xf32>
    %cst_24 = arith.constant 0.000000e+00 : f32
    %50 = vector.broadcast %cst_24 : f32 to vector<16x128xf32>
    %51 = arith.select %18, %49, %50 : vector<16x128xi1>, vector<16x128xf32>
    %52 = arith.truncf %51 : vector<16x128xf32> to vector<16x128xbf16>
    %c0_25 = arith.constant 0 : index
    %c0_26 = arith.constant 0 : index
    %c0_27 = arith.constant 0 : index
    %53 = vector.load %arg6[%c0_25, %c0_26, %c0_27] : memref<20x128x128xbf16, #tpu.memory_space<vmem>>, vector<1x128x128xbf16>
    %54 = vector.shape_cast %53 : vector<1x128x128xbf16> to vector<128x128xbf16>
    %cst_28 = arith.constant dense<0.000000e+00> : vector<16x128xf32>
    %55 = tpu.matmul %52, %54, %cst_28 {dimension_numbers = #tpu.dot_dimension_numbers<[1], [0], [0], [1], [0, 0, 1, 1], [], []>} : vector<16x128xbf16>, vector<128x128xbf16>, vector<16x128xf32> -> vector<16x128xf32>
    %56 = arith.addf %48, %55 : vector<16x128xf32>
    %c1_i32_29 = arith.constant 1 : i32
    %57 = tpu.dynamic_rotate %47 by %c1_i32_29 dim 0 : vector<16x128xf32>, i32 -> vector<16x128xf32>
    %cst_30 = arith.constant 0.000000e+00 : f32
    %58 = vector.broadcast %cst_30 : f32 to vector<16x128xf32>
    %59 = arith.select %20, %57, %58 : vector<16x128xi1>, vector<16x128xf32>
    %60 = arith.truncf %59 : vector<16x128xf32> to vector<16x128xbf16>
    %c1_31 = arith.constant 1 : index
    %c0_32 = arith.constant 0 : index
    %c0_33 = arith.constant 0 : index
    %61 = vector.load %arg6[%c1_31, %c0_32, %c0_33] : memref<20x128x128xbf16, #tpu.memory_space<vmem>>, vector<1x128x128xbf16>
    %62 = vector.shape_cast %61 : vector<1x128x128xbf16> to vector<128x128xbf16>
    %cst_34 = arith.constant dense<0.000000e+00> : vector<16x128xf32>
    %63 = tpu.matmul %60, %62, %cst_34 {dimension_numbers = #tpu.dot_dimension_numbers<[1], [0], [0], [1], [0, 0, 1, 1], [], []>} : vector<16x128xbf16>, vector<128x128xbf16>, vector<16x128xf32> -> vector<16x128xf32>
    %64 = arith.addf %56, %63 : vector<16x128xf32>
    %65 = arith.truncf %47 : vector<16x128xf32> to vector<16x128xbf16>
    %c2 = arith.constant 2 : index
    %c0_35 = arith.constant 0 : index
    %c0_36 = arith.constant 0 : index
    %66 = vector.load %arg6[%c2, %c0_35, %c0_36] : memref<20x128x128xbf16, #tpu.memory_space<vmem>>, vector<1x128x128xbf16>
    %67 = vector.shape_cast %66 : vector<1x128x128xbf16> to vector<128x128xbf16>
    %cst_37 = arith.constant dense<0.000000e+00> : vector<16x128xf32>
    %68 = tpu.matmul %65, %67, %cst_37 {dimension_numbers = #tpu.dot_dimension_numbers<[1], [0], [0], [1], [0, 0, 1, 1], [], []>} : vector<16x128xbf16>, vector<128x128xbf16>, vector<16x128xf32> -> vector<16x128xf32>
    %69 = arith.addf %64, %68 : vector<16x128xf32>
    %c15_i32_38 = arith.constant 15 : i32
    %70 = tpu.dynamic_rotate %47 by %c15_i32_38 dim 0 : vector<16x128xf32>, i32 -> vector<16x128xf32>
    %cst_39 = arith.constant 0.000000e+00 : f32
    %71 = vector.broadcast %cst_39 : f32 to vector<16x128xf32>
    %72 = arith.select %22, %70, %71 : vector<16x128xi1>, vector<16x128xf32>
    %73 = arith.truncf %72 : vector<16x128xf32> to vector<16x128xbf16>
    %c3 = arith.constant 3 : index
    %c0_40 = arith.constant 0 : index
    %c0_41 = arith.constant 0 : index
    %74 = vector.load %arg6[%c3, %c0_40, %c0_41] : memref<20x128x128xbf16, #tpu.memory_space<vmem>>, vector<1x128x128xbf16>
    %75 = vector.shape_cast %74 : vector<1x128x128xbf16> to vector<128x128xbf16>
    %cst_42 = arith.constant dense<0.000000e+00> : vector<16x128xf32>
    %76 = tpu.matmul %73, %75, %cst_42 {dimension_numbers = #tpu.dot_dimension_numbers<[1], [0], [0], [1], [0, 0, 1, 1], [], []>} : vector<16x128xbf16>, vector<128x128xbf16>, vector<16x128xf32> -> vector<16x128xf32>
    %77 = arith.addf %69, %76 : vector<16x128xf32>
    %c14_i32_43 = arith.constant 14 : i32
    %78 = tpu.dynamic_rotate %47 by %c14_i32_43 dim 0 : vector<16x128xf32>, i32 -> vector<16x128xf32>
    %cst_44 = arith.constant 0.000000e+00 : f32
    %79 = vector.broadcast %cst_44 : f32 to vector<16x128xf32>
    %80 = arith.select %24, %78, %79 : vector<16x128xi1>, vector<16x128xf32>
    %81 = arith.truncf %80 : vector<16x128xf32> to vector<16x128xbf16>
    %c4 = arith.constant 4 : index
    %c0_45 = arith.constant 0 : index
    %c0_46 = arith.constant 0 : index
    %82 = vector.load %arg6[%c4, %c0_45, %c0_46] : memref<20x128x128xbf16, #tpu.memory_space<vmem>>, vector<1x128x128xbf16>
    %83 = vector.shape_cast %82 : vector<1x128x128xbf16> to vector<128x128xbf16>
    %cst_47 = arith.constant dense<0.000000e+00> : vector<16x128xf32>
    %84 = tpu.matmul %81, %83, %cst_47 {dimension_numbers = #tpu.dot_dimension_numbers<[1], [0], [0], [1], [0, 0, 1, 1], [], []>} : vector<16x128xbf16>, vector<128x128xbf16>, vector<16x128xf32> -> vector<16x128xf32>
    %85 = arith.addf %77, %84 : vector<16x128xf32>
    %c0_48 = arith.constant 0 : index
    %c0_49 = arith.constant 0 : index
    %c0_50 = arith.constant 0 : index
    %86 = vector.load %arg7[%c0_48, %c0_49, %c0_50] : memref<4x1x128xf32, #tpu.memory_space<vmem>>, vector<1x1x128xf32>
    %87 = vector.shape_cast %86 : vector<1x1x128xf32> to vector<1x128xf32>
    %88 = vector.broadcast %87 : vector<1x128xf32> to vector<16x128xf32>
    %89 = arith.addf %85, %88 : vector<16x128xf32>
    %cst_51 = arith.constant 0.000000e+00 : f32
    %90 = vector.broadcast %cst_51 : f32 to vector<16x128xf32>
    %91 = arith.maximumf %89, %90 : vector<16x128xf32>
    %cst_52 = arith.constant 0.000000e+00 : f32
    %92 = vector.broadcast %cst_52 : f32 to vector<16x128xf32>
    %c2_i32_53 = arith.constant 2 : i32
    %93 = tpu.dynamic_rotate %91 by %c2_i32_53 dim 0 : vector<16x128xf32>, i32 -> vector<16x128xf32>
    %cst_54 = arith.constant 0.000000e+00 : f32
    %94 = vector.broadcast %cst_54 : f32 to vector<16x128xf32>
    %95 = arith.select %18, %93, %94 : vector<16x128xi1>, vector<16x128xf32>
    %96 = arith.truncf %95 : vector<16x128xf32> to vector<16x128xbf16>
    %c5 = arith.constant 5 : index
    %c0_55 = arith.constant 0 : index
    %c0_56 = arith.constant 0 : index
    %97 = vector.load %arg6[%c5, %c0_55, %c0_56] : memref<20x128x128xbf16, #tpu.memory_space<vmem>>, vector<1x128x128xbf16>
    %98 = vector.shape_cast %97 : vector<1x128x128xbf16> to vector<128x128xbf16>
    %cst_57 = arith.constant dense<0.000000e+00> : vector<16x128xf32>
    %99 = tpu.matmul %96, %98, %cst_57 {dimension_numbers = #tpu.dot_dimension_numbers<[1], [0], [0], [1], [0, 0, 1, 1], [], []>} : vector<16x128xbf16>, vector<128x128xbf16>, vector<16x128xf32> -> vector<16x128xf32>
    %100 = arith.addf %92, %99 : vector<16x128xf32>
    %c1_i32_58 = arith.constant 1 : i32
    %101 = tpu.dynamic_rotate %91 by %c1_i32_58 dim 0 : vector<16x128xf32>, i32 -> vector<16x128xf32>
    %cst_59 = arith.constant 0.000000e+00 : f32
    %102 = vector.broadcast %cst_59 : f32 to vector<16x128xf32>
    %103 = arith.select %20, %101, %102 : vector<16x128xi1>, vector<16x128xf32>
    %104 = arith.truncf %103 : vector<16x128xf32> to vector<16x128xbf16>
    %c6 = arith.constant 6 : index
    %c0_60 = arith.constant 0 : index
    %c0_61 = arith.constant 0 : index
    %105 = vector.load %arg6[%c6, %c0_60, %c0_61] : memref<20x128x128xbf16, #tpu.memory_space<vmem>>, vector<1x128x128xbf16>
    %106 = vector.shape_cast %105 : vector<1x128x128xbf16> to vector<128x128xbf16>
    %cst_62 = arith.constant dense<0.000000e+00> : vector<16x128xf32>
    %107 = tpu.matmul %104, %106, %cst_62 {dimension_numbers = #tpu.dot_dimension_numbers<[1], [0], [0], [1], [0, 0, 1, 1], [], []>} : vector<16x128xbf16>, vector<128x128xbf16>, vector<16x128xf32> -> vector<16x128xf32>
    %108 = arith.addf %100, %107 : vector<16x128xf32>
    %109 = arith.truncf %91 : vector<16x128xf32> to vector<16x128xbf16>
    %c7 = arith.constant 7 : index
    %c0_63 = arith.constant 0 : index
    %c0_64 = arith.constant 0 : index
    %110 = vector.load %arg6[%c7, %c0_63, %c0_64] : memref<20x128x128xbf16, #tpu.memory_space<vmem>>, vector<1x128x128xbf16>
    %111 = vector.shape_cast %110 : vector<1x128x128xbf16> to vector<128x128xbf16>
    %cst_65 = arith.constant dense<0.000000e+00> : vector<16x128xf32>
    %112 = tpu.matmul %109, %111, %cst_65 {dimension_numbers = #tpu.dot_dimension_numbers<[1], [0], [0], [1], [0, 0, 1, 1], [], []>} : vector<16x128xbf16>, vector<128x128xbf16>, vector<16x128xf32> -> vector<16x128xf32>
    %113 = arith.addf %108, %112 : vector<16x128xf32>
    %c15_i32_66 = arith.constant 15 : i32
    %114 = tpu.dynamic_rotate %91 by %c15_i32_66 dim 0 : vector<16x128xf32>, i32 -> vector<16x128xf32>
    %cst_67 = arith.constant 0.000000e+00 : f32
    %115 = vector.broadcast %cst_67 : f32 to vector<16x128xf32>
    %116 = arith.select %22, %114, %115 : vector<16x128xi1>, vector<16x128xf32>
    %117 = arith.truncf %116 : vector<16x128xf32> to vector<16x128xbf16>
    %c8 = arith.constant 8 : index
    %c0_68 = arith.constant 0 : index
    %c0_69 = arith.constant 0 : index
    %118 = vector.load %arg6[%c8, %c0_68, %c0_69] : memref<20x128x128xbf16, #tpu.memory_space<vmem>>, vector<1x128x128xbf16>
    %119 = vector.shape_cast %118 : vector<1x128x128xbf16> to vector<128x128xbf16>
    %cst_70 = arith.constant dense<0.000000e+00> : vector<16x128xf32>
    %120 = tpu.matmul %117, %119, %cst_70 {dimension_numbers = #tpu.dot_dimension_numbers<[1], [0], [0], [1], [0, 0, 1, 1], [], []>} : vector<16x128xbf16>, vector<128x128xbf16>, vector<16x128xf32> -> vector<16x128xf32>
    %121 = arith.addf %113, %120 : vector<16x128xf32>
    %c14_i32_71 = arith.constant 14 : i32
    %122 = tpu.dynamic_rotate %91 by %c14_i32_71 dim 0 : vector<16x128xf32>, i32 -> vector<16x128xf32>
    %cst_72 = arith.constant 0.000000e+00 : f32
    %123 = vector.broadcast %cst_72 : f32 to vector<16x128xf32>
    %124 = arith.select %24, %122, %123 : vector<16x128xi1>, vector<16x128xf32>
    %125 = arith.truncf %124 : vector<16x128xf32> to vector<16x128xbf16>
    %c9 = arith.constant 9 : index
    %c0_73 = arith.constant 0 : index
    %c0_74 = arith.constant 0 : index
    %126 = vector.load %arg6[%c9, %c0_73, %c0_74] : memref<20x128x128xbf16, #tpu.memory_space<vmem>>, vector<1x128x128xbf16>
    %127 = vector.shape_cast %126 : vector<1x128x128xbf16> to vector<128x128xbf16>
    %cst_75 = arith.constant dense<0.000000e+00> : vector<16x128xf32>
    %128 = tpu.matmul %125, %127, %cst_75 {dimension_numbers = #tpu.dot_dimension_numbers<[1], [0], [0], [1], [0, 0, 1, 1], [], []>} : vector<16x128xbf16>, vector<128x128xbf16>, vector<16x128xf32> -> vector<16x128xf32>
    %129 = arith.addf %121, %128 : vector<16x128xf32>
    %c1_76 = arith.constant 1 : index
    %c0_77 = arith.constant 0 : index
    %c0_78 = arith.constant 0 : index
    %130 = vector.load %arg7[%c1_76, %c0_77, %c0_78] : memref<4x1x128xf32, #tpu.memory_space<vmem>>, vector<1x1x128xf32>
    %131 = vector.shape_cast %130 : vector<1x1x128xf32> to vector<1x128xf32>
    %132 = vector.broadcast %131 : vector<1x128xf32> to vector<16x128xf32>
    %133 = arith.addf %129, %132 : vector<16x128xf32>
    %cst_79 = arith.constant 0.000000e+00 : f32
    %134 = vector.broadcast %cst_79 : f32 to vector<16x128xf32>
    %135 = arith.maximumf %35, %134 : vector<16x128xf32>
    %cst_80 = arith.constant 0.000000e+00 : f32
    %136 = vector.broadcast %cst_80 : f32 to vector<16x128xf32>
    %c1_i32_81 = arith.constant 1 : i32
    %137 = tpu.dynamic_rotate %135 by %c1_i32_81 dim 0 : vector<16x128xf32>, i32 -> vector<16x128xf32>
    %cst_82 = arith.constant 0.000000e+00 : f32
    %138 = vector.broadcast %cst_82 : f32 to vector<16x128xf32>
    %139 = arith.select %20, %137, %138 : vector<16x128xi1>, vector<16x128xf32>
    %140 = arith.truncf %139 : vector<16x128xf32> to vector<16x128xbf16>
    %c0_83 = arith.constant 0 : index
    %c0_84 = arith.constant 0 : index
    %c0_85 = arith.constant 0 : index
    %141 = vector.load %arg8[%c0_83, %c0_84, %c0_85] : memref<18x128x128xbf16, #tpu.memory_space<vmem>>, vector<1x128x128xbf16>
    %142 = vector.shape_cast %141 : vector<1x128x128xbf16> to vector<128x128xbf16>
    %cst_86 = arith.constant dense<0.000000e+00> : vector<16x128xf32>
    %143 = tpu.matmul %140, %142, %cst_86 {dimension_numbers = #tpu.dot_dimension_numbers<[1], [0], [0], [1], [0, 0, 1, 1], [], []>} : vector<16x128xbf16>, vector<128x128xbf16>, vector<16x128xf32> -> vector<16x128xf32>
    %144 = arith.addf %136, %143 : vector<16x128xf32>
    %145 = arith.truncf %135 : vector<16x128xf32> to vector<16x128xbf16>
    %c1_87 = arith.constant 1 : index
    %c0_88 = arith.constant 0 : index
    %c0_89 = arith.constant 0 : index
    %146 = vector.load %arg8[%c1_87, %c0_88, %c0_89] : memref<18x128x128xbf16, #tpu.memory_space<vmem>>, vector<1x128x128xbf16>
    %147 = vector.shape_cast %146 : vector<1x128x128xbf16> to vector<128x128xbf16>
    %cst_90 = arith.constant dense<0.000000e+00> : vector<16x128xf32>
    %148 = tpu.matmul %145, %147, %cst_90 {dimension_numbers = #tpu.dot_dimension_numbers<[1], [0], [0], [1], [0, 0, 1, 1], [], []>} : vector<16x128xbf16>, vector<128x128xbf16>, vector<16x128xf32> -> vector<16x128xf32>
    %149 = arith.addf %144, %148 : vector<16x128xf32>
    %c15_i32_91 = arith.constant 15 : i32
    %150 = tpu.dynamic_rotate %135 by %c15_i32_91 dim 0 : vector<16x128xf32>, i32 -> vector<16x128xf32>
    %cst_92 = arith.constant 0.000000e+00 : f32
    %151 = vector.broadcast %cst_92 : f32 to vector<16x128xf32>
    %152 = arith.select %22, %150, %151 : vector<16x128xi1>, vector<16x128xf32>
    %153 = arith.truncf %152 : vector<16x128xf32> to vector<16x128xbf16>
    %c2_93 = arith.constant 2 : index
    %c0_94 = arith.constant 0 : index
    %c0_95 = arith.constant 0 : index
    %154 = vector.load %arg8[%c2_93, %c0_94, %c0_95] : memref<18x128x128xbf16, #tpu.memory_space<vmem>>, vector<1x128x128xbf16>
    %155 = vector.shape_cast %154 : vector<1x128x128xbf16> to vector<128x128xbf16>
    %cst_96 = arith.constant dense<0.000000e+00> : vector<16x128xf32>
    %156 = tpu.matmul %153, %155, %cst_96 {dimension_numbers = #tpu.dot_dimension_numbers<[1], [0], [0], [1], [0, 0, 1, 1], [], []>} : vector<16x128xbf16>, vector<128x128xbf16>, vector<16x128xf32> -> vector<16x128xf32>
    %157 = arith.addf %149, %156 : vector<16x128xf32>
    %c0_97 = arith.constant 0 : index
    %c0_98 = arith.constant 0 : index
    %c0_99 = arith.constant 0 : index
    %158 = vector.load %arg9[%c0_97, %c0_98, %c0_99] : memref<6x1x128xf32, #tpu.memory_space<vmem>>, vector<1x1x128xf32>
    %159 = vector.shape_cast %158 : vector<1x1x128xf32> to vector<1x128xf32>
    %160 = vector.broadcast %159 : vector<1x128xf32> to vector<16x128xf32>
    %161 = arith.addf %157, %160 : vector<16x128xf32>
    %cst_100 = arith.constant 0.000000e+00 : f32
    %162 = vector.broadcast %cst_100 : f32 to vector<16x128xf32>
    %163 = arith.maximumf %161, %162 : vector<16x128xf32>
    %cst_101 = arith.constant 0.000000e+00 : f32
    %164 = vector.broadcast %cst_101 : f32 to vector<16x128xf32>
    %c1_i32_102 = arith.constant 1 : i32
    %165 = tpu.dynamic_rotate %163 by %c1_i32_102 dim 0 : vector<16x128xf32>, i32 -> vector<16x128xf32>
    %cst_103 = arith.constant 0.000000e+00 : f32
    %166 = vector.broadcast %cst_103 : f32 to vector<16x128xf32>
    %167 = arith.select %20, %165, %166 : vector<16x128xi1>, vector<16x128xf32>
    %168 = arith.truncf %167 : vector<16x128xf32> to vector<16x128xbf16>
    %c3_104 = arith.constant 3 : index
    %c0_105 = arith.constant 0 : index
    %c0_106 = arith.constant 0 : index
    %169 = vector.load %arg8[%c3_104, %c0_105, %c0_106] : memref<18x128x128xbf16, #tpu.memory_space<vmem>>, vector<1x128x128xbf16>
    %170 = vector.shape_cast %169 : vector<1x128x128xbf16> to vector<128x128xbf16>
    %cst_107 = arith.constant dense<0.000000e+00> : vector<16x128xf32>
    %171 = tpu.matmul %168, %170, %cst_107 {dimension_numbers = #tpu.dot_dimension_numbers<[1], [0], [0], [1], [0, 0, 1, 1], [], []>} : vector<16x128xbf16>, vector<128x128xbf16>, vector<16x128xf32> -> vector<16x128xf32>
    %172 = arith.addf %164, %171 : vector<16x128xf32>
    %173 = arith.truncf %163 : vector<16x128xf32> to vector<16x128xbf16>
    %c4_108 = arith.constant 4 : index
    %c0_109 = arith.constant 0 : index
    %c0_110 = arith.constant 0 : index
    %174 = vector.load %arg8[%c4_108, %c0_109, %c0_110] : memref<18x128x128xbf16, #tpu.memory_space<vmem>>, vector<1x128x128xbf16>
    %175 = vector.shape_cast %174 : vector<1x128x128xbf16> to vector<128x128xbf16>
    %cst_111 = arith.constant dense<0.000000e+00> : vector<16x128xf32>
    %176 = tpu.matmul %173, %175, %cst_111 {dimension_numbers = #tpu.dot_dimension_numbers<[1], [0], [0], [1], [0, 0, 1, 1], [], []>} : vector<16x128xbf16>, vector<128x128xbf16>, vector<16x128xf32> -> vector<16x128xf32>
    %177 = arith.addf %172, %176 : vector<16x128xf32>
    %c15_i32_112 = arith.constant 15 : i32
    %178 = tpu.dynamic_rotate %163 by %c15_i32_112 dim 0 : vector<16x128xf32>, i32 -> vector<16x128xf32>
    %cst_113 = arith.constant 0.000000e+00 : f32
    %179 = vector.broadcast %cst_113 : f32 to vector<16x128xf32>
    %180 = arith.select %22, %178, %179 : vector<16x128xi1>, vector<16x128xf32>
    %181 = arith.truncf %180 : vector<16x128xf32> to vector<16x128xbf16>
    %c5_114 = arith.constant 5 : index
    %c0_115 = arith.constant 0 : index
    %c0_116 = arith.constant 0 : index
    %182 = vector.load %arg8[%c5_114, %c0_115, %c0_116] : memref<18x128x128xbf16, #tpu.memory_space<vmem>>, vector<1x128x128xbf16>
    %183 = vector.shape_cast %182 : vector<1x128x128xbf16> to vector<128x128xbf16>
    %cst_117 = arith.constant dense<0.000000e+00> : vector<16x128xf32>
    %184 = tpu.matmul %181, %183, %cst_117 {dimension_numbers = #tpu.dot_dimension_numbers<[1], [0], [0], [1], [0, 0, 1, 1], [], []>} : vector<16x128xbf16>, vector<128x128xbf16>, vector<16x128xf32> -> vector<16x128xf32>
    %185 = arith.addf %177, %184 : vector<16x128xf32>
    %c1_118 = arith.constant 1 : index
    %c0_119 = arith.constant 0 : index
    %c0_120 = arith.constant 0 : index
    %186 = vector.load %arg9[%c1_118, %c0_119, %c0_120] : memref<6x1x128xf32, #tpu.memory_space<vmem>>, vector<1x1x128xf32>
    %187 = vector.shape_cast %186 : vector<1x1x128xf32> to vector<1x128xf32>
    %188 = vector.broadcast %187 : vector<1x128xf32> to vector<16x128xf32>
    %189 = arith.addf %185, %188 : vector<16x128xf32>
    %190 = arith.addf %133, %189 : vector<16x128xf32>
    %c0_121 = arith.constant 0 : index
    %c0_122 = arith.constant 0 : index
    %c0_123 = arith.constant 0 : index
    %191 = vector.load %arg12[%c0_121, %c0_122, %c0_123] : memref<5x16x128xf32, #tpu.memory_space<vmem>>, vector<1x16x128xf32>
    %192 = vector.shape_cast %191 : vector<1x16x128xf32> to vector<16x128xf32>
    %193 = vector.shape_cast %190 : vector<16x128xf32> to vector<1x16x128xf32>
    tpu.vector_store %arg12[%c0_121, %c0_122, %c0_123], %193 {strides = array<i32>} : memref<5x16x128xf32, #tpu.memory_space<vmem>>, vector<1x16x128xf32>,
    %cst_124 = arith.constant 0.000000e+00 : f32
    %194 = vector.broadcast %cst_124 : f32 to vector<16x128xf32>
    %195 = arith.maximumf %35, %194 : vector<16x128xf32>
    %cst_125 = arith.constant 0.000000e+00 : f32
    %196 = vector.broadcast %cst_125 : f32 to vector<16x128xf32>
    %c2_i32_126 = arith.constant 2 : i32
    %197 = tpu.dynamic_rotate %195 by %c2_i32_126 dim 0 : vector<16x128xf32>, i32 -> vector<16x128xf32>
    %cst_127 = arith.constant 0.000000e+00 : f32
    %198 = vector.broadcast %cst_127 : f32 to vector<16x128xf32>
    %199 = arith.select %18, %197, %198 : vector<16x128xi1>, vector<16x128xf32>
    %200 = arith.truncf %199 : vector<16x128xf32> to vector<16x128xbf16>
    %c10 = arith.constant 10 : index
    %c0_128 = arith.constant 0 : index
    %c0_129 = arith.constant 0 : index
    %201 = vector.load %arg6[%c10, %c0_128, %c0_129] : memref<20x128x128xbf16, #tpu.memory_space<vmem>>, vector<1x128x128xbf16>
    %202 = vector.shape_cast %201 : vector<1x128x128xbf16> to vector<128x128xbf16>
    %cst_130 = arith.constant dense<0.000000e+00> : vector<16x128xf32>
    %203 = tpu.matmul %200, %202, %cst_130 {dimension_numbers = #tpu.dot_dimension_numbers<[1], [0], [0], [1], [0, 0, 1, 1], [], []>} : vector<16x128xbf16>, vector<128x128xbf16>, vector<16x128xf32> -> vector<16x128xf32>
    %204 = arith.addf %196, %203 : vector<16x128xf32>
    %c1_i32_131 = arith.constant 1 : i32
    %205 = tpu.dynamic_rotate %195 by %c1_i32_131 dim 0 : vector<16x128xf32>, i32 -> vector<16x128xf32>
    %cst_132 = arith.constant 0.000000e+00 : f32
    %206 = vector.broadcast %cst_132 : f32 to vector<16x128xf32>
    %207 = arith.select %20, %205, %206 : vector<16x128xi1>, vector<16x128xf32>
    %208 = arith.truncf %207 : vector<16x128xf32> to vector<16x128xbf16>
    %c11 = arith.constant 11 : index
    %c0_133 = arith.constant 0 : index
    %c0_134 = arith.constant 0 : index
    %209 = vector.load %arg6[%c11, %c0_133, %c0_134] : memref<20x128x128xbf16, #tpu.memory_space<vmem>>, vector<1x128x128xbf16>
    %210 = vector.shape_cast %209 : vector<1x128x128xbf16> to vector<128x128xbf16>
    %cst_135 = arith.constant dense<0.000000e+00> : vector<16x128xf32>
    %211 = tpu.matmul %208, %210, %cst_135 {dimension_numbers = #tpu.dot_dimension_numbers<[1], [0], [0], [1], [0, 0, 1, 1], [], []>} : vector<16x128xbf16>, vector<128x128xbf16>, vector<16x128xf32> -> vector<16x128xf32>
    %212 = arith.addf %204, %211 : vector<16x128xf32>
    %213 = arith.truncf %195 : vector<16x128xf32> to vector<16x128xbf16>
    %c12 = arith.constant 12 : index
    %c0_136 = arith.constant 0 : index
    %c0_137 = arith.constant 0 : index
    %214 = vector.load %arg6[%c12, %c0_136, %c0_137] : memref<20x128x128xbf16, #tpu.memory_space<vmem>>, vector<1x128x128xbf16>
    %215 = vector.shape_cast %214 : vector<1x128x128xbf16> to vector<128x128xbf16>
    %cst_138 = arith.constant dense<0.000000e+00> : vector<16x128xf32>
    %216 = tpu.matmul %213, %215, %cst_138 {dimension_numbers = #tpu.dot_dimension_numbers<[1], [0], [0], [1], [0, 0, 1, 1], [], []>} : vector<16x128xbf16>, vector<128x128xbf16>, vector<16x128xf32> -> vector<16x128xf32>
    %217 = arith.addf %212, %216 : vector<16x128xf32>
    %c15_i32_139 = arith.constant 15 : i32
    %218 = tpu.dynamic_rotate %195 by %c15_i32_139 dim 0 : vector<16x128xf32>, i32 -> vector<16x128xf32>
    %cst_140 = arith.constant 0.000000e+00 : f32
    %219 = vector.broadcast %cst_140 : f32 to vector<16x128xf32>
    %220 = arith.select %22, %218, %219 : vector<16x128xi1>, vector<16x128xf32>
    %221 = arith.truncf %220 : vector<16x128xf32> to vector<16x128xbf16>
    %c13 = arith.constant 13 : index
    %c0_141 = arith.constant 0 : index
    %c0_142 = arith.constant 0 : index
    %222 = vector.load %arg6[%c13, %c0_141, %c0_142] : memref<20x128x128xbf16, #tpu.memory_space<vmem>>, vector<1x128x128xbf16>
    %223 = vector.shape_cast %222 : vector<1x128x128xbf16> to vector<128x128xbf16>
    %cst_143 = arith.constant dense<0.000000e+00> : vector<16x128xf32>
    %224 = tpu.matmul %221, %223, %cst_143 {dimension_numbers = #tpu.dot_dimension_numbers<[1], [0], [0], [1], [0, 0, 1, 1], [], []>} : vector<16x128xbf16>, vector<128x128xbf16>, vector<16x128xf32> -> vector<16x128xf32>
    %225 = arith.addf %217, %224 : vector<16x128xf32>
    %c14_i32_144 = arith.constant 14 : i32
    %226 = tpu.dynamic_rotate %195 by %c14_i32_144 dim 0 : vector<16x128xf32>, i32 -> vector<16x128xf32>
    %cst_145 = arith.constant 0.000000e+00 : f32
    %227 = vector.broadcast %cst_145 : f32 to vector<16x128xf32>
    %228 = arith.select %24, %226, %227 : vector<16x128xi1>, vector<16x128xf32>
    %229 = arith.truncf %228 : vector<16x128xf32> to vector<16x128xbf16>
    %c14 = arith.constant 14 : index
    %c0_146 = arith.constant 0 : index
    %c0_147 = arith.constant 0 : index
    %230 = vector.load %arg6[%c14, %c0_146, %c0_147] : memref<20x128x128xbf16, #tpu.memory_space<vmem>>, vector<1x128x128xbf16>
    %231 = vector.shape_cast %230 : vector<1x128x128xbf16> to vector<128x128xbf16>
    %cst_148 = arith.constant dense<0.000000e+00> : vector<16x128xf32>
    %232 = tpu.matmul %229, %231, %cst_148 {dimension_numbers = #tpu.dot_dimension_numbers<[1], [0], [0], [1], [0, 0, 1, 1], [], []>} : vector<16x128xbf16>, vector<128x128xbf16>, vector<16x128xf32> -> vector<16x128xf32>
    %233 = arith.addf %225, %232 : vector<16x128xf32>
    %c2_149 = arith.constant 2 : index
    %c0_150 = arith.constant 0 : index
    %c0_151 = arith.constant 0 : index
    %234 = vector.load %arg7[%c2_149, %c0_150, %c0_151] : memref<4x1x128xf32, #tpu.memory_space<vmem>>, vector<1x1x128xf32>
    %235 = vector.shape_cast %234 : vector<1x1x128xf32> to vector<1x128xf32>
    %236 = vector.broadcast %235 : vector<1x128xf32> to vector<16x128xf32>
    %237 = arith.addf %233, %236 : vector<16x128xf32>
    %cst_152 = arith.constant 0.000000e+00 : f32
    %238 = vector.broadcast %cst_152 : f32 to vector<16x128xf32>
    %239 = arith.maximumf %237, %238 : vector<16x128xf32>
    %cst_153 = arith.constant 0.000000e+00 : f32
    %240 = vector.broadcast %cst_153 : f32 to vector<16x128xf32>
    %c2_i32_154 = arith.constant 2 : i32
    %241 = tpu.dynamic_rotate %239 by %c2_i32_154 dim 0 : vector<16x128xf32>, i32 -> vector<16x128xf32>
    %cst_155 = arith.constant 0.000000e+00 : f32
    %242 = vector.broadcast %cst_155 : f32 to vector<16x128xf32>
    %243 = arith.select %18, %241, %242 : vector<16x128xi1>, vector<16x128xf32>
    %244 = arith.truncf %243 : vector<16x128xf32> to vector<16x128xbf16>
    %c15 = arith.constant 15 : index
    %c0_156 = arith.constant 0 : index
    %c0_157 = arith.constant 0 : index
    %245 = vector.load %arg6[%c15, %c0_156, %c0_157] : memref<20x128x128xbf16, #tpu.memory_space<vmem>>, vector<1x128x128xbf16>
    %246 = vector.shape_cast %245 : vector<1x128x128xbf16> to vector<128x128xbf16>
    %cst_158 = arith.constant dense<0.000000e+00> : vector<16x128xf32>
    %247 = tpu.matmul %244, %246, %cst_158 {dimension_numbers = #tpu.dot_dimension_numbers<[1], [0], [0], [1], [0, 0, 1, 1], [], []>} : vector<16x128xbf16>, vector<128x128xbf16>, vector<16x128xf32> -> vector<16x128xf32>
    %248 = arith.addf %240, %247 : vector<16x128xf32>
    %c1_i32_159 = arith.constant 1 : i32
    %249 = tpu.dynamic_rotate %239 by %c1_i32_159 dim 0 : vector<16x128xf32>, i32 -> vector<16x128xf32>
    %cst_160 = arith.constant 0.000000e+00 : f32
    %250 = vector.broadcast %cst_160 : f32 to vector<16x128xf32>
    %251 = arith.select %20, %249, %250 : vector<16x128xi1>, vector<16x128xf32>
    %252 = arith.truncf %251 : vector<16x128xf32> to vector<16x128xbf16>
    %c16 = arith.constant 16 : index
    %c0_161 = arith.constant 0 : index
    %c0_162 = arith.constant 0 : index
    %253 = vector.load %arg6[%c16, %c0_161, %c0_162] : memref<20x128x128xbf16, #tpu.memory_space<vmem>>, vector<1x128x128xbf16>
    %254 = vector.shape_cast %253 : vector<1x128x128xbf16> to vector<128x128xbf16>
    %cst_163 = arith.constant dense<0.000000e+00> : vector<16x128xf32>
    %255 = tpu.matmul %252, %254, %cst_163 {dimension_numbers = #tpu.dot_dimension_numbers<[1], [0], [0], [1], [0, 0, 1, 1], [], []>} : vector<16x128xbf16>, vector<128x128xbf16>, vector<16x128xf32> -> vector<16x128xf32>
    %256 = arith.addf %248, %255 : vector<16x128xf32>
    %257 = arith.truncf %239 : vector<16x128xf32> to vector<16x128xbf16>
    %c17 = arith.constant 17 : index
    %c0_164 = arith.constant 0 : index
    %c0_165 = arith.constant 0 : index
    %258 = vector.load %arg6[%c17, %c0_164, %c0_165] : memref<20x128x128xbf16, #tpu.memory_space<vmem>>, vector<1x128x128xbf16>
    %259 = vector.shape_cast %258 : vector<1x128x128xbf16> to vector<128x128xbf16>
    %cst_166 = arith.constant dense<0.000000e+00> : vector<16x128xf32>
    %260 = tpu.matmul %257, %259, %cst_166 {dimension_numbers = #tpu.dot_dimension_numbers<[1], [0], [0], [1], [0, 0, 1, 1], [], []>} : vector<16x128xbf16>, vector<128x128xbf16>, vector<16x128xf32> -> vector<16x128xf32>
    %261 = arith.addf %256, %260 : vector<16x128xf32>
    %c15_i32_167 = arith.constant 15 : i32
    %262 = tpu.dynamic_rotate %239 by %c15_i32_167 dim 0 : vector<16x128xf32>, i32 -> vector<16x128xf32>
    %cst_168 = arith.constant 0.000000e+00 : f32
    %263 = vector.broadcast %cst_168 : f32 to vector<16x128xf32>
    %264 = arith.select %22, %262, %263 : vector<16x128xi1>, vector<16x128xf32>
    %265 = arith.truncf %264 : vector<16x128xf32> to vector<16x128xbf16>
    %c18 = arith.constant 18 : index
    %c0_169 = arith.constant 0 : index
    %c0_170 = arith.constant 0 : index
    %266 = vector.load %arg6[%c18, %c0_169, %c0_170] : memref<20x128x128xbf16, #tpu.memory_space<vmem>>, vector<1x128x128xbf16>
    %267 = vector.shape_cast %266 : vector<1x128x128xbf16> to vector<128x128xbf16>
    %cst_171 = arith.constant dense<0.000000e+00> : vector<16x128xf32>
    %268 = tpu.matmul %265, %267, %cst_171 {dimension_numbers = #tpu.dot_dimension_numbers<[1], [0], [0], [1], [0, 0, 1, 1], [], []>} : vector<16x128xbf16>, vector<128x128xbf16>, vector<16x128xf32> -> vector<16x128xf32>
    %269 = arith.addf %261, %268 : vector<16x128xf32>
    %c14_i32_172 = arith.constant 14 : i32
    %270 = tpu.dynamic_rotate %239 by %c14_i32_172 dim 0 : vector<16x128xf32>, i32 -> vector<16x128xf32>
    %cst_173 = arith.constant 0.000000e+00 : f32
    %271 = vector.broadcast %cst_173 : f32 to vector<16x128xf32>
    %272 = arith.select %24, %270, %271 : vector<16x128xi1>, vector<16x128xf32>
    %273 = arith.truncf %272 : vector<16x128xf32> to vector<16x128xbf16>
    %c19 = arith.constant 19 : index
    %c0_174 = arith.constant 0 : index
    %c0_175 = arith.constant 0 : index
    %274 = vector.load %arg6[%c19, %c0_174, %c0_175] : memref<20x128x128xbf16, #tpu.memory_space<vmem>>, vector<1x128x128xbf16>
    %275 = vector.shape_cast %274 : vector<1x128x128xbf16> to vector<128x128xbf16>
    %cst_176 = arith.constant dense<0.000000e+00> : vector<16x128xf32>
    %276 = tpu.matmul %273, %275, %cst_176 {dimension_numbers = #tpu.dot_dimension_numbers<[1], [0], [0], [1], [0, 0, 1, 1], [], []>} : vector<16x128xbf16>, vector<128x128xbf16>, vector<16x128xf32> -> vector<16x128xf32>
    %277 = arith.addf %269, %276 : vector<16x128xf32>
    %c3_177 = arith.constant 3 : index
    %c0_178 = arith.constant 0 : index
    %c0_179 = arith.constant 0 : index
    %278 = vector.load %arg7[%c3_177, %c0_178, %c0_179] : memref<4x1x128xf32, #tpu.memory_space<vmem>>, vector<1x1x128xf32>
    %279 = vector.shape_cast %278 : vector<1x1x128xf32> to vector<1x128xf32>
    %280 = vector.broadcast %279 : vector<1x128xf32> to vector<16x128xf32>
    %281 = arith.addf %277, %280 : vector<16x128xf32>
    %cst_180 = arith.constant 0.000000e+00 : f32
    %282 = vector.broadcast %cst_180 : f32 to vector<16x128xf32>
    %283 = arith.maximumf %35, %282 : vector<16x128xf32>
    %cst_181 = arith.constant 0.000000e+00 : f32
    %284 = vector.broadcast %cst_181 : f32 to vector<16x128xf32>
    %c1_i32_182 = arith.constant 1 : i32
    %285 = tpu.dynamic_rotate %283 by %c1_i32_182 dim 0 : vector<16x128xf32>, i32 -> vector<16x128xf32>
    %cst_183 = arith.constant 0.000000e+00 : f32
    %286 = vector.broadcast %cst_183 : f32 to vector<16x128xf32>
    %287 = arith.select %20, %285, %286 : vector<16x128xi1>, vector<16x128xf32>
    %288 = arith.truncf %287 : vector<16x128xf32> to vector<16x128xbf16>
    %c6_184 = arith.constant 6 : index
    %c0_185 = arith.constant 0 : index
    %c0_186 = arith.constant 0 : index
    %289 = vector.load %arg8[%c6_184, %c0_185, %c0_186] : memref<18x128x128xbf16, #tpu.memory_space<vmem>>, vector<1x128x128xbf16>
    %290 = vector.shape_cast %289 : vector<1x128x128xbf16> to vector<128x128xbf16>
    %cst_187 = arith.constant dense<0.000000e+00> : vector<16x128xf32>
    %291 = tpu.matmul %288, %290, %cst_187 {dimension_numbers = #tpu.dot_dimension_numbers<[1], [0], [0], [1], [0, 0, 1, 1], [], []>} : vector<16x128xbf16>, vector<128x128xbf16>, vector<16x128xf32> -> vector<16x128xf32>
    %292 = arith.addf %284, %291 : vector<16x128xf32>
    %293 = arith.truncf %283 : vector<16x128xf32> to vector<16x128xbf16>
    %c7_188 = arith.constant 7 : index
    %c0_189 = arith.constant 0 : index
    %c0_190 = arith.constant 0 : index
    %294 = vector.load %arg8[%c7_188, %c0_189, %c0_190] : memref<18x128x128xbf16, #tpu.memory_space<vmem>>, vector<1x128x128xbf16>
    %295 = vector.shape_cast %294 : vector<1x128x128xbf16> to vector<128x128xbf16>
    %cst_191 = arith.constant dense<0.000000e+00> : vector<16x128xf32>
    %296 = tpu.matmul %293, %295, %cst_191 {dimension_numbers = #tpu.dot_dimension_numbers<[1], [0], [0], [1], [0, 0, 1, 1], [], []>} : vector<16x128xbf16>, vector<128x128xbf16>, vector<16x128xf32> -> vector<16x128xf32>
    %297 = arith.addf %292, %296 : vector<16x128xf32>
    %c15_i32_192 = arith.constant 15 : i32
    %298 = tpu.dynamic_rotate %283 by %c15_i32_192 dim 0 : vector<16x128xf32>, i32 -> vector<16x128xf32>
    %cst_193 = arith.constant 0.000000e+00 : f32
    %299 = vector.broadcast %cst_193 : f32 to vector<16x128xf32>
    %300 = arith.select %22, %298, %299 : vector<16x128xi1>, vector<16x128xf32>
    %301 = arith.truncf %300 : vector<16x128xf32> to vector<16x128xbf16>
    %c8_194 = arith.constant 8 : index
    %c0_195 = arith.constant 0 : index
    %c0_196 = arith.constant 0 : index
    %302 = vector.load %arg8[%c8_194, %c0_195, %c0_196] : memref<18x128x128xbf16, #tpu.memory_space<vmem>>, vector<1x128x128xbf16>
    %303 = vector.shape_cast %302 : vector<1x128x128xbf16> to vector<128x128xbf16>
    %cst_197 = arith.constant dense<0.000000e+00> : vector<16x128xf32>
    %304 = tpu.matmul %301, %303, %cst_197 {dimension_numbers = #tpu.dot_dimension_numbers<[1], [0], [0], [1], [0, 0, 1, 1], [], []>} : vector<16x128xbf16>, vector<128x128xbf16>, vector<16x128xf32> -> vector<16x128xf32>
    %305 = arith.addf %297, %304 : vector<16x128xf32>
    %c2_198 = arith.constant 2 : index
    %c0_199 = arith.constant 0 : index
    %c0_200 = arith.constant 0 : index
    %306 = vector.load %arg9[%c2_198, %c0_199, %c0_200] : memref<6x1x128xf32, #tpu.memory_space<vmem>>, vector<1x1x128xf32>
    %307 = vector.shape_cast %306 : vector<1x1x128xf32> to vector<1x128xf32>
    %308 = vector.broadcast %307 : vector<1x128xf32> to vector<16x128xf32>
    %309 = arith.addf %305, %308 : vector<16x128xf32>
    %cst_201 = arith.constant 0.000000e+00 : f32
    %310 = vector.broadcast %cst_201 : f32 to vector<16x128xf32>
    %311 = arith.maximumf %309, %310 : vector<16x128xf32>
    %cst_202 = arith.constant 0.000000e+00 : f32
    %312 = vector.broadcast %cst_202 : f32 to vector<16x128xf32>
    %c1_i32_203 = arith.constant 1 : i32
    %313 = tpu.dynamic_rotate %311 by %c1_i32_203 dim 0 : vector<16x128xf32>, i32 -> vector<16x128xf32>
    %cst_204 = arith.constant 0.000000e+00 : f32
    %314 = vector.broadcast %cst_204 : f32 to vector<16x128xf32>
    %315 = arith.select %20, %313, %314 : vector<16x128xi1>, vector<16x128xf32>
    %316 = arith.truncf %315 : vector<16x128xf32> to vector<16x128xbf16>
    %c9_205 = arith.constant 9 : index
    %c0_206 = arith.constant 0 : index
    %c0_207 = arith.constant 0 : index
    %317 = vector.load %arg8[%c9_205, %c0_206, %c0_207] : memref<18x128x128xbf16, #tpu.memory_space<vmem>>, vector<1x128x128xbf16>
    %318 = vector.shape_cast %317 : vector<1x128x128xbf16> to vector<128x128xbf16>
    %cst_208 = arith.constant dense<0.000000e+00> : vector<16x128xf32>
    %319 = tpu.matmul %316, %318, %cst_208 {dimension_numbers = #tpu.dot_dimension_numbers<[1], [0], [0], [1], [0, 0, 1, 1], [], []>} : vector<16x128xbf16>, vector<128x128xbf16>, vector<16x128xf32> -> vector<16x128xf32>
    %320 = arith.addf %312, %319 : vector<16x128xf32>
    %321 = arith.truncf %311 : vector<16x128xf32> to vector<16x128xbf16>
    %c10_209 = arith.constant 10 : index
    %c0_210 = arith.constant 0 : index
    %c0_211 = arith.constant 0 : index
    %322 = vector.load %arg8[%c10_209, %c0_210, %c0_211] : memref<18x128x128xbf16, #tpu.memory_space<vmem>>, vector<1x128x128xbf16>
    %323 = vector.shape_cast %322 : vector<1x128x128xbf16> to vector<128x128xbf16>
    %cst_212 = arith.constant dense<0.000000e+00> : vector<16x128xf32>
    %324 = tpu.matmul %321, %323, %cst_212 {dimension_numbers = #tpu.dot_dimension_numbers<[1], [0], [0], [1], [0, 0, 1, 1], [], []>} : vector<16x128xbf16>, vector<128x128xbf16>, vector<16x128xf32> -> vector<16x128xf32>
    %325 = arith.addf %320, %324 : vector<16x128xf32>
    %c15_i32_213 = arith.constant 15 : i32
    %326 = tpu.dynamic_rotate %311 by %c15_i32_213 dim 0 : vector<16x128xf32>, i32 -> vector<16x128xf32>
    %cst_214 = arith.constant 0.000000e+00 : f32
    %327 = vector.broadcast %cst_214 : f32 to vector<16x128xf32>
    %328 = arith.select %22, %326, %327 : vector<16x128xi1>, vector<16x128xf32>
    %329 = arith.truncf %328 : vector<16x128xf32> to vector<16x128xbf16>
    %c11_215 = arith.constant 11 : index
    %c0_216 = arith.constant 0 : index
    %c0_217 = arith.constant 0 : index
    %330 = vector.load %arg8[%c11_215, %c0_216, %c0_217] : memref<18x128x128xbf16, #tpu.memory_space<vmem>>, vector<1x128x128xbf16>
    %331 = vector.shape_cast %330 : vector<1x128x128xbf16> to vector<128x128xbf16>
    %cst_218 = arith.constant dense<0.000000e+00> : vector<16x128xf32>
    %332 = tpu.matmul %329, %331, %cst_218 {dimension_numbers = #tpu.dot_dimension_numbers<[1], [0], [0], [1], [0, 0, 1, 1], [], []>} : vector<16x128xbf16>, vector<128x128xbf16>, vector<16x128xf32> -> vector<16x128xf32>
    %333 = arith.addf %325, %332 : vector<16x128xf32>
    %c3_219 = arith.constant 3 : index
    %c0_220 = arith.constant 0 : index
    %c0_221 = arith.constant 0 : index
    %334 = vector.load %arg9[%c3_219, %c0_220, %c0_221] : memref<6x1x128xf32, #tpu.memory_space<vmem>>, vector<1x1x128xf32>
    %335 = vector.shape_cast %334 : vector<1x1x128xf32> to vector<1x128xf32>
    %336 = vector.broadcast %335 : vector<1x128xf32> to vector<16x128xf32>
    %337 = arith.addf %333, %336 : vector<16x128xf32>
    %338 = arith.addf %281, %337 : vector<16x128xf32>
    %c1_222 = arith.constant 1 : index
    %c0_223 = arith.constant 0 : index
    %c0_224 = arith.constant 0 : index
    %339 = vector.load %arg12[%c1_222, %c0_223, %c0_224] : memref<5x16x128xf32, #tpu.memory_space<vmem>>, vector<1x16x128xf32>
    %340 = vector.shape_cast %339 : vector<1x16x128xf32> to vector<16x128xf32>
    %341 = vector.shape_cast %338 : vector<16x128xf32> to vector<1x16x128xf32>
    tpu.vector_store %arg12[%c1_222, %c0_223, %c0_224], %341 {strides = array<i32>} : memref<5x16x128xf32, #tpu.memory_space<vmem>>, vector<1x16x128xf32>,
    %c1_i32_225 = arith.constant 1 : i32
    %342 = tpu.dynamic_rotate %45 by %c1_i32_225 dim 0 : vector<16x128xf32>, i32 -> vector<16x128xf32>
    %cst_226 = arith.constant 0.000000e+00 : f32
    %343 = vector.broadcast %cst_226 : f32 to vector<16x128xf32>
    %344 = arith.select %20, %342, %343 : vector<16x128xi1>, vector<16x128xf32>
    %345 = arith.addf %344, %45 : vector<16x128xf32>
    %c15_i32_227 = arith.constant 15 : i32
    %346 = tpu.dynamic_rotate %45 by %c15_i32_227 dim 0 : vector<16x128xf32>, i32 -> vector<16x128xf32>
    %cst_228 = arith.constant 0.000000e+00 : f32
    %347 = vector.broadcast %cst_228 : f32 to vector<16x128xf32>
    %348 = arith.select %22, %346, %347 : vector<16x128xi1>, vector<16x128xf32>
    %349 = arith.addf %345, %348 : vector<16x128xf32>
    %350 = arith.truncf %349 : vector<16x128xf32> to vector<16x128xbf16>
    %c0_229 = arith.constant 0 : index
    %c0_230 = arith.constant 0 : index
    %351 = vector.load %arg10[%c0_229, %c0_230] : memref<128x128xbf16, #tpu.memory_space<vmem>>, vector<128x128xbf16>
    %cst_231 = arith.constant dense<0.000000e+00> : vector<16x128xf32>
    %352 = tpu.matmul %350, %351, %cst_231 {dimension_numbers = #tpu.dot_dimension_numbers<[1], [0], [0], [1], [0, 0, 1, 1], [], []>} : vector<16x128xbf16>, vector<128x128xbf16>, vector<16x128xf32> -> vector<16x128xf32>
    %353 = arith.mulf %352, %25 : vector<16x128xf32>
    %354 = arith.addf %353, %35 : vector<16x128xf32>
    %c2_232 = arith.constant 2 : index
    %c0_233 = arith.constant 0 : index
    %c0_234 = arith.constant 0 : index
    %355 = vector.load %arg12[%c2_232, %c0_233, %c0_234] : memref<5x16x128xf32, #tpu.memory_space<vmem>>, vector<1x16x128xf32>
    %356 = vector.shape_cast %355 : vector<1x16x128xf32> to vector<16x128xf32>
    %357 = vector.shape_cast %354 : vector<16x128xf32> to vector<1x16x128xf32>
    tpu.vector_store %arg12[%c2_232, %c0_233, %c0_234], %357 {strides = array<i32>} : memref<5x16x128xf32, #tpu.memory_space<vmem>>, vector<1x16x128xf32>,
    %c1_i32_235 = arith.constant 1 : i32
    %358 = tpu.dynamic_rotate %35 by %c1_i32_235 dim 0 : vector<16x128xf32>, i32 -> vector<16x128xf32>
    %cst_236 = arith.constant 0.000000e+00 : f32
    %359 = vector.broadcast %cst_236 : f32 to vector<16x128xf32>
    %360 = arith.select %20, %358, %359 : vector<16x128xi1>, vector<16x128xf32>
    %361 = arith.addf %360, %35 : vector<16x128xf32>
    %c15_i32_237 = arith.constant 15 : i32
    %362 = tpu.dynamic_rotate %35 by %c15_i32_237 dim 0 : vector<16x128xf32>, i32 -> vector<16x128xf32>
    %cst_238 = arith.constant 0.000000e+00 : f32
    %363 = vector.broadcast %cst_238 : f32 to vector<16x128xf32>
    %364 = arith.select %22, %362, %363 : vector<16x128xi1>, vector<16x128xf32>
    %365 = arith.addf %361, %364 : vector<16x128xf32>
    %366 = arith.truncf %365 : vector<16x128xf32> to vector<16x128xbf16>
    %c0_239 = arith.constant 0 : index
    %c0_240 = arith.constant 0 : index
    %367 = vector.load %arg10[%c0_239, %c0_240] : memref<128x128xbf16, #tpu.memory_space<vmem>>, vector<128x128xbf16>
    %cst_241 = arith.constant dense<0.000000e+00> : vector<16x128xf32>
    %368 = tpu.matmul %366, %367, %cst_241 {dimension_numbers = #tpu.dot_dimension_numbers<[1], [0], [0], [1], [0, 0, 1, 1], [], []>} : vector<16x128xbf16>, vector<128x128xbf16>, vector<16x128xf32> -> vector<16x128xf32>
    %369 = arith.mulf %368, %25 : vector<16x128xf32>
    %cst_242 = arith.constant 2.000000e+00 : f32
    %370 = vector.broadcast %cst_242 : f32 to vector<16x128xf32>
    %371 = arith.mulf %369, %370 : vector<16x128xf32>
    %c3_243 = arith.constant 3 : index
    %c0_244 = arith.constant 0 : index
    %c0_245 = arith.constant 0 : index
    %372 = vector.load %arg12[%c3_243, %c0_244, %c0_245] : memref<5x16x128xf32, #tpu.memory_space<vmem>>, vector<1x16x128xf32>
    %373 = vector.shape_cast %372 : vector<1x16x128xf32> to vector<16x128xf32>
    %374 = vector.shape_cast %371 : vector<16x128xf32> to vector<1x16x128xf32>
    tpu.vector_store %arg12[%c3_243, %c0_244, %c0_245], %374 {strides = array<i32>} : memref<5x16x128xf32, #tpu.memory_space<vmem>>, vector<1x16x128xf32>,
    %cst_246 = arith.constant 0.000000e+00 : f32
    %375 = vector.broadcast %cst_246 : f32 to vector<16x128xf32>
    %376 = arith.maximumf %45, %375 : vector<16x128xf32>
    %cst_247 = arith.constant 0.000000e+00 : f32
    %377 = vector.broadcast %cst_247 : f32 to vector<16x128xf32>
    %c1_i32_248 = arith.constant 1 : i32
    %378 = tpu.dynamic_rotate %376 by %c1_i32_248 dim 0 : vector<16x128xf32>, i32 -> vector<16x128xf32>
    %cst_249 = arith.constant 0.000000e+00 : f32
    %379 = vector.broadcast %cst_249 : f32 to vector<16x128xf32>
    %380 = arith.select %20, %378, %379 : vector<16x128xi1>, vector<16x128xf32>
    %381 = arith.truncf %380 : vector<16x128xf32> to vector<16x128xbf16>
    %c12_250 = arith.constant 12 : index
    %c0_251 = arith.constant 0 : index
    %c0_252 = arith.constant 0 : index
    %382 = vector.load %arg8[%c12_250, %c0_251, %c0_252] : memref<18x128x128xbf16, #tpu.memory_space<vmem>>, vector<1x128x128xbf16>
    %383 = vector.shape_cast %382 : vector<1x128x128xbf16> to vector<128x128xbf16>
    %cst_253 = arith.constant dense<0.000000e+00> : vector<16x128xf32>
    %384 = tpu.matmul %381, %383, %cst_253 {dimension_numbers = #tpu.dot_dimension_numbers<[1], [0], [0], [1], [0, 0, 1, 1], [], []>} : vector<16x128xbf16>, vector<128x128xbf16>, vector<16x128xf32> -> vector<16x128xf32>
    %385 = arith.addf %377, %384 : vector<16x128xf32>
    %386 = arith.truncf %376 : vector<16x128xf32> to vector<16x128xbf16>
    %c13_254 = arith.constant 13 : index
    %c0_255 = arith.constant 0 : index
    %c0_256 = arith.constant 0 : index
    %387 = vector.load %arg8[%c13_254, %c0_255, %c0_256] : memref<18x128x128xbf16, #tpu.memory_space<vmem>>, vector<1x128x128xbf16>
    %388 = vector.shape_cast %387 : vector<1x128x128xbf16> to vector<128x128xbf16>
    %cst_257 = arith.constant dense<0.000000e+00> : vector<16x128xf32>
    %389 = tpu.matmul %386, %388, %cst_257 {dimension_numbers = #tpu.dot_dimension_numbers<[1], [0], [0], [1], [0, 0, 1, 1], [], []>} : vector<16x128xbf16>, vector<128x128xbf16>, vector<16x128xf32> -> vector<16x128xf32>
    %390 = arith.addf %385, %389 : vector<16x128xf32>
    %c15_i32_258 = arith.constant 15 : i32
    %391 = tpu.dynamic_rotate %376 by %c15_i32_258 dim 0 : vector<16x128xf32>, i32 -> vector<16x128xf32>
    %cst_259 = arith.constant 0.000000e+00 : f32
    %392 = vector.broadcast %cst_259 : f32 to vector<16x128xf32>
    %393 = arith.select %22, %391, %392 : vector<16x128xi1>, vector<16x128xf32>
    %394 = arith.truncf %393 : vector<16x128xf32> to vector<16x128xbf16>
    %c14_260 = arith.constant 14 : index
    %c0_261 = arith.constant 0 : index
    %c0_262 = arith.constant 0 : index
    %395 = vector.load %arg8[%c14_260, %c0_261, %c0_262] : memref<18x128x128xbf16, #tpu.memory_space<vmem>>, vector<1x128x128xbf16>
    %396 = vector.shape_cast %395 : vector<1x128x128xbf16> to vector<128x128xbf16>
    %cst_263 = arith.constant dense<0.000000e+00> : vector<16x128xf32>
    %397 = tpu.matmul %394, %396, %cst_263 {dimension_numbers = #tpu.dot_dimension_numbers<[1], [0], [0], [1], [0, 0, 1, 1], [], []>} : vector<16x128xbf16>, vector<128x128xbf16>, vector<16x128xf32> -> vector<16x128xf32>
    %398 = arith.addf %390, %397 : vector<16x128xf32>
    %c4_264 = arith.constant 4 : index
    %c0_265 = arith.constant 0 : index
    %c0_266 = arith.constant 0 : index
    %399 = vector.load %arg9[%c4_264, %c0_265, %c0_266] : memref<6x1x128xf32, #tpu.memory_space<vmem>>, vector<1x1x128xf32>
    %400 = vector.shape_cast %399 : vector<1x1x128xf32> to vector<1x128xf32>
    %401 = vector.broadcast %400 : vector<1x128xf32> to vector<16x128xf32>
    %402 = arith.addf %398, %401 : vector<16x128xf32>
    %cst_267 = arith.constant 0.000000e+00 : f32
    %403 = vector.broadcast %cst_267 : f32 to vector<16x128xf32>
    %404 = arith.maximumf %402, %403 : vector<16x128xf32>
    %cst_268 = arith.constant 0.000000e+00 : f32
    %405 = vector.broadcast %cst_268 : f32 to vector<16x128xf32>
    %c1_i32_269 = arith.constant 1 : i32
    %406 = tpu.dynamic_rotate %404 by %c1_i32_269 dim 0 : vector<16x128xf32>, i32 -> vector<16x128xf32>
    %cst_270 = arith.constant 0.000000e+00 : f32
    %407 = vector.broadcast %cst_270 : f32 to vector<16x128xf32>
    %408 = arith.select %20, %406, %407 : vector<16x128xi1>, vector<16x128xf32>
    %409 = arith.truncf %408 : vector<16x128xf32> to vector<16x128xbf16>
    %c15_271 = arith.constant 15 : index
    %c0_272 = arith.constant 0 : index
    %c0_273 = arith.constant 0 : index
    %410 = vector.load %arg8[%c15_271, %c0_272, %c0_273] : memref<18x128x128xbf16, #tpu.memory_space<vmem>>, vector<1x128x128xbf16>
    %411 = vector.shape_cast %410 : vector<1x128x128xbf16> to vector<128x128xbf16>
    %cst_274 = arith.constant dense<0.000000e+00> : vector<16x128xf32>
    %412 = tpu.matmul %409, %411, %cst_274 {dimension_numbers = #tpu.dot_dimension_numbers<[1], [0], [0], [1], [0, 0, 1, 1], [], []>} : vector<16x128xbf16>, vector<128x128xbf16>, vector<16x128xf32> -> vector<16x128xf32>
    %413 = arith.addf %405, %412 : vector<16x128xf32>
    %414 = arith.truncf %404 : vector<16x128xf32> to vector<16x128xbf16>
    %c16_275 = arith.constant 16 : index
    %c0_276 = arith.constant 0 : index
    %c0_277 = arith.constant 0 : index
    %415 = vector.load %arg8[%c16_275, %c0_276, %c0_277] : memref<18x128x128xbf16, #tpu.memory_space<vmem>>, vector<1x128x128xbf16>
    %416 = vector.shape_cast %415 : vector<1x128x128xbf16> to vector<128x128xbf16>
    %cst_278 = arith.constant dense<0.000000e+00> : vector<16x128xf32>
    %417 = tpu.matmul %414, %416, %cst_278 {dimension_numbers = #tpu.dot_dimension_numbers<[1], [0], [0], [1], [0, 0, 1, 1], [], []>} : vector<16x128xbf16>, vector<128x128xbf16>, vector<16x128xf32> -> vector<16x128xf32>
    %418 = arith.addf %413, %417 : vector<16x128xf32>
    %c15_i32_279 = arith.constant 15 : i32
    %419 = tpu.dynamic_rotate %404 by %c15_i32_279 dim 0 : vector<16x128xf32>, i32 -> vector<16x128xf32>
    %cst_280 = arith.constant 0.000000e+00 : f32
    %420 = vector.broadcast %cst_280 : f32 to vector<16x128xf32>
    %421 = arith.select %22, %419, %420 : vector<16x128xi1>, vector<16x128xf32>
    %422 = arith.truncf %421 : vector<16x128xf32> to vector<16x128xbf16>
    %c17_281 = arith.constant 17 : index
    %c0_282 = arith.constant 0 : index
    %c0_283 = arith.constant 0 : index
    %423 = vector.load %arg8[%c17_281, %c0_282, %c0_283] : memref<18x128x128xbf16, #tpu.memory_space<vmem>>, vector<1x128x128xbf16>
    %424 = vector.shape_cast %423 : vector<1x128x128xbf16> to vector<128x128xbf16>
    %cst_284 = arith.constant dense<0.000000e+00> : vector<16x128xf32>
    %425 = tpu.matmul %422, %424, %cst_284 {dimension_numbers = #tpu.dot_dimension_numbers<[1], [0], [0], [1], [0, 0, 1, 1], [], []>} : vector<16x128xbf16>, vector<128x128xbf16>, vector<16x128xf32> -> vector<16x128xf32>
    %426 = arith.addf %418, %425 : vector<16x128xf32>
    %c5_285 = arith.constant 5 : index
    %c0_286 = arith.constant 0 : index
    %c0_287 = arith.constant 0 : index
    %427 = vector.load %arg9[%c5_285, %c0_286, %c0_287] : memref<6x1x128xf32, #tpu.memory_space<vmem>>, vector<1x1x128xf32>
    %428 = vector.shape_cast %427 : vector<1x1x128xf32> to vector<1x128xf32>
    %429 = vector.broadcast %428 : vector<1x128xf32> to vector<16x128xf32>
    %430 = arith.addf %426, %429 : vector<16x128xf32>
    %431 = arith.addf %430, %45 : vector<16x128xf32>
    %c4_288 = arith.constant 4 : index
    %c0_289 = arith.constant 0 : index
    %c0_290 = arith.constant 0 : index
    %432 = vector.load %arg12[%c4_288, %c0_289, %c0_290] : memref<5x16x128xf32, #tpu.memory_space<vmem>>, vector<1x16x128xf32>
    %433 = vector.shape_cast %432 : vector<1x16x128xf32> to vector<16x128xf32>
    %434 = vector.shape_cast %431 : vector<16x128xf32> to vector<1x16x128xf32>
    tpu.vector_store %arg12[%c4_288, %c0_289, %c0_290], %434 {strides = array<i32>} : memref<5x16x128xf32, #tpu.memory_space<vmem>>, vector<1x16x128xf32>,
    return
  }
  func.func @transform_0(%arg0: i32) -> (i32, i32) {
    %c0_i32 = arith.constant 0 : i32
    %c0_i32_0 = arith.constant 0 : i32
    return %arg0, %c0_i32 : i32, i32
  }
  func.func @transform_1(%arg0: i32) -> (i32, i32) {
    %c0_i32 = arith.constant 0 : i32
    %c0_i32_0 = arith.constant 0 : i32
    return %arg0, %c0_i32 : i32, i32
  }
  func.func @transform_2(%arg0: i32) -> (i32, i32) {
    %c0_i32 = arith.constant 0 : i32
    %c0_i32_0 = arith.constant 0 : i32
    %c0_i32_1 = arith.constant 0 : i32
    return %c0_i32, %c0_i32_0 : i32, i32
  }
  func.func @transform_3(%arg0: i32) -> (i32, i32) {
    %c0_i32 = arith.constant 0 : i32
    %c0_i32_0 = arith.constant 0 : i32
    %c0_i32_1 = arith.constant 0 : i32
    return %c0_i32, %c0_i32_0 : i32, i32
  }
  func.func @transform_4(%arg0: i32) -> (i32, i32, i32) {
    %c0_i32 = arith.constant 0 : i32
    %c0_i32_0 = arith.constant 0 : i32
    %c0_i32_1 = arith.constant 0 : i32
    %c0_i32_2 = arith.constant 0 : i32
    return %c0_i32, %c0_i32_0, %c0_i32_1 : i32, i32, i32
  }
  func.func @transform_5(%arg0: i32) -> (i32, i32, i32) {
    %c0_i32 = arith.constant 0 : i32
    %c0_i32_0 = arith.constant 0 : i32
    %c0_i32_1 = arith.constant 0 : i32
    %c0_i32_2 = arith.constant 0 : i32
    return %c0_i32, %c0_i32_0, %c0_i32_1 : i32, i32, i32
  }
  func.func @transform_6(%arg0: i32) -> (i32, i32, i32) {
    %c0_i32 = arith.constant 0 : i32
    %c0_i32_0 = arith.constant 0 : i32
    %c0_i32_1 = arith.constant 0 : i32
    %c0_i32_2 = arith.constant 0 : i32
    return %c0_i32, %c0_i32_0, %c0_i32_1 : i32, i32, i32
  }
  func.func @transform_7(%arg0: i32) -> (i32, i32, i32) {
    %c0_i32 = arith.constant 0 : i32
    %c0_i32_0 = arith.constant 0 : i32
    %c0_i32_1 = arith.constant 0 : i32
    %c0_i32_2 = arith.constant 0 : i32
    return %c0_i32, %c0_i32_0, %c0_i32_1 : i32, i32, i32
  }
  func.func @transform_8(%arg0: i32) -> (i32, i32, i32) {
    %c0_i32 = arith.constant 0 : i32
    %c0_i32_0 = arith.constant 0 : i32
    %c0_i32_1 = arith.constant 0 : i32
    %c0_i32_2 = arith.constant 0 : i32
    return %c0_i32, %c0_i32_0, %c0_i32_1 : i32, i32, i32
  }
  func.func @transform_9(%arg0: i32) -> (i32, i32) {
    %c0_i32 = arith.constant 0 : i32
    %c0_i32_0 = arith.constant 0 : i32
    %c0_i32_1 = arith.constant 0 : i32
    return %c0_i32, %c0_i32_0 : i32, i32
  }
  func.func @transform_10(%arg0: i32) -> (i32, i32) {
    %c0_i32 = arith.constant 0 : i32
    %c0_i32_0 = arith.constant 0 : i32
    %c0_i32_1 = arith.constant 0 : i32
    return %c0_i32, %c0_i32_0 : i32, i32
  }
  func.func @transform_11(%arg0: i32) -> (i32, i32, i32) {
    %c0_i32 = arith.constant 0 : i32
    %c0_i32_0 = arith.constant 0 : i32
    %c0_i32_1 = arith.constant 0 : i32
    return %c0_i32, %arg0, %c0_i32_0 : i32, i32, i32
  }
}

</mosaic_0001>

<bundles_post_ra>
// kernel: nasnet_nc_forward.1
= control target key start
LH: loop header
LB: loop body
LE: loop exit
PB: predicated region body
PF: predicated region fallthrough
CT: control target
= control target key end

     0   :  { %s10001_s0 = inlined_call_operand.vmem [shape: f32[32,256], index: 0, kind: input, shape index: {}]   ;;  %s10002_s1 = inlined_call_operand.vmem [shape: f32[32,256], index: 1, kind: input, shape index: {}]   ;;  %s10003_s2 = inlined_call_operand.hbm [shape: bf16[256,128], index: 2, kind: input, shape index: {}]   ;;  %s10004_s3 = inlined_call_operand.hbm [shape: bf16[256,128], index: 3, kind: input, shape index: {}]   ;;  %s10005_s4 = inlined_call_operand.vmem [shape: f32[2,1,128], index: 4, kind: input, shape index: {}]   ;;  %s10006_s5 = inlined_call_operand.hbm [shape: bf16[20,128,128], index: 5, kind: input, shape index: {}]   ;;  %s10007_s6 = inlined_call_operand.vmem [shape: f32[4,1,128], index: 6, kind: input, shape index: {}]   ;;  %s10008_s7 = inlined_call_operand.vmem [shape: bf16[18,128,128], index: 7, kind: input, shape index: {}]   ;;  %s10009_s8 = inlined_call_operand.vmem [shape: f32[6,1,128], index: 8, kind: input, shape index: {}]   ;;  %s10010_s9 = inlined_call_operand.hbm [shape: bf16[128,128], index: 9, kind: input, shape index: {}]   ;;  %s10011_s10 = inlined_call_operand.hbm [shape: f32[16,128], index: 10, kind: input, shape index: {}]   ;;  %s10012_s11 = inlined_call_operand.vmem [shape: f32[5,32,128], index: 11, kind: output, shape index: {}]  }
   0x1   :  { %10018 = sst [smem:[#allocation17_spill]] %s10004_s3 }
   0x2   :  { %10019 = sst [smem:[#allocation18_spill]] %s10012_s11 }
   0x3   :  { %16 = vsyncpa [#allocation3], 0 }
   0x4   :  { %17 = vsyncpa [#allocation5], 0 }
   0x5   :  { %18 = vsyncpa [#allocation8], 0  ;;  %s8413_s17 = smov 0   ;;  %s8415_s18 = smov 0  }
   0x6   :  { %s8417_s19 = smov 0  }
   0x7 LB: > { %10020 = sst [smem:[#allocation14_spill]] %s8335_s18  ;;  %s8426_s20 = sadd.s32 4294967295, %s8339_s19   ;;  %s8339_s19 = sphi %s8417_s19, %s10049_s19   ;;  %s8335_s18 = sphi %s8415_s18, %s10051_s18   ;;  %s8331_s17 = sphi %s8413_s17, %s10050_s17  }
   0x8   : > { %s8428_s21 = sadd.s32 1, %s8339_s19   ;;  %s272_s23 = sadd.s32 1, %s8335_s18 }
   0x9   : > { %10021 = sst [smem:[#allocation15_spill]] %s8428_s21  ;;  %s269_s22 = ssub.s32 %s8339_s19, %s8428_s21 }
   0xa   : > { %p270_p0 = scmp.eq.s32.totalorder %s269_s22, 0  ;;  %p282_p1 = scmp.ne.s32.totalorder %s8335_s18, %s8331_s17 }
   0xb   : > { %p283_p2 = scmp.eq.s32.totalorder %s8426_s20, 1  ;;  %p5699_p3 = scmp.ge.s32.totalorder %s8339_s19, 1 }
   0xc   : > { %s8436_s24 = scalar_select %p270_p0, %s8335_s18, %s272_s23  }
   0xd   : > { %p8438_p4 = por %p283_p2, %p282_p1  ;;  %p296_p5 = scmp.lt.s32.totalorder %s8339_s19, 3 }
   0xe   : > { %10022 = sst [smem:[#allocation16_spill]] %s8436_s24  ;;  %p10013_p6 = scmp.eq.s32.totalorder %s8426_s20, 0 }
   0xf   : > { %s10023_s25 = scalar_select %p8438_p4, 1, 0 }
  0x10   : > { %p8443_p7 = pnand %p5699_p3, %p296_p5  ;;  %s8341_s27 = smov [#allocation4]  }
  0x11   : > { %s321_s28 = sshll.u32 %s8341_s27, 4  ;;  %s8342_s30 = smov [#allocation7]   ;;  %s8449_s28 = int_to_ptr.vmem [resolvable:$true] %s321_s28 }
  0x12   : > { %s10024_s26 = scalar_select %p8443_p7, 1, 0 }
  0x13   : > { %p7751_p8 = pneg %p8443_p7  ;;  %s359_s12 = sshll.u32 %s8342_s30, 4  ;;  %s8457_s12 = int_to_ptr.vmem [resolvable:$true] %s359_s12 }
  0x14   : > { %s8343_s13 = smov [#allocation2]   ;;  %s10026_s3 = sld [smem:[#allocation17_spill]] }
  0x15   : > { %p8453_p9 = pnand %p10013_p6, %p7751_p8  ;;  %s8459_s14 = sshll.u32 %s8343_s13, 4  ;;  %s309_s14 = int_to_ptr.vmem [resolvable:$true] %s8459_s14 }
  0x17   : > { %p8469_p11 = pneg %p8453_p9 }
  0x1a   : > { %s8165_s19 = scalar_lea.hbm %s10026_s3, 2048 }
  0x1b   : > { %p8166_p10 = scmp.ne.s32.totalorder %s10026_s3, %s8165_s19  ;;  %p8172_p0 = scmp.lt.u32.totalorder %s8165_s19, %s10026_s3 }
  0x1d   : > { %p8168_p12 = pnand %p8469_p11, %p8166_p10 }
  0x1f   : > { %p8169_p13 = pneg %p8168_p12 }
  0x21   : > { %p8174_p1 = pnand %p8172_p0, %p8169_p13 }
  0x23   : > { %8177 = shalt.err (!%p8174_p1)
}
  0x24   : > { %s8178_s15 = scalar_lea.vmem %s8449_s28, 2048  ;;  %p8186_p8 = scmp.lt.s32.totalorder %s8449_s28, %s8449_s28 }
  0x25   : > { %p8179_p2 = scmp.ne.s32.totalorder %s8449_s28, %s8178_s15  ;;  %p8187_p6 = scmp.lt.s32.totalorder %s8178_s15, %s8178_s15 }
  0x27   : > { %p8181_p3 = pnand %p8179_p2, %p8469_p11  ;;  %p8188_p10 = por %p8187_p6, %p8186_p8 }
  0x29   : > { %p8182_p5 = pneg %p8181_p3 }
  0x2b   : > { %p8189_p12 = pnand %p8188_p10, %p8182_p5 }
  0x2d   : > { %8192 = shalt.err (!%p8189_p12)
}
  0x2e   : > { %s8344_s16 = smov 64   ;;  %s8345_s19 = smov 4  }
  0x2f   : > { %7757 = dma.hbm_to_vmem [thread:$0]  (!%p8453_p9), %s10026_s3, 2048, %s8449_s28, [#allocation5], %s8344_s16, %s8344_s16, %s8345_s19  }
  0x30   : > { %s8193_s15 = scalar_lea.hbm %s10010_s9, 1024 }
  0x31   : > { %p8194_p6 = scmp.ne.s32.totalorder %s10010_s9, %s8193_s15  ;;  %p8200_p1 = scmp.lt.u32.totalorder %s8193_s15, %s10010_s9 }
  0x33   : > { %p8196_p13 = pnand %p8194_p6, %p8469_p11 }
  0x35   : > { %p8197_p0 = pneg %p8196_p13 }
  0x37   : > { %p8202_p2 = pnand %p8200_p1, %p8197_p0 }
  0x39   : > { %8205 = shalt.err (!%p8202_p2)
}
  0x3a   : > { %s8206_s28 = scalar_lea.vmem %s8457_s12, 1024  ;;  %p8214_p10 = scmp.lt.s32.totalorder %s8457_s12, %s8457_s12 }
  0x3b   : > { %p8207_p3 = scmp.ne.s32.totalorder %s8457_s12, %s8206_s28  ;;  %p8215_p12 = scmp.lt.s32.totalorder %s8206_s28, %s8206_s28 }
  0x3d   : > { %p8209_p5 = pnand %p8207_p3, %p8469_p11  ;;  %p8216_p6 = por %p8215_p12, %p8214_p10 }
  0x3f   : > { %p8210_p8 = pneg %p8209_p5 }
  0x41   : > { %p8217_p13 = pnand %p8216_p6, %p8210_p8 }
  0x43   : > { %8220 = shalt.err (!%p8217_p13)
}
  0x44   : > { %7763 = dma.hbm_to_vmem [thread:$0]  (!%p8453_p9), %s10010_s9, 1024, %s8457_s12, [#allocation8], %s8344_s16, %s8344_s16, %s8345_s19  }
  0x45   : > { %s8221_s22 = scalar_lea.hbm %s10003_s2, 2048 }
  0x46   : > { %p8222_p0 = scmp.ne.s32.totalorder %s10003_s2, %s8221_s22  ;;  %p8228_p3 = scmp.lt.u32.totalorder %s8221_s22, %s10003_s2 }
  0x48   : > { %p8224_p1 = pnand %p8222_p0, %p8469_p11 }
  0x4a   : > { %p8225_p2 = pneg %p8224_p1 }
  0x4c   : > { %p8230_p5 = pnand %p8228_p3, %p8225_p2 }
  0x4e   : > { %8233 = shalt.err (!%p8230_p5)
}
  0x4f   : > { %s8234_s28 = scalar_lea.vmem %s309_s14, 2048  ;;  %p8242_p6 = scmp.lt.s32.totalorder %s309_s14, %s309_s14 }
  0x50   : > { %p8235_p8 = scmp.ne.s32.totalorder %s309_s14, %s8234_s28  ;;  %p8243_p13 = scmp.lt.s32.totalorder %s8234_s28, %s8234_s28 }
  0x52   : > { %p8237_p10 = pnand %p8235_p8, %p8469_p11  ;;  %p8244_p4 = por %p8243_p13, %p8242_p6 }
  0x54   : > { %p8238_p12 = pneg %p8237_p10 }
  0x56   : > { %p8245_p7 = pnand %p8244_p4, %p8238_p12 }
  0x58   : > { %8248 = shalt.err (!%p8245_p7)
}
  0x59   : > { %7754 = dma.hbm_to_vmem [thread:$0]  (!%p8453_p9), %s10003_s2, 2048, %s309_s14, [#allocation3], %s8344_s16, %s8344_s16, %s8345_s19  }
  0x5a   : > { %s8346_s18 = smov [#allocation6]   ;;  %s8347_s24 = smov [#allocation9]  }
  0x5b   : > { %s337_s21 = sshll.u32 %s8346_s18, 4  ;;  %s372_s22 = sshll.u32 %s8347_s24, 4  ;;  %s338_s21 = int_to_ptr.vmem [resolvable:$true] %s337_s21  ;;  %s373_s22 = int_to_ptr.vmem [resolvable:$true] %s372_s22 }
  0x5c   : > { %s8249_s13 = scalar_lea.hbm %s10006_s5, 20480 }
  0x5d   : > { %p8250_p4 = scmp.ne.s32.totalorder %s10006_s5, %s8249_s13  ;;  %p8256_p1 = scmp.lt.u32.totalorder %s8249_s13, %s10006_s5 }
  0x5f   : > { %p8252_p7 = pnand %p8250_p4, %p8469_p11 }
  0x61   : > { %p8253_p0 = pneg %p8252_p7 }
  0x63   : > { %p8258_p2 = pnand %p8256_p1, %p8253_p0 }
  0x65   : > { %8261 = shalt.err (!%p8258_p2)
}
  0x66   : > { %s8262_s14 = scalar_lea.vmem %s338_s21, 20480  ;;  %p8270_p10 = scmp.lt.s32.totalorder %s338_s21, %s338_s21 }
  0x67   : > { %p8263_p3 = scmp.ne.s32.totalorder %s338_s21, %s8262_s14  ;;  %p8271_p12 = scmp.lt.s32.totalorder %s8262_s14, %s8262_s14 }
  0x69   : > { %p8265_p5 = pnand %p8263_p3, %p8469_p11  ;;  %p8272_p6 = por %p8271_p12, %p8270_p10 }
  0x6b   : > { %p8266_p8 = pneg %p8265_p5 }
  0x6d   : > { %p8273_p13 = pnand %p8272_p6, %p8266_p8 }
  0x6f   : > { %8276 = shalt.err (!%p8273_p13)
}
  0x70   : > { %7760 = dma.hbm_to_vmem [thread:$0]  (!%p8453_p9), %s10006_s5, 20480, %s338_s21, [#allocation5], %s8344_s16, %s8344_s16, %s8345_s19  }
  0x71   : > { %s8277_s23 = scalar_lea.hbm %s10011_s10, 256 }
  0x72   : > { %p8278_p4 = scmp.ne.s32.totalorder %s10011_s10, %s8277_s23  ;;  %p8284_p1 = scmp.lt.u32.totalorder %s8277_s23, %s10011_s10 }
  0x74   : > { %p8280_p7 = pnand %p8278_p4, %p8469_p11 }
  0x76   : > { %p8281_p0 = pneg %p8280_p7 }
  0x78   : > { %p8286_p2 = pnand %p8284_p1, %p8281_p0 }
  0x7a   : > { %8289 = shalt.err (!%p8286_p2)
}
  0x7b   : > { %s8290_s12 = scalar_lea.vmem %s373_s22, 256  ;;  %p8298_p10 = scmp.lt.s32.totalorder %s373_s22, %s373_s22 }
  0x7c   : > { %p8291_p3 = scmp.ne.s32.totalorder %s373_s22, %s8290_s12  ;;  %p8299_p12 = scmp.lt.s32.totalorder %s8290_s12, %s8290_s12 }
  0x7e   : > { %p8293_p5 = pnand %p8291_p3, %p8469_p11  ;;  %p8300_p6 = por %p8299_p12, %p8298_p10 }
  0x80   : > { %p8294_p8 = pneg %p8293_p5 }
  0x82   : > { %p8301_p13 = pnand %p8300_p6, %p8294_p8 }
  0x84   : > { %8304 = shalt.err (!%p8301_p13)
}
  0x85   : > { %s8348_s16 = smov 128   ;;  %s8349_s19 = smov 8  }
  0x86   : > { %7766 = dma.hbm_to_vmem [thread:$0]  (!%p8453_p9), %s10011_s10, 256, %s373_s22, [#allocation8], %s8348_s16, %s8348_s16, %s8349_s19  }
  0x87   : > { %p10028_p4 = scmp.ne.s32.totalorder %s10024_s26, 0 }
  0x88   : > { %p10029_p7 = scmp.eq.s32.totalorder (!%p10028_p4), %s8426_s20, 0 }
  0x89   : > { %408 = sbr.rel (%p10028_p4) target bundleno = 1473 (0x5c1), region = 64 }
  0x90   : > { %8318 = dma.done.wait (%p10029_p7), [#allocation3], 2048   ;;  %p10030_p11 = pmov %p10029_p7 }
  0x91   : > { %p10031_p0 = pmov %p10029_p7 }
  0x92   : > { %8320 = vsyncadd (%p10030_p11), [#allocation3], 4294965248 }
  0x93   : > { %8322 = dma.done.wait (%p10031_p0), [#allocation5], 22528   ;;  %p10032_p1 = pmov %p10031_p0 }
  0x94   : > { %p10033_p2 = pmov %p10031_p0 }
  0x95   : > { %8324 = vsyncadd (%p10032_p1), [#allocation5], 4294944768 }
  0x96   : > { %8326 = dma.done.wait (%p10033_p2), [#allocation8], 1280   ;;  %p10034_p9 = pmov %p10031_p0 }
  0x97   : > { %s5712_s26 = sshll.u32 %s8426_s20, 1  ;;  %v7813_v0 = vld [vmem:[#allocation4 + $0x40] sm:$0xff]   ;;  %v7815_v2 = vld [vmem:[#allocation4 + $0x48] sm:$0xff]   ;;  %v7817_v4 = vld [vmem:[#allocation4 + $0x50] sm:$0xff]   ;;  %v8350_v35 = vmov 0.0   ;;  %vm8351_vm0 = vmmov 0  }
  0x98   : > { %8328 = vsyncadd (%p10034_p9), [#allocation8], 4294966016  ;;  %v7814_v1 = vld [vmem:[#allocation4] sm:$0xff]   ;;  %6484 = vmatprep.subr.bf16.mxu1 %v7813_v0  ;;  %p471_p3 = scmp.lt.s32.totalorder %s5712_s26, 3  ;;  %v7816_v3 = vld [vmem:[#allocation4 + $0x8] sm:$0xff]   ;;  %vm8352_vm6 = vmmov 1  }
  0x99   : > { %6485 = vmatpush3.bf16.msra.mxu1 %v7814_v1  ;;  %v7818_v5 = vld [vmem:[#allocation4 + $0x10] sm:$0xff]   ;;  %v7819_v6 = vld [vmem:[#allocation4 + $0x58] sm:$0xff]   ;;  %v7821_v8 = vld [vmem:[#allocation4 + $0x60] sm:$0xff]   ;;  %s467_s27 = sand.u32 1, %s8331_s17   ;;  %p10047_p5 = scmp.ne.s32.totalorder %s10023_s25, 0 }
  0x9a   : > { %6486 = vmatprep.subr.bf16.mxu1 %v7815_v2  ;;  %s10053_s26 = smov (!%p471_p3, %s5712_s26), 3  ;;  %v7820_v7 = vld [vmem:[#allocation4 + $0x18] sm:$0xff]   ;;  %v7822_v9 = vld [vmem:[#allocation4 + $0x20] sm:$0xff]   ;;  %v7823_v10 = vld [vmem:[#allocation4 + $0x68] sm:$0xff]   ;;  %s7730_s11 = smul.u32 80, %s467_s27 }
  0x9b   : > { %s6459_s29 = sshll.u32 %s10053_s26, 4  ;;  %v7824_v13 = vld [vmem:[#allocation4 + $0x28] sm:$0xff]   ;;  %v7825_v16 = vld [vmem:[#allocation4 + $0x70] sm:$0xff]   ;;  %v7829_v17 = vld [vmem:[#allocation2 + $0x40] sm:$0xff]   ;;  %s6461_s21 = sshll.u32 (%p10047_p5), %s8426_s20, 4 }
  0x9c   : > { %s482_s3 = scalar_lea.vmem %s10002_s1, %s6459_s29  ;;  %v7830_v19 = vld [vmem:[#allocation2] sm:$0xff]   ;;  %6462 = vmatprep.subr.bf16.mxu0 %v7829_v17  ;;  %v7831_v21 = vld [vmem:[#allocation2 + $0x48] sm:$0xff]   ;;  %v7826_v22 = vld [vmem:[#allocation4 + $0x30] sm:$0xff]   ;;  %s475_s24 = scalar_lea.vmem %s10001_s0, %s6459_s29 }
  0x9d   : > { %6487 = vmatpush3.bf16.msra.mxu1 %v7816_v3  ;;  %v710_v11 = vld [vmem:[%s482_s3 + $0x8] sm:$0xff]  ;;  %v712_v12 = vld [vmem:[%s482_s3 + $0x18] sm:$0xff]  ;;  %v709_v20 = vld [vmem:[%s482_s3] sm:$0xff]  ;;  %6463 = vmatpush3.bf16.msra.mxu0 %v7830_v19  ;;  %s10048_s29 = sld [smem:[#allocation18_spill]] (%p10047_p5) }
  0x9e   : > { %6488 = vmatprep.subr.bf16.mxu1 %v7817_v4  ;;  %v714_v14 = vmax.f32 %v710_v11, 0.0  ;;  %v716_v15 = vmax.f32 %v712_v12, 0.0  ;;  %v7832_v23 = vld [vmem:[#allocation2 + $0x8] sm:$0xff]   ;;  %6464 = vmatprep.subr.bf16.mxu0 %v7831_v21  ;;  %v7833_v24 = vld [vmem:[#allocation2 + $0x50] sm:$0xff]   ;;  %v7827_v26 = vld [vmem:[#allocation4 + $0x78] sm:$0xff]   ;;  %v713_v27 = vmax.f32 %v709_v20, 0.0 }
  0x9f   : > { %v711_v25 = vld [vmem:[%s482_s3 + $0x10] sm:$0xff]  ;;  %v7835_v30 = vld [vmem:[#allocation2 + $0x58] sm:$0xff]   ;;  %v7837_v34 = vld [vmem:[#allocation2 + $0x60] sm:$0xff]  }
  0xa0   : > { %v720_v18 = vpack.c.bf16 %v716_v15, %v714_v14  ;;  %v7834_v28 = vld [vmem:[#allocation2 + $0x10] sm:$0xff]   ;;  %v715_v29 = vmax.f32 %v711_v25, 0.0  ;;  %v7828_v31 = vld [vmem:[#allocation4 + $0x38] sm:$0xff]   ;;  %v7838_v36 = vld [vmem:[#allocation2 + $0x20] sm:$0xff]  }
  0xa1   : > { %6489 = vmatpush3.bf16.msra.mxu1 %v7818_v5  ;;  %6465 = vmatpush3.bf16.msra.mxu0 %v7832_v23  ;;  %v7836_v32 = vld [vmem:[#allocation2 + $0x18] sm:$0xff]   ;;  %v524_v37 = vld [vmem:[%s475_s24 + $0x8] sm:$0xff]  ;;  %v7846_v44 = vld [vmem:[#allocation6] sm:$0xff]  }
  0xa2   : > { %6490 = vmatprep.subr.bf16.mxu1 %v7819_v6  ;;  %887 = vmatprep.mubr.bf16.mxu1 %v720_v18  ;;  %v719_v33 = vpack.c.bf16 %v715_v29, %v713_v27  ;;  %v7839_v38 = vld [vmem:[#allocation2 + $0x68] sm:$0xff]   ;;  %v526_v39 = vld [vmem:[%s475_s24 + $0x18] sm:$0xff]  ;;  %v528_v40 = vmax.f32 %v524_v37, 0.0  ;;  %v7841_v45 = vld [vmem:[#allocation2 + $0x70] sm:$0xff]   ;;  %v486_v6 = vlaneseq }
  0xa3   : > { %6466 = vmatprep.subr.bf16.mxu0 %v7833_v24  ;;  %v7840_v41 = vld [vmem:[#allocation2 + $0x28] sm:$0xff]   ;;  %v530_v42 = vmax.f32 %v526_v39, 0.0  ;;  %v7842_v46 = vld [vmem:[#allocation2 + $0x30] sm:$0xff]   ;;  %v523_v48 = vld [vmem:[%s475_s24] sm:$0xff]  ;;  %s5516_s27 = scalar_lea.vmem (%p10047_p5), %s10048_s29, %s6461_s21 }
  0xa4   : > { %v7848_v47 = vld [vmem:[#allocation6 + $0x8] sm:$0xff]   ;;  %v525_v49 = vld [vmem:[%s475_s24 + $0x10] sm:$0xff]  ;;  %v7843_v50 = vld [vmem:[#allocation2 + $0x78] sm:$0xff]   ;;  %v527_v53 = vmax.f32 %v523_v48, 0.0  ;;  %v8633_v12 = vshrl.u32 %v486_v6, 7  ;;  %s9729_s24 = scalar_lea.vmem [#allocation10], %s7730_s11 }
  0xa5   : > { %6491 = vmatpush3.bf16.msra.mxu1 %v7820_v7  ;;  %6467 = vmatpush3.bf16.msra.mxu0 %v7834_v28  ;;  %v533_v43 = vpack.c.bf16 %v530_v42, %v528_v40  ;;  %v7844_v51 = vld [vmem:[#allocation2 + $0x38] sm:$0xff]   ;;  %v7850_v52 = vld [vmem:[#allocation6 + $0x10] sm:$0xff]   ;;  %v529_v54 = vmax.f32 %v525_v49, 0.0  ;;  %v7845_v56 = vld [vmem:[#allocation6 + $0x40] sm:$0xff]  }
  0xa6   : > { %6492 = vmatprep.subr.bf16.mxu1 %v7821_v8  ;;  %6468 = vmatprep.subr.bf16.mxu0 %v7835_v30  ;;  %v7852_v55 = vld [vmem:[#allocation6 + $0x18] sm:$0xff]   ;;  %v7854_v58 = vld [vmem:[#allocation6 + $0x20] sm:$0xff]   ;;  %v7847_v59 = vld [vmem:[#allocation6 + $0x48] sm:$0xff]   ;;  %v493_v15 = vand.u32 15, %v8633_v12  ;;  %vm924_vm3 = vcmp.lt.s32.totalorder %v8633_v12, 1  ;;  %vm900_vm4 = vcmp.lt.s32.totalorder %v8633_v12, 2 }
  0xa7   : > { %700 = vmatprep.mubr.bf16.mxu0 %v533_v43  ;;  %v532_v57 = vpack.c.bf16 %v529_v54, %v527_v53  ;;  %v7849_v60 = vld [vmem:[#allocation6 + $0x50] sm:$0xff]   ;;  %v7851_v61 = vld [vmem:[#allocation6 + $0x58] sm:$0xff]   ;;  %v7853_v62 = vld [vmem:[#allocation6 + $0x60] sm:$0xff]   ;;  %vm1352_vm5 = vcmp.lt.s32.totalorder %v8633_v12, 6  ;;  %vm1236_vm9 = vcmp.lt.s32.totalorder %v8633_v12, 7 }
  0xa8   : > { %v7855_v63 = vld [vmem:[#allocation6 + $0x68] sm:$0xff]   ;;  %v7857_v1 = vld [vmem:[#allocation6 + $0x70] sm:$0xff]   ;;  %v7859_v3 = vld [vmem:[#allocation6 + $0x78] sm:$0xff]   ;;  %vm513_vm1 = vcmp.ge.s32.totalorder %v493_v15, 2  ;;  %vm8646_vm2 = vcmp.ge.s32.totalorder %v493_v15, 1 }
  0xa9   : > { %6493 = vmatpush3.bf16.msra.mxu1 %v7822_v9  ;;  %6469 = vmatpush3.bf16.msra.mxu0 %v7836_v32  ;;  %v7856_v0 = vld [vmem:[#allocation6 + $0x28] sm:$0xff]   ;;  %v7858_v2 = vld [vmem:[#allocation6 + $0x30] sm:$0xff]   ;;  %v7860_v4 = vld [vmem:[#allocation6 + $0x38] sm:$0xff]  }
  0xaa   : > { %6494 = vmatprep.subr.bf16.mxu1 %v7823_v10  ;;  %6470 = vmatprep.subr.bf16.mxu0 %v7837_v34  ;;  %v5736_v5 = vld [vmem:[%s10005_s4 + $0x1] ss:$0 sm:$0xff]  ;;  %vm8658_vm7 = vmpackc.low %vm8352_vm6, %vm8646_vm2  ;;  %v7863_v37 = vld [vmem:[#allocation6 + $0x88] sm:$0xff]  }
  0xab   : > { %v7861_v25 = vld [vmem:[#allocation6 + $0x80] sm:$0xff]   ;;  %vm8665_vm8 = vmpackc.low %vm8352_vm6, %vm513_vm1  ;;  %v7864_v40 = vld [vmem:[#allocation6 + $0xc8] sm:$0xff]  }
  0xac   : > { %v5718_v42 = vld [vmem:[%s10005_s4] ss:$0 sm:$0xff]  ;;  %v7868_v53 = vld [vmem:[#allocation6 + $0xd8] sm:$0xff]  }
  0xad   : > { %6495 = vmatpush3.bf16.msra.mxu1 %v7824_v13  ;;  %6471 = vmatpush3.bf16.msra.mxu0 %v7838_v36  ;;  %v7876_v15 = vld [vmem:[#allocation6 + $0xf8] sm:$0xff]  }
  0xae   : > { %6496 = vmatprep.subr.bf16.mxu1 %v7825_v16  ;;  %6472 = vmatprep.subr.bf16.mxu0 %v7839_v38 }
  0xb1   : > { %6497 = vmatpush3.bf16.msra.mxu1 %v7826_v22  ;;  %6473 = vmatpush3.bf16.msra.mxu0 %v7840_v41  ;;  %v8160_v22 = vld [vmem:[%s10008_s7 + $0x458] sm:$0xff]  }
  0xb2   : > { %6498 = vmatprep.subr.bf16.mxu1 %v7827_v26  ;;  %6474 = vmatprep.subr.bf16.mxu0 %v7841_v45  ;;  %v7862_v26 = vld [vmem:[#allocation6 + $0xc0] sm:$0xff]  }
  0xb5   : > { %6499 = vmatpush3.bf16.msra.mxu1 %v7828_v31  ;;  %6475 = vmatpush3.bf16.msra.mxu0 %v7842_v46  ;;  %v7866_v46 = vld [vmem:[#allocation6 + $0xd0] sm:$0xff]  }
  0xb6   : > { %6886 = vmatprep.subr.bf16.mxu1 %v8350_v35  ;;  %6476 = vmatprep.subr.bf16.mxu0 %v7843_v50 }
  0xb8   : > { %888 = vmatmul.mubr.bf16.vlgmr.msra.gmra.mrb[0].mxu1 %v719_v33 }
  0xb9   : > { %6887 = vmatpush3.bf16.msra.mxu1 %v7846_v44  ;;  %6477 = vmatpush3.bf16.msra.mxu0 %v7844_v51  ;;  %v7865_v44 = vld [vmem:[#allocation6 + $0x90] sm:$0xff]  }
  0xba   : > { %6888 = vmatprep.subr.bf16.mxu1 %v8350_v35  ;;  %6866 = vmatprep.subr.bf16.mxu0 %v8350_v35 }
  0xbb   : > { %6902 = vmatprep.mubr.msk.bf16.mxu1 %vm8351_vm0, %v8350_v35 }
  0xbc   : > { %701 = vmatmul.mubr.bf16.vlgmr.msra.gmra.mrb[0].mxu0 %v532_v57 }
  0xbd   : > { %6889 = vmatpush3.bf16.msra.mxu1 %v7848_v47  ;;  %6867 = vmatpush3.bf16.msra.mxu0 %v7845_v56 }
  0xbe   : > { %6890 = vmatprep.subr.bf16.mxu1 %v8350_v35  ;;  %6868 = vmatprep.subr.bf16.mxu0 %v8350_v35 }
  0xbf   : > { %6882 = vmatprep.mubr.msk.bf16.mxu0 %vm8351_vm0, %v8350_v35 }
  0xc1   : > { %6891 = vmatpush3.bf16.msra.mxu1 %v7850_v52  ;;  %6869 = vmatpush3.bf16.msra.mxu0 %v7847_v59  ;;  %v7867_v52 = vld [vmem:[#allocation6 + $0x98] sm:$0xff]   ;;  %v7870_v59 = vld [vmem:[#allocation6 + $0xe0] sm:$0xff]  }
  0xc2   : > { %6892 = vmatprep.subr.bf16.mxu1 %v8350_v35  ;;  %6870 = vmatprep.subr.bf16.mxu0 %v8350_v35 }
  0xc5   : > { %6893 = vmatpush3.bf16.msra.mxu1 %v7852_v55  ;;  %6871 = vmatpush3.bf16.msra.mxu0 %v7849_v60 }
  0xc6   : > { %6894 = vmatprep.subr.bf16.mxu1 %v8350_v35  ;;  %6872 = vmatprep.subr.bf16.mxu0 %v8350_v35 }
  0xc9   : > { %6895 = vmatpush3.bf16.msra.mxu1 %v7854_v58  ;;  %6873 = vmatpush3.bf16.msra.mxu0 %v7851_v61  ;;  %v7869_v58 = vld [vmem:[#allocation6 + $0xa0] sm:$0xff]  }
  0xca   : > { %6896 = vmatprep.subr.bf16.mxu1 %v8350_v35  ;;  %6874 = vmatprep.subr.bf16.mxu0 %v8350_v35 }
  0xcd   : > { %6875 = vmatpush3.bf16.msra.mxu0 %v7853_v62  ;;  %6897 = vmatpush3.bf16.msra.mxu1 %v7856_v0 }
  0xce   : > { %6876 = vmatprep.subr.bf16.mxu0 %v8350_v35  ;;  %6898 = vmatprep.subr.bf16.mxu1 %v8350_v35 }
  0xd1   : > { %6877 = vmatpush3.bf16.msra.mxu0 %v7855_v63  ;;  %6899 = vmatpush3.bf16.msra.mxu1 %v7858_v2  ;;  %v7871_v63 = vld [vmem:[#allocation6 + $0xa8] sm:$0xff]  }
  0xd2   : > { %6878 = vmatprep.subr.bf16.mxu0 %v8350_v35  ;;  %6900 = vmatprep.subr.bf16.mxu1 %v8350_v35  ;;  %v7872_v2 = vld [vmem:[#allocation6 + $0xe8] sm:$0xff]  }
  0xd5   : > { %6879 = vmatpush3.bf16.msra.mxu0 %v7857_v1  ;;  %6901 = vmatpush3.bf16.msra.mxu1 %v7860_v4 }
  0xd6   : > { %6880 = vmatprep.subr.bf16.mxu0 %v8350_v35  ;;  %6926 = vmatprep.subr.bf16.mxu1 %v8350_v35 }
  0xd9   : > { %6881 = vmatpush3.bf16.msra.mxu0 %v7859_v3 }
  0xda   : > { %6906 = vmatprep.subr.bf16.mxu0 %v8350_v35 }
 0x18b   : > { %v6500_v7 = vpop.f32.mrb[0].mxu1 }
 0x18c   : > { %v6501_v8 = vpop.f32.mrb[1].mxu1 }
 0x18d   : > { %v6502_v9 = vadd.f32 %v6501_v8, %v6500_v7  ;;  %v6503_v10 = vpop.f32.mrb[2].mxu1  ;;  %v7873_v7 = vld [vmem:[#allocation6 + $0xb0] sm:$0xff]  }
 0x18e   : > { %v6504_v11 = vpop.f32.mrb[3].mxu1  ;;  %v7874_v8 = vld [vmem:[#allocation6 + $0xf0] sm:$0xff]  }
 0x18f   : > { %v8635_v13 = vadd.f32 %v6502_v9, %v5736_v5  ;;  %v6505_v14 = vadd.f32 %v6504_v11, %v6503_v10  ;;  %v6478_v43 = vpop.f32.mrb[0].mxu0  ;;  %v488_v9 = vadd.s32 8, %v8633_v12  ;;  %v8159_v12 = vld [vmem:[%s10008_s7 + $0x450] sm:$0xff]  }
 0x190   : > { %v6479_v45 = vpop.f32.mrb[1].mxu0 }
 0x191   : > { %v8639_v16 = vmax.f32 %v8635_v13, 0.0  ;;  %v8641_v17 = vadd.f32 %v6505_v14, %v5736_v5  ;;  %v6480_v47 = vadd.f32 %v6479_v45, %v6478_v43  ;;  %v6481_v48 = vpop.f32.mrb[2].mxu0  ;;  %v500_v11 = vand.u32 15, %v488_v9  ;;  %v7875_v14 = vld [vmem:[#allocation6 + $0xb8] sm:$0xff]   ;;  %v7887_v43 = vld [vmem:[%s10008_s7 + $0x50] sm:$0xff]   ;;  %v7935_v9 = vld [vmem:[#allocation6 + $0x188] sm:$0xff]  }
 0x192   : > { %v6482_v49 = vpop.f32.mrb[3].mxu0  ;;  %v7892_v45 = vld [vmem:[%s10008_s7 + $0x78] sm:$0xff]  }
 0x193   : > { %v8644_v18 = vmax.f32 %v8641_v17, 0.0  ;;  %v922_v20 = vrot.slane %v8639_v16, 7  ;;  %v898_v23 = vrot.slane %v8639_v16, 6  ;;  %v1350_v28 = vrot.slane %v8639_v16, 2 }
 0x194   : > { %v8707_v50 = vadd.f32 %v6480_v47, %v5718_v42  ;;  %v6483_v51 = vadd.f32 %v6482_v49, %v6481_v48  ;;  %vm8759_vm10 = vcmp.lt.s32.totalorder %v500_v11, 15  ;;  %vm520_vm12 = vcmp.lt.s32.totalorder %v500_v11, 14  ;;  %v7894_v48 = vld [vmem:[%s10008_s7 + $0x8] sm:$0xff]   ;;  %v7895_v49 = vld [vmem:[%s10008_s7 + $0x10] sm:$0xff]  }
 0x195   : > { %v923_v21 = vrot.slane %v8644_v18, 7  ;;  %v899_v24 = vrot.slane %v8644_v18, 6  ;;  %v1351_v29 = vrot.slane %v8644_v18, 2  ;;  %v1235_v10 = vrot.slane %v8644_v18, 1  ;;  %vm8766_vm11 = vmpackc.low %vm8759_vm10, %vm8352_vm6  ;;  %v7937_v11 = vld [vmem:[#allocation6 + $0x190] sm:$0xff]  }
 0x196   : > { %v8710_v54 = vmax.f32 %v8707_v50, 0.0  ;;  %v8712_v55 = vadd.f32 %v6483_v51, %v5718_v42  ;;  %vm8794_vm13 = vmpackc.low %vm520_vm12, %vm8352_vm6  ;;  %v7886_v42 = vld [vmem:[%s10008_s7 + $0x48] sm:$0xff]   ;;  %v7896_v51 = vld [vmem:[%s10008_s7 + $0x18] sm:$0xff]  }
 0x197   : > { %v925_v30 = vsel %vm924_vm3, %v922_v20, %v923_v21  ;;  %v926_v31 = vsel %vm924_vm3, %v923_v21, %v922_v20  ;;  %v901_v32 = vsel %vm900_vm4, %v898_v23, %v899_v24  ;;  %v902_v33 = vsel %vm900_vm4, %v899_v24, %v898_v23  ;;  %v8046_v24 = vld [vmem:[%s10008_s7 + $0x340] sm:$0xff]  }
 0x198   : > { %v8679_v34 = vpack.c.bf16 %v925_v30, %v926_v31  ;;  %v5773_v36 = vpack.c.bf16 %v901_v32, %v902_v33  ;;  %v8683_v38 = vsel %vm1352_vm5, %v1350_v28, %v1351_v29  ;;  %v8687_v39 = vsel %vm1352_vm5, %v1351_v29, %v1350_v28  ;;  %v7878_v30 = vld [vmem:[#allocation6 + $0x108] sm:$0xff]   ;;  %v7881_v31 = vld [vmem:[#allocation6 + $0x120] sm:$0xff]   ;;  %v7883_v33 = vld [vmem:[#allocation6 + $0x130] sm:$0xff]  }
 0x199   : > { %v5803_v41 = vpack.c.bf16 %v8687_v39, %v8683_v38  ;;  %v8717_v56 = vmax.f32 %v8712_v55, 0.0  ;;  %v2748_v57 = vrot.slane %v8710_v54, 6  ;;  %v3183_v61 = vrot.slane %v8710_v54, 2  ;;  %v7882_v32 = vld [vmem:[#allocation6 + $0x128] sm:$0xff]   ;;  %v7888_v38 = vld [vmem:[%s10008_s7 + $0x58] sm:$0xff]   ;;  %v7889_v39 = vld [vmem:[%s10008_s7 + $0x60] sm:$0xff]  }
 0x19a   : > { %6883 = vmatmul.mubr.msk.bf16.vlgmr.msra.gmra.mrb[4].mxu0 %vm8658_vm7, %v8679_v34  ;;  %6903 = vmatmul.mubr.msk.bf16.vlgmr.msra.gmra.mrb[4].mxu1 %vm8665_vm8, %v5773_v36  ;;  %v1234_v20 = vrot.slane %v8639_v16, 1  ;;  %v8772_v28 = vpack.c.bf16 %v8644_v18, %v8639_v16  ;;  %v7879_v16 = vld [vmem:[#allocation6 + $0x110] sm:$0xff]   ;;  %v7880_v18 = vld [vmem:[#allocation6 + $0x118] sm:$0xff]  }
 0x19b   : > { %6907 = vmatpush3.bf16.msra.mxu0 %v7861_v25  ;;  %6927 = vmatpush3.bf16.msra.mxu1 %v7862_v26  ;;  %v2749_v60 = vrot.slane %v8717_v56, 6  ;;  %v3184_v62 = vrot.slane %v8717_v56, 2  ;;  %v7877_v26 = vld [vmem:[#allocation6 + $0x100] sm:$0xff]   ;;  %v7884_v36 = vld [vmem:[#allocation6 + $0x138] sm:$0xff]   ;;  %v8842_v47 = vpack.c.bf16 %v8717_v56, %v8710_v54 }
 0x19c   : > { %6908 = vmatprep.subr.bf16.mxu0 %v8350_v35  ;;  %6928 = vmatprep.subr.bf16.mxu1 %v8350_v35  ;;  %v1237_v21 = vsel %vm1236_vm9, %v1234_v20, %v1235_v10  ;;  %v1238_v23 = vsel %vm1236_vm9, %v1235_v10, %v1234_v20  ;;  %v7903_v10 = vld [vmem:[%s10008_s7 + $0x90] sm:$0xff]   ;;  %v7905_v20 = vld [vmem:[%s10008_s7 + $0xa0] sm:$0xff]  }
 0x19d   : > { %6922 = vmatprep.mubr.msk.bf16.mxu0 %vm8351_vm0, %v8350_v35  ;;  %6942 = vmatprep.mubr.msk.bf16.mxu1 %vm8351_vm0, %v8350_v35  ;;  %v8727_v0 = vsel %vm900_vm4, %v2748_v57, %v2749_v60  ;;  %v8731_v1 = vsel %vm900_vm4, %v2749_v60, %v2748_v57  ;;  %v8737_v4 = vsel %vm1352_vm5, %v3183_v61, %v3184_v62  ;;  %v7899_v57 = vld [vmem:[%s10008_s7 + $0x30] sm:$0xff]   ;;  %v7900_v60 = vld [vmem:[%s10008_s7 + $0x38] sm:$0xff]  }
 0x19e   : > { %v6023_v3 = vpack.c.bf16 %v8727_v0, %v8731_v1  ;;  %v8741_v5 = vsel %vm1352_vm5, %v3184_v62, %v3183_v61  ;;  %v8774_v29 = vpack.c.bf16 %v1238_v23, %v1237_v21  ;;  %v7941_v21 = vld [vmem:[#allocation6 + $0x1a0] sm:$0xff]   ;;  %v7906_v23 = vld [vmem:[%s10008_s7 + $0xa8] sm:$0xff]  }
 0x19f   : > { %6909 = vmatpush3.bf16.msra.mxu0 %v7863_v37  ;;  %6929 = vmatpush3.bf16.msra.mxu1 %v7864_v40  ;;  %v6053_v6 = vpack.c.bf16 %v8741_v5, %v8737_v4  ;;  %v7885_v40 = vld [vmem:[%s10008_s7 + $0x40] sm:$0xff]   ;;  %v7930_v1 = vld [vmem:[#allocation6 + $0x328] sm:$0xff]   ;;  %v7970_v5 = vld [vmem:[%s10008_s7 + $0x1d0] sm:$0xff]  }
 0x1a0   : > { %6910 = vmatprep.subr.bf16.mxu0 %v8350_v35  ;;  %6930 = vmatprep.subr.bf16.mxu1 %v8350_v35  ;;  %v7929_v0 = vld [vmem:[#allocation6 + $0x320] sm:$0xff]   ;;  %v7967_v4 = vld [vmem:[#allocation6 + $0x1c8] sm:$0xff]   ;;  %v8120_v37 = vld [vmem:[%s10008_s7 + $0x298] sm:$0xff]  }
 0x1a3   : > { %6911 = vmatpush3.bf16.msra.mxu0 %v7865_v44  ;;  %6931 = vmatpush3.bf16.msra.mxu1 %v7866_v46  ;;  %v7891_v44 = vld [vmem:[%s10008_s7 + $0x70] sm:$0xff]   ;;  %v7893_v46 = vld [vmem:[%s10008_s7] sm:$0xff]  }
 0x1a4   : > { %6912 = vmatprep.subr.bf16.mxu0 %v8350_v35  ;;  %6932 = vmatprep.subr.bf16.mxu1 %v8350_v35 }
 0x1a7   : > { %6913 = vmatpush3.bf16.msra.mxu0 %v7867_v52  ;;  %6933 = vmatpush3.bf16.msra.mxu1 %v7868_v53  ;;  %v7897_v52 = vld [vmem:[%s10008_s7 + $0x20] sm:$0xff]   ;;  %v7898_v53 = vld [vmem:[%s10008_s7 + $0x28] sm:$0xff]  }
 0x1a8   : > { %6914 = vmatprep.subr.bf16.mxu0 %v8350_v35  ;;  %6934 = vmatprep.subr.bf16.mxu1 %v8350_v35 }
 0x1ab   : > { %6915 = vmatpush3.bf16.msra.mxu0 %v7869_v58  ;;  %6935 = vmatpush3.bf16.msra.mxu1 %v7870_v59  ;;  %v2054_v58 = vrot.slane %v8710_v54, 7  ;;  %v2055_v59 = vrot.slane %v8717_v56, 7 }
 0x1ac   : > { %6916 = vmatprep.subr.bf16.mxu0 %v8350_v35  ;;  %6936 = vmatprep.subr.bf16.mxu1 %v8350_v35 }
 0x1ad   : > { %v2056_v61 = vsel %vm924_vm3, %v2054_v58, %v2055_v59  ;;  %v2057_v62 = vsel %vm924_vm3, %v2055_v59, %v2054_v58 }
 0x1af   : > { %6917 = vmatpush3.bf16.msra.mxu0 %v7871_v63  ;;  %6937 = vmatpush3.bf16.msra.mxu1 %v7872_v2  ;;  %v7901_v63 = vld [vmem:[%s10008_s7 + $0x80] sm:$0xff]   ;;  %v8885_v2 = vpack.c.bf16 %v2056_v61, %v2057_v62 }
 0x1b0   : > { %6918 = vmatprep.subr.bf16.mxu0 %v8350_v35  ;;  %6938 = vmatprep.subr.bf16.mxu1 %v8350_v35 }
 0x1b3   : > { %6919 = vmatpush3.bf16.msra.mxu0 %v7873_v7  ;;  %6939 = vmatpush3.bf16.msra.mxu1 %v7874_v8  ;;  %v7933_v7 = vld [vmem:[#allocation6 + $0x180] sm:$0xff]   ;;  %v7902_v8 = vld [vmem:[%s10008_s7 + $0x88] sm:$0xff]  }
 0x1b4   : > { %6920 = vmatprep.subr.bf16.mxu0 %v8350_v35  ;;  %6940 = vmatprep.subr.bf16.mxu1 %v8350_v35 }
 0x1b7   : > { %6921 = vmatpush3.bf16.msra.mxu0 %v7875_v14  ;;  %6941 = vmatpush3.bf16.msra.mxu1 %v7876_v15  ;;  %v7904_v14 = vld [vmem:[%s10008_s7 + $0x98] sm:$0xff]  }
 0x1b8   : > { %6946 = vmatprep.subr.bf16.mxu0 %v8350_v35  ;;  %6966 = vmatprep.subr.bf16.mxu1 %v8350_v35  ;;  %v7939_v15 = vld [vmem:[#allocation6 + $0x198] sm:$0xff]  }
 0x1ba   : > { %6923 = vmatmul.mubr.bf16.vlgmr.msra.gmra.mrb[8].mxu0 %v8772_v28  ;;  %6943 = vmatmul.mubr.msk.bf16.vlgmr.msra.gmra.mrb[8].mxu1 %vm8766_vm11, %v8774_v29 }
 0x1bb   : > { %6947 = vmatpush3.bf16.msra.mxu0 %v7877_v26  ;;  %6962 = vmatprep.mubr.msk.bf16.mxu0 %vm8351_vm0, %v8350_v35  ;;  %v7943_v26 = vld [vmem:[#allocation6 + $0x1a8] sm:$0xff]  }
 0x1bc   : > { %6948 = vmatprep.subr.bf16.mxu0 %v8350_v35  ;;  %6982 = vmatprep.mubr.msk.bf16.mxu1 %vm8351_vm0, %v8350_v35 }
 0x1bd   : > { %6967 = vmatpush3.bf16.msra.mxu1 %v7933_v7  ;;  %v7923_v7 = vld [vmem:[#allocation6 + $0x2b0] sm:$0xff]  }
 0x1be   : > { %6968 = vmatprep.subr.bf16.mxu1 %v8350_v35 }
 0x1bf   : > { %6949 = vmatpush3.bf16.msra.mxu0 %v7878_v30  ;;  %v7907_v30 = vld [vmem:[%s10008_s7 + $0xb0] sm:$0xff]  }
 0x1c0   : > { %6950 = vmatprep.subr.bf16.mxu0 %v8350_v35 }
 0x1c1   : > { %6969 = vmatpush3.bf16.msra.mxu1 %v7935_v9 }
 0x1c2   : > { %6970 = vmatprep.subr.bf16.mxu1 %v8350_v35 }
 0x1c3   : > { %6951 = vmatpush3.bf16.msra.mxu0 %v7879_v16  ;;  %v2273_v16 = vrot.slane %v8710_v54, 1  ;;  %v7947_v54 = vld [vmem:[#allocation6 + $0x1b8] sm:$0xff]  }
 0x1c4   : > { %6952 = vmatprep.subr.bf16.mxu0 %v8350_v35 }
 0x1c5   : > { %6971 = vmatpush3.bf16.msra.mxu1 %v7937_v11  ;;  %v7924_v11 = vld [vmem:[#allocation6 + $0x2b8] sm:$0xff]  }
 0x1c6   : > { %6972 = vmatprep.subr.bf16.mxu1 %v8350_v35 }
 0x1c7   : > { %6953 = vmatpush3.bf16.msra.mxu0 %v7880_v18  ;;  %v2274_v18 = vrot.slane %v8717_v56, 1  ;;  %v7909_v56 = vld [vmem:[#allocation6 + $0x2c0] sm:$0xff]  }
 0x1c8   : > { %6954 = vmatprep.subr.bf16.mxu0 %v8350_v35 }
 0x1c9   : > { %6973 = vmatpush3.bf16.msra.mxu1 %v7939_v15  ;;  %v7926_v15 = vld [vmem:[#allocation6 + $0x308] sm:$0xff]  }
 0x1ca   : > { %6974 = vmatprep.subr.bf16.mxu1 %v8350_v35 }
 0x1cb   : > { %6955 = vmatpush3.bf16.msra.mxu0 %v7881_v31  ;;  %v7945_v31 = vld [vmem:[#allocation6 + $0x1b0] sm:$0xff]  }
 0x1cc   : > { %6956 = vmatprep.subr.bf16.mxu0 %v8350_v35 }
 0x1cd   : > { %6975 = vmatpush3.bf16.msra.mxu1 %v7941_v21  ;;  %v7928_v21 = vld [vmem:[#allocation6 + $0x318] sm:$0xff]  }
 0x1ce   : > { %6976 = vmatprep.subr.bf16.mxu1 %v8350_v35 }
 0x1cf   : > { %6957 = vmatpush3.bf16.msra.mxu0 %v7882_v32  ;;  %v7908_v32 = vld [vmem:[%s10008_s7 + $0xb8] sm:$0xff]  }
 0x1d0   : > { %6958 = vmatprep.subr.bf16.mxu0 %v8350_v35 }
 0x1d1   : > { %6977 = vmatpush3.bf16.msra.mxu1 %v7943_v26 }
 0x1d2   : > { %6978 = vmatprep.subr.bf16.mxu1 %v8350_v35 }
 0x1d3   : > { %6959 = vmatpush3.bf16.msra.mxu0 %v7883_v33  ;;  %v2275_v33 = vsel %vm1236_vm9, %v2273_v16, %v2274_v18 }
 0x1d4   : > { %6960 = vmatprep.subr.bf16.mxu0 %v8350_v35 }
 0x1d5   : > { %6979 = vmatpush3.bf16.msra.mxu1 %v7945_v31 }
 0x1d6   : > { %6980 = vmatprep.subr.bf16.mxu1 %v8350_v35 }
 0x1d7   : > { %6961 = vmatpush3.bf16.msra.mxu0 %v7884_v36  ;;  %v2276_v36 = vsel %vm1236_vm9, %v2274_v18, %v2273_v16 }
 0x1d8   : > { %7066 = vmatprep.subr.bf16.mxu0 %v8350_v35 }
 0x1d9   : > { %6981 = vmatpush3.bf16.msra.mxu1 %v7947_v54 }
 0x1da   : > { %6963 = vmatmul.mubr.msk.bf16.vlgmr.msra.gmra.mrb[12].mxu0 %vm8794_vm13, %v5803_v41  ;;  %v7890_v41 = vld [vmem:[%s10008_s7 + $0x68] sm:$0xff]   ;;  %6986 = vmatprep.subr.bf16.mxu1 %v8350_v35 }
 0x1db   : > { %7067 = vmatpush3.bf16.msra.mxu0 %v7885_v40  ;;  %7082 = vmatprep.mubr.msk.bf16.mxu0 %vm8351_vm0, %v8350_v35  ;;  %v8934_v40 = vpack.c.bf16 %v2276_v36, %v2275_v33 }
 0x1dc   : > { %7068 = vmatprep.subr.bf16.mxu0 %v8350_v35 }
 0x1df   : > { %7069 = vmatpush3.bf16.msra.mxu0 %v7886_v42  ;;  %v7910_v42 = vld [vmem:[#allocation6 + $0x2c8] sm:$0xff]  }
 0x1e0   : > { %7070 = vmatprep.subr.bf16.mxu0 %v8350_v35 }
 0x1e3   : > { %7071 = vmatpush3.bf16.msra.mxu0 %v7887_v43  ;;  %v7911_v43 = vld [vmem:[#allocation6 + $0x2d0] sm:$0xff]  }
 0x1e4   : > { %7072 = vmatprep.subr.bf16.mxu0 %v8350_v35 }
 0x1e7   : > { %7073 = vmatpush3.bf16.msra.mxu0 %v7888_v38  ;;  %v7912_v38 = vld [vmem:[#allocation6 + $0x2d8] sm:$0xff]  }
 0x1e8   : > { %7074 = vmatprep.subr.bf16.mxu0 %v8350_v35 }
 0x1eb   : > { %7075 = vmatpush3.bf16.msra.mxu0 %v7889_v39  ;;  %v7913_v39 = vld [vmem:[#allocation6 + $0x2e0] sm:$0xff]  }
 0x1ec   : > { %7076 = vmatprep.subr.bf16.mxu0 %v8350_v35 }
 0x1ef   : > { %7077 = vmatpush3.bf16.msra.mxu0 %v7890_v41  ;;  %v7914_v41 = vld [vmem:[#allocation6 + $0x2e8] sm:$0xff]  }
 0x1f0   : > { %7078 = vmatprep.subr.bf16.mxu0 %v8350_v35 }
 0x1f3   : > { %7079 = vmatpush3.bf16.msra.mxu0 %v7891_v44  ;;  %v7915_v44 = vld [vmem:[#allocation6 + $0x2f0] sm:$0xff]  }
 0x1f4   : > { %7080 = vmatprep.subr.bf16.mxu0 %v8350_v35 }
 0x1f7   : > { %7081 = vmatpush3.bf16.msra.mxu0 %v7892_v45  ;;  %v7916_v45 = vld [vmem:[#allocation6 + $0x2f8] sm:$0xff]  }
 0x1f8   : > { %7086 = vmatprep.subr.bf16.mxu0 %v8350_v35 }
 0x1fa   : > { %7083 = vmatmul.mubr.bf16.vlgmr.msra.gmra.mrb[16].mxu0 %v8842_v47 }
 0x1fb   : > { %7087 = vmatpush3.bf16.msra.mxu0 %v7893_v46  ;;  %7102 = vmatprep.mubr.msk.bf16.mxu0 %vm8351_vm0, %v8350_v35  ;;  %v7917_v46 = vld [vmem:[#allocation6 + $0x280] sm:$0xff]  }
 0x1fc   : > { %7088 = vmatprep.subr.bf16.mxu0 %v8350_v35 }
 0x1ff   : > { %7089 = vmatpush3.bf16.msra.mxu0 %v7894_v48  ;;  %v7918_v48 = vld [vmem:[#allocation6 + $0x288] sm:$0xff]  }
 0x200   : > { %7090 = vmatprep.subr.bf16.mxu0 %v8350_v35 }
 0x203   : > { %7091 = vmatpush3.bf16.msra.mxu0 %v7895_v49  ;;  %v7919_v49 = vld [vmem:[#allocation6 + $0x290] sm:$0xff]  }
 0x204   : > { %7092 = vmatprep.subr.bf16.mxu0 %v8350_v35 }
 0x207   : > { %7093 = vmatpush3.bf16.msra.mxu0 %v7896_v51  ;;  %v7920_v51 = vld [vmem:[#allocation6 + $0x298] sm:$0xff]  }
 0x208   : > { %7094 = vmatprep.subr.bf16.mxu0 %v8350_v35 }
 0x20b   : > { %7095 = vmatpush3.bf16.msra.mxu0 %v7897_v52  ;;  %v7921_v52 = vld [vmem:[#allocation6 + $0x2a0] sm:$0xff]  }
 0x20c   : > { %7096 = vmatprep.subr.bf16.mxu0 %v8350_v35 }
 0x20f   : > { %7097 = vmatpush3.bf16.msra.mxu0 %v7898_v53  ;;  %v7922_v53 = vld [vmem:[#allocation6 + $0x2a8] sm:$0xff]  }
 0x210   : > { %7098 = vmatprep.subr.bf16.mxu0 %v8350_v35 }
 0x213   : > { %7099 = vmatpush3.bf16.msra.mxu0 %v7899_v57 }
 0x214   : > { %7100 = vmatprep.subr.bf16.mxu0 %v8350_v35 }
 0x217   : > { %7101 = vmatpush3.bf16.msra.mxu0 %v7900_v60 }
 0x218   : > { %7106 = vmatprep.subr.bf16.mxu0 %v8350_v35 }
 0x21a   : > { %7103 = vmatmul.mubr.msk.bf16.vlgmr.msra.gmra.mrb[20].mxu0 %vm8658_vm7, %v8885_v2 }
 0x21b   : > { %7107 = vmatpush3.bf16.msra.mxu0 %v7901_v63  ;;  %7122 = vmatprep.mubr.msk.bf16.mxu0 %vm8351_vm0, %v8350_v35 }
 0x21c   : > { %7108 = vmatprep.subr.bf16.mxu0 %v8350_v35 }
 0x21f   : > { %7109 = vmatpush3.bf16.msra.mxu0 %v7902_v8 }
 0x220   : > { %7110 = vmatprep.subr.bf16.mxu0 %v8350_v35 }
 0x223   : > { %7111 = vmatpush3.bf16.msra.mxu0 %v7903_v10 }
 0x224   : > { %7112 = vmatprep.subr.bf16.mxu0 %v8350_v35 }
 0x227   : > { %7113 = vmatpush3.bf16.msra.mxu0 %v7904_v14  ;;  %v7925_v14 = vld [vmem:[#allocation6 + $0x300] sm:$0xff]  }
 0x228   : > { %7114 = vmatprep.subr.bf16.mxu0 %v8350_v35 }
 0x22b   : > { %7115 = vmatpush3.bf16.msra.mxu0 %v7905_v20  ;;  %v7927_v20 = vld [vmem:[#allocation6 + $0x310] sm:$0xff]  }
 0x22c   : > { %7116 = vmatprep.subr.bf16.mxu0 %v8350_v35 }
 0x22f   : > { %7117 = vmatpush3.bf16.msra.mxu0 %v7906_v23 }
 0x230   : > { %7118 = vmatprep.subr.bf16.mxu0 %v8350_v35 }
 0x233   : > { %7119 = vmatpush3.bf16.msra.mxu0 %v7907_v30 }
 0x234   : > { %7120 = vmatprep.subr.bf16.mxu0 %v8350_v35 }
 0x237   : > { %7121 = vmatpush3.bf16.msra.mxu0 %v7908_v32  ;;  %v7931_v32 = vld [vmem:[#allocation6 + $0x330] sm:$0xff]  }
 0x238   : > { %7186 = vmatprep.subr.bf16.mxu0 %v8350_v35 }
 0x23a   : > { %7123 = vmatmul.mubr.msk.bf16.vlgmr.msra.gmra.mrb[24].mxu0 %vm8766_vm11, %v8934_v40 }
 0x23b   : > { %7187 = vmatpush3.bf16.msra.mxu0 %v7909_v56  ;;  %7202 = vmatprep.mubr.msk.bf16.mxu0 %vm8351_vm0, %v8350_v35 }
 0x23c   : > { %7188 = vmatprep.subr.bf16.mxu0 %v8350_v35 }
 0x23f   : > { %7189 = vmatpush3.bf16.msra.mxu0 %v7910_v42 }
 0x240   : > { %7190 = vmatprep.subr.bf16.mxu0 %v8350_v35 }
 0x243   : > { %7191 = vmatpush3.bf16.msra.mxu0 %v7911_v43  ;;  %v7932_v43 = vld [vmem:[#allocation6 + $0x338] sm:$0xff]  }
 0x244   : > { %7192 = vmatprep.subr.bf16.mxu0 %v8350_v35 }
 0x247   : > { %7193 = vmatpush3.bf16.msra.mxu0 %v7912_v38  ;;  %v7934_v38 = vld [vmem:[#allocation6 + $0x340] sm:$0xff]  }
 0x248   : > { %7194 = vmatprep.subr.bf16.mxu0 %v8350_v35 }
 0x24b   : > { %7195 = vmatpush3.bf16.msra.mxu0 %v7913_v39  ;;  %v7936_v39 = vld [vmem:[#allocation6 + $0x348] sm:$0xff]  }
 0x24c   : > { %7196 = vmatprep.subr.bf16.mxu0 %v8350_v35 }
 0x24f   : > { %7197 = vmatpush3.bf16.msra.mxu0 %v7914_v41  ;;  %v7938_v41 = vld [vmem:[#allocation6 + $0x350] sm:$0xff]  }
 0x250   : > { %7198 = vmatprep.subr.bf16.mxu0 %v8350_v35 }
 0x253   : > { %7199 = vmatpush3.bf16.msra.mxu0 %v7915_v44  ;;  %v7940_v44 = vld [vmem:[#allocation6 + $0x358] sm:$0xff]  }
 0x254   : > { %7200 = vmatprep.subr.bf16.mxu0 %v8350_v35 }
 0x257   : > { %7201 = vmatpush3.bf16.msra.mxu0 %v7916_v45  ;;  %v7942_v45 = vld [vmem:[#allocation6 + $0x360] sm:$0xff]  }
 0x258   : > { %7206 = vmatprep.subr.bf16.mxu0 %v8350_v35 }
 0x25a   : > { %7203 = vmatmul.mubr.msk.bf16.vlgmr.msra.gmra.mrb[28].mxu0 %vm8658_vm7, %v8885_v2 }
 0x25b   : > { %7207 = vmatpush3.bf16.msra.mxu0 %v7917_v46  ;;  %7222 = vmatprep.mubr.msk.bf16.mxu0 %vm8351_vm0, %v8350_v35  ;;  %v7944_v46 = vld [vmem:[#allocation6 + $0x368] sm:$0xff]  }
 0x25c   : > { %7208 = vmatprep.subr.bf16.mxu0 %v8350_v35 }
 0x25f   : > { %7209 = vmatpush3.bf16.msra.mxu0 %v7918_v48 }
 0x260   : > { %7210 = vmatprep.subr.bf16.mxu0 %v8350_v35 }
 0x263   : > { %7211 = vmatpush3.bf16.msra.mxu0 %v7919_v49  ;;  %v5805_v49 = vld [vmem:[%s10007_s6] ss:$0 sm:$0xff] }
 0x264   : > { %7212 = vmatprep.subr.bf16.mxu0 %v8350_v35 }
 0x267   : > { %7213 = vmatpush3.bf16.msra.mxu0 %v7920_v51 }
 0x268   : > { %7214 = vmatprep.subr.bf16.mxu0 %v8350_v35 }
 0x26b   : > { %7215 = vmatpush3.bf16.msra.mxu0 %v7921_v52 }
 0x26c   : > { %7216 = vmatprep.subr.bf16.mxu0 %v8350_v35 }
 0x26d   : > { %v1029_v57 = vpop.f32.mrb[4].mxu0  ;;  %v1118_v58 = vpop.f32.mrb[4].mxu1 }
 0x26e   : > { %v1119_v59 = vadd.f32 %v1118_v58, %v1029_v57  ;;  %v6884_v60 = vpop.f32.mrb[5].mxu0  ;;  %v6904_v61 = vpop.f32.mrb[5].mxu1  ;;  %v7946_v57 = vld [vmem:[#allocation6 + $0x370] sm:$0xff]  }
 0x26f   : > { %7217 = vmatpush3.bf16.msra.mxu0 %v7922_v53  ;;  %v1032_v62 = vpop.f32.mrb[6].mxu0  ;;  %v1121_v63 = vpop.f32.mrb[6].mxu1 }
 0x270   : > { %v1122_v8 = vadd.f32 %v1121_v63, %v1032_v62  ;;  %v6885_v9 = vpop.f32.mrb[7].mxu0  ;;  %v6905_v10 = vpop.f32.mrb[7].mxu1  ;;  %7218 = vmatprep.subr.bf16.mxu0 %v8350_v35  ;;  %v7948_v63 = vld [vmem:[#allocation6 + $0x378] sm:$0xff]  }
 0x273   : > { %7219 = vmatpush3.bf16.msra.mxu0 %v7923_v7 }
 0x274   : > { %7220 = vmatprep.subr.bf16.mxu0 %v8350_v35 }
 0x277   : > { %7221 = vmatpush3.bf16.msra.mxu0 %v7924_v11 }
 0x278   : > { %7226 = vmatprep.subr.bf16.mxu0 %v8350_v35 }
 0x27a   : > { %7223 = vmatmul.mubr.msk.bf16.vlgmr.msra.gmra.mrb[32].mxu0 %vm8665_vm8, %v6023_v3 }
 0x27b   : > { %7227 = vmatpush3.bf16.msra.mxu0 %v7925_v14  ;;  %7242 = vmatprep.mubr.msk.bf16.mxu0 %vm8351_vm0, %v8350_v35 }
 0x27c   : > { %7228 = vmatprep.subr.bf16.mxu0 %v8350_v35 }
 0x27f   : > { %7229 = vmatpush3.bf16.msra.mxu0 %v7926_v15 }
 0x280   : > { %7230 = vmatprep.subr.bf16.mxu0 %v8350_v35 }
 0x283   : > { %7231 = vmatpush3.bf16.msra.mxu0 %v7927_v20  ;;  %v7950_v20 = vld [vmem:[#allocation6 + $0x380] sm:$0xff]  }
 0x284   : > { %7232 = vmatprep.subr.bf16.mxu0 %v8350_v35 }
 0x287   : > { %7233 = vmatpush3.bf16.msra.mxu0 %v7928_v21 }
 0x288   : > { %7234 = vmatprep.subr.bf16.mxu0 %v8350_v35 }
 0x28b   : > { %7235 = vmatpush3.bf16.msra.mxu0 %v7929_v0 }
 0x28c   : > { %7236 = vmatprep.subr.bf16.mxu0 %v8350_v35 }
 0x28d   : > { %v1225_v3 = vpop.f32.mrb[8].mxu0  ;;  %v1341_v23 = vpop.f32.mrb[8].mxu1 }
 0x28e   : > { %v1232_v26 = vadd.f32 %v1225_v3, %v1119_v59  ;;  %v6924_v30 = vpop.f32.mrb[9].mxu0  ;;  %v6944_v16 = vpop.f32.mrb[9].mxu1 }
 0x28f   : > { %v1228_v18 = vpop.f32.mrb[10].mxu0  ;;  %v1344_v31 = vpop.f32.mrb[10].mxu1  ;;  %7237 = vmatpush3.bf16.msra.mxu0 %v7930_v1 }
 0x290   : > { %v1348_v33 = vadd.f32 %v1341_v23, %v1232_v26  ;;  %v1233_v36 = vadd.f32 %v1228_v18, %v1122_v8  ;;  %v6925_v54 = vpop.f32.mrb[11].mxu0  ;;  %v6945_v56 = vpop.f32.mrb[11].mxu1  ;;  %7238 = vmatprep.subr.bf16.mxu0 %v8350_v35  ;;  %v7949_v26 = vld [vmem:[#allocation6 + $0x140] sm:$0xff]  }
 0x292   : > { %v1349_v42 = vadd.f32 %v1344_v31, %v1233_v36  ;;  %v7952_v36 = vld [vmem:[#allocation6 + $0x388] sm:$0xff]  }
 0x293   : > { %7239 = vmatpush3.bf16.msra.mxu0 %v7931_v32 }
 0x294   : > { %7240 = vmatprep.subr.bf16.mxu0 %v8350_v35 }
 0x297   : > { %7241 = vmatpush3.bf16.msra.mxu0 %v7932_v43 }
 0x298   : > { %7246 = vmatprep.subr.bf16.mxu0 %v8350_v35 }
 0x29a   : > { %7243 = vmatmul.mubr.bf16.vlgmr.msra.gmra.mrb[36].mxu0 %v8842_v47 }
 0x29b   : > { %7247 = vmatpush3.bf16.msra.mxu0 %v7934_v38  ;;  %7262 = vmatprep.mubr.msk.bf16.mxu0 %vm8351_vm0, %v8350_v35  ;;  %v7951_v38 = vld [vmem:[#allocation6 + $0x148] sm:$0xff]  }
 0x29c   : > { %7248 = vmatprep.subr.bf16.mxu0 %v8350_v35 }
 0x29f   : > { %7249 = vmatpush3.bf16.msra.mxu0 %v7936_v39  ;;  %v7954_v39 = vld [vmem:[#allocation6 + $0x390] sm:$0xff]  }
 0x2a0   : > { %7250 = vmatprep.subr.bf16.mxu0 %v8350_v35 }
 0x2a3   : > { %7251 = vmatpush3.bf16.msra.mxu0 %v7938_v41  ;;  %v7953_v41 = vld [vmem:[#allocation6 + $0x150] sm:$0xff]  }
 0x2a4   : > { %7252 = vmatprep.subr.bf16.mxu0 %v8350_v35 }
 0x2a7   : > { %7253 = vmatpush3.bf16.msra.mxu0 %v7940_v44  ;;  %v7956_v44 = vld [vmem:[#allocation6 + $0x398] sm:$0xff]  }
 0x2a8   : > { %7254 = vmatprep.subr.bf16.mxu0 %v8350_v35 }
 0x2ab   : > { %7255 = vmatpush3.bf16.msra.mxu0 %v7942_v45  ;;  %v7955_v45 = vld [vmem:[#allocation6 + $0x158] sm:$0xff]  }
 0x2ac   : > { %7256 = vmatprep.subr.bf16.mxu0 %v8350_v35 }
 0x2ad   : > { %v1457_v48 = vpop.f32.mrb[12].mxu0 }
 0x2ae   : > { %v1464_v51 = vadd.f32 %v1457_v48, %v1348_v33  ;;  %v6964_v52 = vpop.f32.mrb[13].mxu0  ;;  %v7957_v48 = vld [vmem:[#allocation6 + $0x160] sm:$0xff]  }
 0x2af   : > { %v1460_v53 = vpop.f32.mrb[14].mxu0  ;;  %7257 = vmatpush3.bf16.msra.mxu0 %v7944_v46  ;;  %v7958_v46 = vld [vmem:[#allocation6 + $0x3a0] sm:$0xff]   ;;  %v7959_v52 = vld [vmem:[#allocation6 + $0x168] sm:$0xff]  }
 0x2b0   : > { %v1473_v58 = vadd.f32 %v5805_v49, %v1464_v51  ;;  %v1465_v59 = vadd.f32 %v1460_v53, %v1349_v42  ;;  %v6965_v60 = vpop.f32.mrb[15].mxu0  ;;  %7258 = vmatprep.subr.bf16.mxu0 %v8350_v35 }
 0x2b1   : > { %v7961_v60 = vld [vmem:[#allocation6 + $0x170] sm:$0xff]  }
 0x2b2   : > { %v8991_v61 = vmax.f32 %v1473_v58, 0.0  ;;  %v1474_v62 = vadd.f32 %v5805_v49, %v1465_v59  ;;  %v7960_v49 = vld [vmem:[#allocation6 + $0x3a8] sm:$0xff]   ;;  %v7962_v58 = vld [vmem:[#allocation6 + $0x3b0] sm:$0xff]  }
 0x2b3   : > { %7259 = vmatpush3.bf16.msra.mxu0 %v7946_v57 }
 0x2b4   : > { %7260 = vmatprep.subr.bf16.mxu0 %v8350_v35  ;;  %v8994_v7 = vmax.f32 %v1474_v62, 0.0  ;;  %v1477_v8 = vrot.slane %v8991_v61, 6  ;;  %v1501_v9 = vrot.slane %v8991_v61, 7  ;;  %v1812_v21 = vrot.slane %v8991_v61, 1  ;;  %v7964_v62 = vld [vmem:[#allocation6 + $0x3b8] sm:$0xff]  }
 0x2b5   : > { %v1927_v0 = vrot.slane %v8991_v61, 2 }
 0x2b6   : > { %v1478_v10 = vrot.slane %v8994_v7, 6  ;;  %v1502_v11 = vrot.slane %v8994_v7, 7  ;;  %v1813_v14 = vrot.slane %v8994_v7, 1  ;;  %v1928_v15 = vrot.slane %v8994_v7, 2 }
 0x2b7   : > { %7261 = vmatpush3.bf16.msra.mxu0 %v7948_v63  ;;  %v1703_v1 = vpack.c.bf16 %v8994_v7, %v8991_v61  ;;  %v7963_v63 = vld [vmem:[#allocation6 + $0x178] sm:$0xff]  }
 0x2b8   : > { %7266 = vmatprep.subr.bf16.mxu0 %v8350_v35  ;;  %v1503_v3 = vsel %vm924_vm3, %v1501_v9, %v1502_v11  ;;  %v1504_v23 = vsel %vm924_vm3, %v1502_v11, %v1501_v9  ;;  %v9013_v30 = vsel %vm900_vm4, %v1477_v8, %v1478_v10  ;;  %v9017_v16 = vsel %vm900_vm4, %v1478_v10, %v1477_v8  ;;  %v7966_v8 = vld [vmem:[%s10008_s7 + $0x1c0] sm:$0xff]   ;;  %v7968_v10 = vld [vmem:[%s10008_s7 + $0x1c8] sm:$0xff]   ;;  %v7972_v11 = vld [vmem:[%s10008_s7 + $0x1d8] sm:$0xff]  }
 0x2b9   : > { %v5815_v18 = vpack.c.bf16 %v1503_v3, %v1504_v23  ;;  %v5826_v31 = vpack.c.bf16 %v9013_v30, %v9017_v16  ;;  %v9026_v32 = vsel %vm1236_vm9, %v1812_v21, %v1813_v14  ;;  %v9030_v33 = vsel %vm1236_vm9, %v1813_v14, %v1812_v21  ;;  %v7965_v9 = vld [vmem:[#allocation6 + $0x1c0] sm:$0xff]   ;;  %v7971_v14 = vld [vmem:[#allocation6 + $0x1d8] sm:$0xff]   ;;  %v7976_v21 = vld [vmem:[%s10008_s7 + $0x1e8] sm:$0xff]  }
 0x2ba   : > { %7263 = vmatmul.mubr.msk.bf16.vlgmr.msra.gmra.mrb[40].mxu0 %vm8766_vm11, %v8934_v40  ;;  %v5845_v54 = vpack.c.bf16 %v9030_v33, %v9026_v32  ;;  %v9038_v56 = vsel %vm1352_vm5, %v1927_v0, %v1928_v15  ;;  %v9042_v42 = vsel %vm1352_vm5, %v1928_v15, %v1927_v0  ;;  %v7974_v15 = vld [vmem:[%s10008_s7 + $0x1e0] sm:$0xff]   ;;  %v7975_v3 = vld [vmem:[#allocation6 + $0x1e8] sm:$0xff]   ;;  %v7978_v16 = vld [vmem:[%s10008_s7 + $0x1f0] sm:$0xff]  }
 0x2bb   : > { %7267 = vmatpush3.bf16.msra.mxu0 %v7950_v20  ;;  %7282 = vmatprep.mubr.msk.bf16.mxu0 %vm8351_vm0, %v8350_v35  ;;  %v5856_v43 = vpack.c.bf16 %v9042_v42, %v9038_v56  ;;  %v7973_v20 = vld [vmem:[#allocation6 + $0x1e0] sm:$0xff]   ;;  %v7988_v61 = vld [vmem:[%s10008_s7 + $0x198] sm:$0xff]   ;;  %v8001_v32 = vld [vmem:[#allocation6 + $0x250] sm:$0xff]  }
 0x2bc   : > { %6983 = vmatmul.mubr.msk.bf16.vlgmr.msra.gmra.mrb[12].mxu1 %vm8658_vm7, %v5815_v18  ;;  %7268 = vmatprep.subr.bf16.mxu0 %v8350_v35  ;;  %v7987_v7 = vld [vmem:[#allocation6 + $0x218] sm:$0xff]   ;;  %v8017_v56 = vld [vmem:[%s10008_s7 + $0x110] sm:$0xff]  }
 0x2bd   : > { %6987 = vmatpush3.bf16.msra.mxu1 %v7949_v26  ;;  %7002 = vmatprep.mubr.msk.bf16.mxu1 %vm8351_vm0, %v8350_v35  ;;  %v8004_v33 = vld [vmem:[%s10008_s7 + $0x218] sm:$0xff]  }
 0x2be   : > { %6988 = vmatprep.subr.bf16.mxu1 %v8350_v35  ;;  %v8020_v42 = vld [vmem:[#allocation7 + $0x18] sm:$0xff]  }
 0x2bf   : > { %7269 = vmatpush3.bf16.msra.mxu0 %v7952_v36  ;;  %v7977_v36 = vld [vmem:[#allocation6 + $0x1f0] sm:$0xff]  }
 0x2c0   : > { %7270 = vmatprep.subr.bf16.mxu0 %v8350_v35 }
 0x2c1   : > { %6989 = vmatpush3.bf16.msra.mxu1 %v7951_v38  ;;  %v7980_v38 = vld [vmem:[%s10008_s7 + $0x1f8] sm:$0xff]  }
 0x2c2   : > { %6990 = vmatprep.subr.bf16.mxu1 %v8350_v35 }
 0x2c3   : > { %7271 = vmatpush3.bf16.msra.mxu0 %v7954_v39  ;;  %v7979_v39 = vld [vmem:[#allocation6 + $0x1f8] sm:$0xff]  }
 0x2c4   : > { %7272 = vmatprep.subr.bf16.mxu0 %v8350_v35 }
 0x2c5   : > { %6991 = vmatpush3.bf16.msra.mxu1 %v7953_v41  ;;  %v7982_v41 = vld [vmem:[%s10008_s7 + $0x180] sm:$0xff]  }
 0x2c6   : > { %6992 = vmatprep.subr.bf16.mxu1 %v8350_v35 }
 0x2c7   : > { %7273 = vmatpush3.bf16.msra.mxu0 %v7956_v44  ;;  %v7981_v44 = vld [vmem:[#allocation6 + $0x200] sm:$0xff]  }
 0x2c8   : > { %7274 = vmatprep.subr.bf16.mxu0 %v8350_v35 }
 0x2c9   : > { %6993 = vmatpush3.bf16.msra.mxu1 %v7955_v45  ;;  %v7984_v45 = vld [vmem:[%s10008_s7 + $0x188] sm:$0xff]  }
 0x2ca   : > { %6994 = vmatprep.subr.bf16.mxu1 %v8350_v35 }
 0x2cb   : > { %7275 = vmatpush3.bf16.msra.mxu0 %v7958_v46  ;;  %v7983_v46 = vld [vmem:[#allocation6 + $0x208] sm:$0xff]  }
 0x2cc   : > { %7276 = vmatprep.subr.bf16.mxu0 %v8350_v35 }
 0x2cd   : > { %6995 = vmatpush3.bf16.msra.mxu1 %v7957_v48  ;;  %v2177_v51 = vpop.f32.mrb[16].mxu0  ;;  %v7985_v48 = vld [vmem:[#allocation6 + $0x210] sm:$0xff]  }
 0x2ce   : > { %6996 = vmatprep.subr.bf16.mxu1 %v8350_v35  ;;  %v7084_v53 = vpop.f32.mrb[17].mxu0 }
 0x2cf   : > { %v2180_v57 = vpop.f32.mrb[18].mxu0  ;;  %7277 = vmatpush3.bf16.msra.mxu0 %v7960_v49  ;;  %v7989_v49 = vld [vmem:[#allocation6 + $0x220] sm:$0xff]  }
 0x2d0   : > { %v7085_v59 = vpop.f32.mrb[19].mxu0  ;;  %7278 = vmatprep.subr.bf16.mxu0 %v8350_v35  ;;  %v5922_v53 = vld [vmem:[%s10009_s8] ss:$0 sm:$0xff] }
 0x2d1   : > { %6997 = vmatpush3.bf16.msra.mxu1 %v7959_v52 }
 0x2d2   : > { %6998 = vmatprep.subr.bf16.mxu1 %v8350_v35 }
 0x2d3   : > { %7279 = vmatpush3.bf16.msra.mxu0 %v7962_v58 }
 0x2d4   : > { %7280 = vmatprep.subr.bf16.mxu0 %v8350_v35 }
 0x2d5   : > { %6999 = vmatpush3.bf16.msra.mxu1 %v7961_v60 }
 0x2d6   : > { %7000 = vmatprep.subr.bf16.mxu1 %v8350_v35 }
 0x2d7   : > { %7281 = vmatpush3.bf16.msra.mxu0 %v7964_v62  ;;  %v7994_v62 = vld [vmem:[%s10008_s7 + $0x1b0] sm:$0xff]  }
 0x2d8   : > { %7386 = vmatprep.subr.bf16.mxu0 %v8350_v35 }
 0x2d9   : > { %7001 = vmatpush3.bf16.msra.mxu1 %v7963_v63 }
 0x2da   : > { %7006 = vmatprep.subr.bf16.mxu1 %v8350_v35  ;;  %7283 = vmatmul.mubr.msk.bf16.vlgmr.msra.gmra.mrb[44].mxu0 %vm8794_vm13, %v6053_v6  ;;  %v7969_v6 = vld [vmem:[#allocation6 + $0x1d0] sm:$0xff]  }
 0x2db   : > { %7387 = vmatpush3.bf16.msra.mxu0 %v7966_v8  ;;  %7402 = vmatprep.mubr.msk.bf16.mxu0 %vm8351_vm0, %v8350_v35 }
 0x2dc   : > { %7003 = vmatmul.mubr.msk.bf16.vlgmr.msra.gmra.mrb[12].mxu1 %vm8665_vm8, %v5826_v31  ;;  %7388 = vmatprep.subr.bf16.mxu0 %v8350_v35 }
 0x2dd   : > { %7007 = vmatpush3.bf16.msra.mxu1 %v7965_v9  ;;  %7022 = vmatprep.mubr.msk.bf16.mxu1 %vm8351_vm0, %v8350_v35 }
 0x2de   : > { %7008 = vmatprep.subr.bf16.mxu1 %v8350_v35 }
 0x2df   : > { %7389 = vmatpush3.bf16.msra.mxu0 %v7968_v10  ;;  %v7993_v10 = vld [vmem:[#allocation6 + $0x230] sm:$0xff]  }
 0x2e0   : > { %7390 = vmatprep.subr.bf16.mxu0 %v8350_v35 }
 0x2e1   : > { %7009 = vmatpush3.bf16.msra.mxu1 %v7967_v4 }
 0x2e2   : > { %7010 = vmatprep.subr.bf16.mxu1 %v8350_v35 }
 0x2e3   : > { %7391 = vmatpush3.bf16.msra.mxu0 %v7970_v5 }
 0x2e4   : > { %7392 = vmatprep.subr.bf16.mxu0 %v8350_v35 }
 0x2e5   : > { %7011 = vmatpush3.bf16.msra.mxu1 %v7969_v6  ;;  %v7996_v6 = vld [vmem:[%s10008_s7 + $0x1b8] sm:$0xff]  }
 0x2e6   : > { %7012 = vmatprep.subr.bf16.mxu1 %v8350_v35 }
 0x2e7   : > { %7393 = vmatpush3.bf16.msra.mxu0 %v7972_v11 }
 0x2e8   : > { %7394 = vmatprep.subr.bf16.mxu0 %v8350_v35 }
 0x2e9   : > { %7013 = vmatpush3.bf16.msra.mxu1 %v7971_v14 }
 0x2ea   : > { %7014 = vmatprep.subr.bf16.mxu1 %v8350_v35 }
 0x2eb   : > { %7395 = vmatpush3.bf16.msra.mxu0 %v7974_v15  ;;  %v7995_v15 = vld [vmem:[#allocation6 + $0x238] sm:$0xff]  }
 0x2ec   : > { %7396 = vmatprep.subr.bf16.mxu0 %v8350_v35 }
 0x2ed   : > { %7015 = vmatpush3.bf16.msra.mxu1 %v7973_v20  ;;  %v2266_v0 = vpop.f32.mrb[20].mxu0 }
 0x2ee   : > { %v2267_v23 = vadd.f32 %v2266_v0, %v2177_v51  ;;  %7016 = vmatprep.subr.bf16.mxu1 %v8350_v35  ;;  %v7104_v26 = vpop.f32.mrb[21].mxu0  ;;  %v7992_v51 = vld [vmem:[%s10008_s7 + $0x1a8] sm:$0xff]  }
 0x2ef   : > { %v2269_v30 = vpop.f32.mrb[22].mxu0  ;;  %7397 = vmatpush3.bf16.msra.mxu0 %v7976_v21 }
 0x2f0   : > { %v2270_v18 = vadd.f32 %v2269_v30, %v2180_v57  ;;  %v7105_v31 = vpop.f32.mrb[23].mxu0  ;;  %7398 = vmatprep.subr.bf16.mxu0 %v8350_v35  ;;  %v7991_v57 = vld [vmem:[#allocation6 + $0x228] sm:$0xff]  }
 0x2f1   : > { %7017 = vmatpush3.bf16.msra.mxu1 %v7975_v3  ;;  %v7997_v31 = vld [vmem:[#allocation6 + $0x240] sm:$0xff]  }
 0x2f2   : > { %7018 = vmatprep.subr.bf16.mxu1 %v8350_v35 }
 0x2f3   : > { %7399 = vmatpush3.bf16.msra.mxu0 %v7978_v16 }
 0x2f4   : > { %7400 = vmatprep.subr.bf16.mxu0 %v8350_v35 }
 0x2f5   : > { %7019 = vmatpush3.bf16.msra.mxu1 %v7977_v36 }
 0x2f6   : > { %7020 = vmatprep.subr.bf16.mxu1 %v8350_v35 }
 0x2f7   : > { %7401 = vmatpush3.bf16.msra.mxu0 %v7980_v38 }
 0x2f8   : > { %7406 = vmatprep.subr.bf16.mxu0 %v8350_v35 }
 0x2f9   : > { %7021 = vmatpush3.bf16.msra.mxu1 %v7979_v39  ;;  %v8000_v39 = vld [vmem:[%s10008_s7 + $0x208] sm:$0xff]  }
 0x2fa   : > { %7026 = vmatprep.subr.bf16.mxu1 %v8350_v35  ;;  %7403 = vmatmul.mubr.bf16.vlgmr.msra.gmra.mrb[48].mxu0 %v8842_v47  ;;  %v7986_v47 = vld [vmem:[%s10008_s7 + $0x190] sm:$0xff]  }
 0x2fb   : > { %7407 = vmatpush3.bf16.msra.mxu0 %v7982_v41  ;;  %7422 = vmatprep.mubr.msk.bf16.mxu0 %vm8351_vm0, %v8350_v35  ;;  %v7999_v41 = vld [vmem:[#allocation6 + $0x248] sm:$0xff]  }
 0x2fc   : > { %7023 = vmatmul.mubr.bf16.vlgmr.msra.gmra.mrb[12].mxu1 %v1703_v1  ;;  %7408 = vmatprep.subr.bf16.mxu0 %v8350_v35  ;;  %v7990_v1 = vld [vmem:[%s10008_s7 + $0x1a0] sm:$0xff]  }
 0x2fd   : > { %7027 = vmatpush3.bf16.msra.mxu1 %v7981_v44  ;;  %7042 = vmatprep.mubr.msk.bf16.mxu1 %vm8351_vm0, %v8350_v35  ;;  %v8006_v44 = vld [vmem:[%s10008_s7 + $0x220] sm:$0xff]  }
 0x2fe   : > { %7028 = vmatprep.subr.bf16.mxu1 %v8350_v35 }
 0x2ff   : > { %7409 = vmatpush3.bf16.msra.mxu0 %v7984_v45  ;;  %v8005_v45 = vld [vmem:[#allocation6 + $0x260] sm:$0xff]  }
 0x300   : > { %7410 = vmatprep.subr.bf16.mxu0 %v8350_v35 }
 0x301   : > { %7029 = vmatpush3.bf16.msra.mxu1 %v7983_v46  ;;  %v8008_v46 = vld [vmem:[%s10008_s7 + $0x228] sm:$0xff]  }
 0x302   : > { %7030 = vmatprep.subr.bf16.mxu1 %v8350_v35 }
 0x303   : > { %7411 = vmatpush3.bf16.msra.mxu0 %v7986_v47 }
 0x304   : > { %7412 = vmatprep.subr.bf16.mxu0 %v8350_v35 }
 0x305   : > { %7031 = vmatpush3.bf16.msra.mxu1 %v7985_v48  ;;  %v8007_v48 = vld [vmem:[#allocation6 + $0x268] sm:$0xff]  }
 0x306   : > { %7032 = vmatprep.subr.bf16.mxu1 %v8350_v35 }
 0x307   : > { %7413 = vmatpush3.bf16.msra.mxu0 %v7988_v61 }
 0x308   : > { %7414 = vmatprep.subr.bf16.mxu0 %v8350_v35 }
 0x309   : > { %7033 = vmatpush3.bf16.msra.mxu1 %v7987_v7 }
 0x30a   : > { %7034 = vmatprep.subr.bf16.mxu1 %v8350_v35 }
 0x30b   : > { %7415 = vmatpush3.bf16.msra.mxu0 %v7990_v1  ;;  %v8010_v1 = vld [vmem:[%s10008_s7 + $0x230] sm:$0xff]  }
 0x30c   : > { %7416 = vmatprep.subr.bf16.mxu0 %v8350_v35 }
 0x30d   : > { %7035 = vmatpush3.bf16.msra.mxu1 %v7989_v49  ;;  %v2379_v52 = vpop.f32.mrb[24].mxu0 }
 0x30e   : > { %v2386_v58 = vadd.f32 %v2379_v52, %v2267_v23  ;;  %7036 = vmatprep.subr.bf16.mxu1 %v8350_v35  ;;  %v7124_v59 = vpop.f32.mrb[25].mxu0  ;;  %v7998_v23 = vld [vmem:[%s10008_s7 + $0x200] sm:$0xff]   ;;  %v8012_v52 = vld [vmem:[%s10008_s7 + $0x238] sm:$0xff]  }
 0x30f   : > { %v2382_v60 = vpop.f32.mrb[26].mxu0  ;;  %7417 = vmatpush3.bf16.msra.mxu0 %v7992_v51  ;;  %v8009_v51 = vld [vmem:[#allocation6 + $0x270] sm:$0xff]   ;;  %v8016_v59 = vld [vmem:[#allocation7 + $0x8] sm:$0xff]  }
 0x310   : > { %v2395_v63 = vadd.f32 %v5922_v53, %v2386_v58  ;;  %v2387_v8 = vadd.f32 %v2382_v60, %v2270_v18  ;;  %v7125_v9 = vpop.f32.mrb[27].mxu0  ;;  %7418 = vmatprep.subr.bf16.mxu0 %v8350_v35  ;;  %v8013_v58 = vld [vmem:[%s10008_s7 + $0x100] sm:$0xff]   ;;  %v8015_v60 = vld [vmem:[%s10008_s7 + $0x108] sm:$0xff]  }
 0x311   : > { %7037 = vmatpush3.bf16.msra.mxu1 %v7991_v57  ;;  %v8014_v57 = vld [vmem:[#allocation7] sm:$0xff]  }
 0x312   : > { %v9163_v4 = vmax.f32 %v2395_v63, 0.0  ;;  %v2396_v5 = vadd.f32 %v5922_v53, %v2387_v8  ;;  %7038 = vmatprep.subr.bf16.mxu1 %v8350_v35  ;;  %v8011_v53 = vld [vmem:[#allocation6 + $0x278] sm:$0xff]   ;;  %v8022_v63 = vld [vmem:[#allocation7 + $0x20] sm:$0xff]   ;;  %v4567_v8 = vrot.slane %v8635_v13, 7 }
 0x313   : > { %7419 = vmatpush3.bf16.msra.mxu0 %v7994_v62  ;;  %v4568_v62 = vrot.slane %v8641_v17, 7  ;;  %v8021_v9 = vld [vmem:[%s10008_s7 + $0x120] sm:$0xff]  }
 0x314   : > { %v9169_v11 = vmax.f32 %v2396_v5, 0.0  ;;  %7420 = vmatprep.subr.bf16.mxu0 %v8350_v35  ;;  %v2399_v14 = vrot.slane %v9163_v4, 7  ;;  %v2619_v20 = vrot.slane %v9163_v4, 1  ;;  %v4576_v5 = vrot.slane %v8641_v17, 1 }
 0x315   : > { %7039 = vmatpush3.bf16.msra.mxu1 %v7993_v10  ;;  %v4570_v10 = vsel %vm924_vm3, %v4568_v62, %v4567_v8 }
 0x316   : > { %v2400_v21 = vrot.slane %v9169_v11, 7  ;;  %v2620_v0 = vrot.slane %v9169_v11, 1  ;;  %7040 = vmatprep.subr.bf16.mxu1 %v8350_v35  ;;  %v2423_v3 = vpack.c.bf16 %v9169_v11, %v9163_v4  ;;  %v8033_v4 = vld [vmem:[%s10008_s7 + $0xd0] sm:$0xff]   ;;  %v8036_v11 = vld [vmem:[#allocation7 + $0x18] sm:$0xff]  }
 0x317   : > { %7421 = vmatpush3.bf16.msra.mxu0 %v7996_v6  ;;  %v8024_v6 = vld [vmem:[#allocation7 + $0x28] sm:$0xff]  }
 0x318   : > { %v9184_v26 = vsel %vm924_vm3, %v2399_v14, %v2400_v21  ;;  %v9188_v30 = vsel %vm924_vm3, %v2400_v21, %v2399_v14  ;;  %v9192_v16 = vsel %vm1236_vm9, %v2619_v20, %v2620_v0  ;;  %v9196_v18 = vsel %vm1236_vm9, %v2620_v0, %v2619_v20  ;;  %7426 = vmatprep.subr.bf16.mxu0 %v8350_v35  ;;  %v8023_v20 = vld [vmem:[%s10008_s7 + $0x128] sm:$0xff]  }
 0x319   : > { %7041 = vmatpush3.bf16.msra.mxu1 %v7995_v15  ;;  %v5972_v36 = vpack.c.bf16 %v9184_v26, %v9188_v30  ;;  %v5999_v38 = vpack.c.bf16 %v9196_v18, %v9192_v16  ;;  %v4575_v14 = vrot.slane %v8635_v13, 1  ;;  %v4569_v21 = vsel %vm924_vm3, %v4567_v8, %v4568_v62  ;;  %v8050_v26 = vld [vmem:[%s10008_s7 + $0x350] sm:$0xff]   ;;  %v8068_v18 = vld [vmem:[%s10008_s7 + $0x318] sm:$0xff]  }
 0x31a   : > { %7046 = vmatprep.subr.bf16.mxu1 %v8350_v35  ;;  %7423 = vmatmul.mubr.msk.bf16.vlgmr.msra.gmra.mrb[52].mxu0 %vm8658_vm7, %v8885_v2  ;;  %v8002_v2 = vld [vmem:[%s10008_s7 + $0x210] sm:$0xff]   ;;  %v4571_v0 = vsel %vm8646_vm2, %v4570_v10, 0.0  ;;  %v4705_v62 = vrot.slane %v8712_v55, 1 }
 0x31b   : > { %7427 = vmatpush3.bf16.msra.mxu0 %v7998_v23  ;;  %7442 = vmatprep.mubr.msk.bf16.mxu0 %vm8351_vm0, %v8350_v35  ;;  %v8049_v30 = vld [vmem:[%s10008_s7 + $0x150] sm:$0xff]  }
 0x31c   : > { %7043 = vmatmul.mubr.msk.bf16.vlgmr.msra.gmra.mrb[12].mxu1 %vm8766_vm11, %v5845_v54  ;;  %7428 = vmatprep.subr.bf16.mxu0 %v8350_v35  ;;  %v8003_v54 = vld [vmem:[#allocation6 + $0x258] sm:$0xff]   ;;  %v8065_v16 = vld [vmem:[#allocation6 + $0x410] sm:$0xff]  }
 0x31d   : > { %7047 = vmatpush3.bf16.msra.mxu1 %v7997_v31  ;;  %7062 = vmatprep.mubr.msk.bf16.mxu1 %vm8351_vm0, %v8350_v35 }
 0x31e   : > { %7048 = vmatprep.subr.bf16.mxu1 %v8350_v35 }
 0x31f   : > { %7429 = vmatpush3.bf16.msra.mxu0 %v8000_v39  ;;  %v4578_v39 = vsel %vm1236_vm9, %v4576_v5, %v4575_v14 }
 0x320   : > { %7430 = vmatprep.subr.bf16.mxu0 %v8350_v35 }
 0x321   : > { %7049 = vmatpush3.bf16.msra.mxu1 %v7999_v41 }
 0x322   : > { %7050 = vmatprep.subr.bf16.mxu1 %v8350_v35 }
 0x323   : > { %7431 = vmatpush3.bf16.msra.mxu0 %v8002_v2  ;;  %v8026_v2 = vld [vmem:[#allocation7 + $0x30] sm:$0xff]  }
 0x324   : > { %7432 = vmatprep.subr.bf16.mxu0 %v8350_v35 }
 0x325   : > { %7051 = vmatpush3.bf16.msra.mxu1 %v8001_v32 }
 0x326   : > { %7052 = vmatprep.subr.bf16.mxu1 %v8350_v35 }
 0x327   : > { %7433 = vmatpush3.bf16.msra.mxu0 %v8004_v33 }
 0x328   : > { %7434 = vmatprep.subr.bf16.mxu0 %v8350_v35 }
 0x329   : > { %7053 = vmatpush3.bf16.msra.mxu1 %v8003_v54  ;;  %v4573_v54 = vadd.f32 %v4571_v0, %v8635_v13 }
 0x32a   : > { %7054 = vmatprep.subr.bf16.mxu1 %v8350_v35 }
 0x32b   : > { %7435 = vmatpush3.bf16.msra.mxu0 %v8006_v44  ;;  %v4574_v44 = vadd.f32 %v4569_v21, %v8641_v17  ;;  %v8042_v21 = vld [vmem:[#allocation7 + $0x30] sm:$0xff]  }
 0x32c   : > { %7436 = vmatprep.subr.bf16.mxu0 %v8350_v35 }
 0x32d   : > { %7055 = vmatpush3.bf16.msra.mxu1 %v8005_v45  ;;  %v9240_v47 = vpop.f32.mrb[28].mxu0  ;;  %v8025_v45 = vld [vmem:[%s10008_s7 + $0x130] sm:$0xff]  }
 0x32e   : > { %7056 = vmatprep.subr.bf16.mxu1 %v8350_v35  ;;  %v7204_v61 = vpop.f32.mrb[29].mxu0 }
 0x32f   : > { %v9243_v7 = vpop.f32.mrb[30].mxu0  ;;  %7437 = vmatpush3.bf16.msra.mxu0 %v8008_v46  ;;  %v4580_v46 = vsel %vm8759_vm10, %v4578_v39, 0.0  ;;  %v8041_v39 = vld [vmem:[%s10008_s7 + $0xf0] sm:$0xff]  }
 0x330   : > { %v7205_v49 = vpop.f32.mrb[31].mxu0  ;;  %7438 = vmatprep.subr.bf16.mxu0 %v8350_v35 }
 0x331   : > { %7057 = vmatpush3.bf16.msra.mxu1 %v8007_v48  ;;  %v4577_v48 = vsel %vm1236_vm9, %v4575_v14, %v4576_v5  ;;  %v8030_v49 = vld [vmem:[#allocation7] sm:$0xff]  }
 0x332   : > { %7058 = vmatprep.subr.bf16.mxu1 %v8350_v35  ;;  %v4581_v61 = vadd.f32 %v4577_v48, %v4573_v54  ;;  %v8047_v48 = vld [vmem:[%s10008_s7 + $0x148] sm:$0xff]  }
 0x333   : > { %7439 = vmatpush3.bf16.msra.mxu0 %v8010_v1  ;;  %v8027_v1 = vld [vmem:[%s10008_s7 + $0x138] sm:$0xff]  }
 0x334   : > { %7440 = vmatprep.subr.bf16.mxu0 %v8350_v35 }
 0x335   : > { %7059 = vmatpush3.bf16.msra.mxu1 %v8009_v51 }
 0x336   : > { %7060 = vmatprep.subr.bf16.mxu1 %v8350_v35 }
 0x337   : > { %7441 = vmatpush3.bf16.msra.mxu0 %v8012_v52  ;;  %v8029_v52 = vld [vmem:[%s10008_s7 + $0xc0] sm:$0xff]  }
 0x338   : > { %7506 = vmatprep.subr.bf16.mxu0 %v8350_v35 }
 0x339   : > { %7061 = vmatpush3.bf16.msra.mxu1 %v8011_v53  ;;  %v8032_v53 = vld [vmem:[#allocation7 + $0x8] sm:$0xff]  }
 0x33a   : > { %7126 = vmatprep.subr.bf16.mxu1 %v8350_v35  ;;  %7443 = vmatmul.mubr.msk.bf16.vlgmr.msra.gmra.mrb[56].mxu0 %vm8766_vm11, %v8934_v40  ;;  %v8018_v40 = vld [vmem:[#allocation7 + $0x10] sm:$0xff]  }
 0x33b   : > { %7507 = vmatpush3.bf16.msra.mxu0 %v8014_v57  ;;  %7522 = vmatprep.mubr.msk.bf16.mxu0 %vm8351_vm0, %v8350_v35  ;;  %v8031_v57 = vld [vmem:[%s10008_s7 + $0xc8] sm:$0xff]  }
 0x33c   : > { %7063 = vmatmul.mubr.msk.bf16.vlgmr.msra.gmra.mrb[12].mxu1 %vm8794_vm13, %v5856_v43  ;;  %7508 = vmatprep.subr.bf16.mxu0 %v8350_v35  ;;  %v8019_v43 = vld [vmem:[%s10008_s7 + $0x118] sm:$0xff]  }
 0x33d   : > { %7127 = vmatpush3.bf16.msra.mxu1 %v8013_v58  ;;  %7142 = vmatprep.mubr.msk.bf16.mxu1 %vm8351_vm0, %v8350_v35  ;;  %v8034_v58 = vld [vmem:[#allocation7 + $0x10] sm:$0xff]  }
 0x33e   : > { %7128 = vmatprep.subr.bf16.mxu1 %v8350_v35 }
 0x33f   : > { %7509 = vmatpush3.bf16.msra.mxu0 %v8016_v59  ;;  %v4696_v59 = vrot.slane %v8707_v50, 7 }
 0x340   : > { %7510 = vmatprep.subr.bf16.mxu0 %v8350_v35 }
 0x341   : > { %7129 = vmatpush3.bf16.msra.mxu1 %v8015_v60  ;;  %v4697_v60 = vrot.slane %v8712_v55, 7 }
 0x342   : > { %7130 = vmatprep.subr.bf16.mxu1 %v8350_v35 }
 0x343   : > { %7511 = vmatpush3.bf16.msra.mxu0 %v8018_v40  ;;  %v8038_v40 = vld [vmem:[#allocation7 + $0x20] sm:$0xff]   ;;  %v4698_v10 = vsel %vm924_vm3, %v4696_v59, %v4697_v60 }
 0x344   : > { %7512 = vmatprep.subr.bf16.mxu0 %v8350_v35 }
 0x345   : > { %7131 = vmatpush3.bf16.msra.mxu1 %v8017_v56  ;;  %v8037_v56 = vld [vmem:[%s10008_s7 + $0xe0] sm:$0xff]  }
 0x346   : > { %7132 = vmatprep.subr.bf16.mxu1 %v8350_v35 }
 0x347   : > { %7513 = vmatpush3.bf16.msra.mxu0 %v8020_v42  ;;  %v4699_v42 = vsel %vm924_vm3, %v4697_v60, %v4696_v59  ;;  %v8057_v59 = vld [vmem:[%s10008_s7 + $0x170] sm:$0xff]   ;;  %v8060_v60 = vld [vmem:[%s10008_s7 + $0x378] sm:$0xff]  }
 0x348   : > { %7514 = vmatprep.subr.bf16.mxu0 %v8350_v35  ;;  %v4700_v5 = vsel %vm8646_vm2, %v4699_v42, 0.0  ;;  %v8061_v42 = vld [vmem:[#allocation6 + $0x400] sm:$0xff]  }
 0x349   : > { %7133 = vmatpush3.bf16.msra.mxu1 %v8019_v43  ;;  %v4704_v43 = vrot.slane %v8707_v50, 1  ;;  %v4702_v19 = vadd.f32 %v4700_v5, %v8707_v50  ;;  %v6056_v5 = vld [vmem:[%s10007_s6 + $0x2] ss:$0 sm:$0xff] }
 0x34a   : > { %7134 = vmatprep.subr.bf16.mxu1 %v8350_v35 }
 0x34b   : > { %7515 = vmatpush3.bf16.msra.mxu0 %v8022_v63  ;;  %v8040_v63 = vld [vmem:[#allocation7 + $0x28] sm:$0xff]  }
 0x34c   : > { %7516 = vmatprep.subr.bf16.mxu0 %v8350_v35 }
 0x34d   : > { %7135 = vmatpush3.bf16.msra.mxu1 %v8021_v9  ;;  %v2960_v15 = vpop.f32.mrb[32].mxu0  ;;  %v8039_v9 = vld [vmem:[%s10008_s7 + $0xe8] sm:$0xff]  }
 0x34e   : > { %v9307_v23 = vadd.f32 %v2960_v15, %v9240_v47  ;;  %7136 = vmatprep.subr.bf16.mxu1 %v8350_v35  ;;  %v7224_v31 = vpop.f32.mrb[33].mxu0  ;;  %v8028_v47 = vld [vmem:[#allocation7 + $0x38] sm:$0xff]   ;;  %v4707_v15 = vsel %vm1236_vm9, %v4705_v62, %v4704_v43 }
 0x34f   : > { %v2963_v41 = vpop.f32.mrb[34].mxu0  ;;  %7517 = vmatpush3.bf16.msra.mxu0 %v8024_v6 }
 0x350   : > { %v9313_v32 = vadd.f32 %v2963_v41, %v9243_v7  ;;  %v7225_v33 = vpop.f32.mrb[35].mxu0  ;;  %7518 = vmatprep.subr.bf16.mxu0 %v8350_v35  ;;  %v4582_v7 = vadd.f32 %v4580_v46, %v4574_v44  ;;  %v4706_v41 = vsel %vm1236_vm9, %v4704_v43, %v4705_v62  ;;  %v8043_v44 = vld [vmem:[%s10008_s7 + $0xf8] sm:$0xff]   ;;  %v8045_v46 = vld [vmem:[%s10008_s7 + $0x140] sm:$0xff]   ;;  %v8064_v43 = vld [vmem:[%s10008_s7 + $0x308] sm:$0xff]  }
 0x351   : > { %7137 = vmatpush3.bf16.msra.mxu1 %v8023_v20  ;;  %v4710_v33 = vadd.f32 %v4706_v41, %v4702_v19  ;;  %v8063_v62 = vld [vmem:[#allocation6 + $0x408] sm:$0xff]  }
 0x352   : > { %7138 = vmatprep.subr.bf16.mxu1 %v8350_v35  ;;  %v4583_v51 = vpack.c.bf16 %v4582_v7, %v4581_v61  ;;  %v8051_v61 = vld [vmem:[%s10008_s7 + $0x158] sm:$0xff]   ;;  %v8054_v7 = vld [vmem:[%s10008_s7 + $0x360] sm:$0xff]  }
 0x353   : > { %7519 = vmatpush3.bf16.msra.mxu0 %v8026_v2  ;;  %v4709_v2 = vsel %vm8759_vm10, %v4707_v15, 0.0 }
 0x354   : > { %7520 = vmatprep.subr.bf16.mxu0 %v8350_v35 }
 0x355   : > { %7139 = vmatpush3.bf16.msra.mxu1 %v8025_v45 }
 0x356   : > { %7140 = vmatprep.subr.bf16.mxu1 %v8350_v35 }
 0x357   : > { %7521 = vmatpush3.bf16.msra.mxu0 %v8028_v47  ;;  %v8048_v47 = vld [vmem:[%s10008_s7 + $0x348] sm:$0xff]  }
 0x358   : > { %7526 = vmatprep.subr.bf16.mxu0 %v8350_v35 }
 0x359   : > { %7141 = vmatpush3.bf16.msra.mxu1 %v8027_v1  ;;  %v8053_v1 = vld [vmem:[%s10008_s7 + $0x160] sm:$0xff]  }
 0x35a   : > { %7146 = vmatprep.subr.bf16.mxu1 %v8350_v35  ;;  %7523 = vmatmul.mubr.bf16.vlgmr.msra.gmra.mrb[60].mxu0 %v4583_v51 }
 0x35b   : > { %7527 = vmatpush3.bf16.msra.mxu0 %v8030_v49  ;;  %7542 = vmatprep.mubr.msk.bf16.mxu0 %vm8351_vm0, %v8350_v35  ;;  %v8056_v49 = vld [vmem:[%s10008_s7 + $0x368] sm:$0xff]  }
 0x35c   : > { %7143 = vmatmul.mubr.bf16.vlgmr.msra.gmra.mrb[12].mxu1 %v2423_v3  ;;  %7528 = vmatprep.subr.bf16.mxu0 %v8350_v35  ;;  %v8035_v3 = vld [vmem:[%s10008_s7 + $0xd8] sm:$0xff]  }
 0x35d   : > { %7147 = vmatpush3.bf16.msra.mxu1 %v8029_v52  ;;  %7162 = vmatprep.mubr.msk.bf16.mxu1 %vm8351_vm0, %v8350_v35  ;;  %v8055_v52 = vld [vmem:[%s10008_s7 + $0x168] sm:$0xff]  }
 0x35e   : > { %7148 = vmatprep.subr.bf16.mxu1 %v8350_v35 }
 0x35f   : > { %7529 = vmatpush3.bf16.msra.mxu0 %v8032_v53 }
 0x360   : > { %7530 = vmatprep.subr.bf16.mxu0 %v8350_v35 }
 0x361   : > { %7149 = vmatpush3.bf16.msra.mxu1 %v8031_v57 }
 0x362   : > { %7150 = vmatprep.subr.bf16.mxu1 %v8350_v35 }
 0x363   : > { %7531 = vmatpush3.bf16.msra.mxu0 %v8034_v58 }
 0x364   : > { %7532 = vmatprep.subr.bf16.mxu0 %v8350_v35 }
 0x365   : > { %7151 = vmatpush3.bf16.msra.mxu1 %v8033_v4  ;;  %v8058_v4 = vld [vmem:[%s10008_s7 + $0x370] sm:$0xff]  }
 0x366   : > { %7152 = vmatprep.subr.bf16.mxu1 %v8350_v35 }
 0x367   : > { %7533 = vmatpush3.bf16.msra.mxu0 %v8036_v11 }
 0x368   : > { %7534 = vmatprep.subr.bf16.mxu0 %v8350_v35 }
 0x369   : > { %7153 = vmatpush3.bf16.msra.mxu1 %v8035_v3 }
 0x36a   : > { %7154 = vmatprep.subr.bf16.mxu1 %v8350_v35 }
 0x36b   : > { %7535 = vmatpush3.bf16.msra.mxu0 %v8038_v40  ;;  %v8059_v40 = vld [vmem:[%s10008_s7 + $0x178] sm:$0xff]  }
 0x36c   : > { %7536 = vmatprep.subr.bf16.mxu0 %v8350_v35 }
 0x36d   : > { %7155 = vmatpush3.bf16.msra.mxu1 %v8037_v56  ;;  %v3066_v8 = vpop.f32.mrb[36].mxu0  ;;  %v8062_v56 = vld [vmem:[%s10008_s7 + $0x300] sm:$0xff]  }
 0x36e   : > { %v9378_v6 = vadd.f32 %v3066_v8, %v9307_v23  ;;  %7156 = vmatprep.subr.bf16.mxu1 %v8350_v35  ;;  %v7244_v14 = vpop.f32.mrb[37].mxu0  ;;  %v4703_v23 = vadd.f32 %v4698_v10, %v8712_v55  ;;  %v8069_v8 = vld [vmem:[#allocation6 + $0x420] sm:$0xff]  }
 0x36f   : > { %v3069_v20 = vpop.f32.mrb[38].mxu0  ;;  %7537 = vmatpush3.bf16.msra.mxu0 %v8040_v63  ;;  %v8070_v63 = vld [vmem:[%s10008_s7 + $0x320] sm:$0xff]  }
 0x370   : > { %v9384_v0 = vadd.f32 %v3069_v20, %v9313_v32  ;;  %v7245_v31 = vpop.f32.mrb[39].mxu0  ;;  %7538 = vmatprep.subr.bf16.mxu0 %v8350_v35  ;;  %v8044_v32 = vld [vmem:[#allocation7 + $0x38] sm:$0xff]   ;;  %v4711_v54 = vadd.f32 %v4709_v2, %v4703_v23  ;;  %v8073_v23 = vld [vmem:[#allocation6 + $0x430] sm:$0xff]  }
 0x371   : > { %7157 = vmatpush3.bf16.msra.mxu1 %v8039_v9  ;;  %v8072_v9 = vld [vmem:[%s10008_s7 + $0x328] sm:$0xff]   ;;  %v8076_v2 = vld [vmem:[%s10008_s7 + $0x338] sm:$0xff]  }
 0x372   : > { %7158 = vmatprep.subr.bf16.mxu1 %v8350_v35  ;;  %v4712_v45 = vpack.c.bf16 %v4711_v54, %v4710_v33  ;;  %v8075_v33 = vld [vmem:[#allocation6 + $0x438] sm:$0xff]  }
 0x373   : > { %7539 = vmatpush3.bf16.msra.mxu0 %v8042_v21  ;;  %v8074_v21 = vld [vmem:[%s10008_s7 + $0x330] sm:$0xff]  }
 0x374   : > { %7540 = vmatprep.subr.bf16.mxu0 %v8350_v35 }
 0x375   : > { %7159 = vmatpush3.bf16.msra.mxu1 %v8041_v39 }
 0x376   : > { %7160 = vmatprep.subr.bf16.mxu1 %v8350_v35 }
 0x377   : > { %7541 = vmatpush3.bf16.msra.mxu0 %v8044_v32 }
 0x378   : > { %7546 = vmatprep.subr.bf16.mxu0 %v8350_v35 }
 0x379   : > { %7161 = vmatpush3.bf16.msra.mxu1 %v8043_v44 }
 0x37a   : > { %7166 = vmatprep.subr.bf16.mxu1 %v8350_v35  ;;  %7543 = vmatmul.mubr.bf16.vlgmr.msra.gmra.mrb[64].mxu0 %v4712_v45 }
 0x37b   : > { %7547 = vmatpush3.bf16.msra.mxu0 %v8046_v24  ;;  %7562 = vmatprep.mubr.msk.bf16.mxu0 %vm8351_vm0, %v8350_v35 }
 0x37c   : > { %7163 = vmatmul.mubr.msk.bf16.vlgmr.msra.gmra.mrb[12].mxu1 %vm8658_vm7, %v5972_v36  ;;  %7548 = vmatprep.subr.bf16.mxu0 %v8350_v35  ;;  %v8052_v36 = vld [vmem:[%s10008_s7 + $0x358] sm:$0xff]  }
 0x37d   : > { %7167 = vmatpush3.bf16.msra.mxu1 %v8045_v46  ;;  %7182 = vmatprep.mubr.msk.bf16.mxu1 %vm8351_vm0, %v8350_v35 }
 0x37e   : > { %7168 = vmatprep.subr.bf16.mxu1 %v8350_v35 }
 0x37f   : > { %7549 = vmatpush3.bf16.msra.mxu0 %v8048_v47 }
 0x380   : > { %7550 = vmatprep.subr.bf16.mxu0 %v8350_v35 }
 0x381   : > { %7169 = vmatpush3.bf16.msra.mxu1 %v8047_v48  ;;  %v8078_v48 = vld [vmem:[%s10008_s7 + $0x380] sm:$0xff]  }
 0x382   : > { %7170 = vmatprep.subr.bf16.mxu1 %v8350_v35 }
 0x383   : > { %7551 = vmatpush3.bf16.msra.mxu0 %v8050_v26 }
 0x384   : > { %7552 = vmatprep.subr.bf16.mxu0 %v8350_v35 }
 0x385   : > { %7171 = vmatpush3.bf16.msra.mxu1 %v8049_v30 }
 0x386   : > { %7172 = vmatprep.subr.bf16.mxu1 %v8350_v35 }
 0x387   : > { %7553 = vmatpush3.bf16.msra.mxu0 %v8052_v36 }
 0x388   : > { %7554 = vmatprep.subr.bf16.mxu0 %v8350_v35 }
 0x389   : > { %7173 = vmatpush3.bf16.msra.mxu1 %v8051_v61 }
 0x38a   : > { %7174 = vmatprep.subr.bf16.mxu1 %v8350_v35 }
 0x38b   : > { %7555 = vmatpush3.bf16.msra.mxu0 %v8054_v7 }
 0x38c   : > { %7556 = vmatprep.subr.bf16.mxu0 %v8350_v35 }
 0x38d   : > { %7175 = vmatpush3.bf16.msra.mxu1 %v8053_v1  ;;  %v3174_v51 = vpop.f32.mrb[40].mxu0  ;;  %v8077_v1 = vld [vmem:[#allocation6 + $0x3c0] sm:$0xff]  }
 0x38e   : > { %v3181_v53 = vadd.f32 %v3174_v51, %v9378_v6  ;;  %7176 = vmatprep.subr.bf16.mxu1 %v8350_v35  ;;  %v7264_v57 = vpop.f32.mrb[41].mxu0  ;;  %v8071_v6 = vld [vmem:[#allocation6 + $0x428] sm:$0xff]  }
 0x38f   : > { %v3177_v58 = vpop.f32.mrb[42].mxu0  ;;  %7557 = vmatpush3.bf16.msra.mxu0 %v8056_v49 }
 0x390   : > { %v3182_v11 = vadd.f32 %v3177_v58, %v9384_v0  ;;  %v7265_v3 = vpop.f32.mrb[43].mxu0  ;;  %7558 = vmatprep.subr.bf16.mxu0 %v8350_v35  ;;  %v8080_v58 = vld [vmem:[%s10008_s7 + $0x388] sm:$0xff]  }
 0x391   : > { %7177 = vmatpush3.bf16.msra.mxu1 %v8055_v52 }
 0x392   : > { %7178 = vmatprep.subr.bf16.mxu1 %v8350_v35 }
 0x393   : > { %7559 = vmatpush3.bf16.msra.mxu0 %v8058_v4 }
 0x394   : > { %7560 = vmatprep.subr.bf16.mxu0 %v8350_v35 }
 0x395   : > { %7179 = vmatpush3.bf16.msra.mxu1 %v8057_v59 }
 0x396   : > { %7180 = vmatprep.subr.bf16.mxu1 %v8350_v35 }
 0x397   : > { %7561 = vmatpush3.bf16.msra.mxu0 %v8060_v60  ;;  %v8079_v60 = vld [vmem:[#allocation6 + $0x3c8] sm:$0xff]  }
 0x398   : > { %7566 = vmatprep.subr.bf16.mxu0 %v8350_v35 }
 0x399   : > { %7181 = vmatpush3.bf16.msra.mxu1 %v8059_v40  ;;  %v8082_v40 = vld [vmem:[%s10008_s7 + $0x390] sm:$0xff]  }
 0x39a   : > { %7286 = vmatprep.subr.bf16.mxu1 %v8350_v35  ;;  %7563 = vmatmul.mubr.bf16.vlgmr.msra.gmra.mrb[68].mxu0 %v8772_v28  ;;  %v8066_v28 = vld [vmem:[%s10008_s7 + $0x310] sm:$0xff]  }
 0x39b   : > { %7567 = vmatpush3.bf16.msra.mxu0 %v8062_v56  ;;  %7582 = vmatprep.mubr.msk.bf16.mxu0 %vm8351_vm0, %v8350_v35  ;;  %v8081_v56 = vld [vmem:[#allocation6 + $0x3d0] sm:$0xff]  }
 0x39c   : > { %7183 = vmatmul.mubr.msk.bf16.vlgmr.msra.gmra.mrb[12].mxu1 %vm8766_vm11, %v5999_v38  ;;  %7568 = vmatprep.subr.bf16.mxu0 %v8350_v35  ;;  %v8067_v38 = vld [vmem:[#allocation6 + $0x418] sm:$0xff]  }
 0x39d   : > { %7287 = vmatpush3.bf16.msra.mxu1 %v8061_v42  ;;  %7302 = vmatprep.mubr.msk.bf16.mxu1 %vm8351_vm0, %v8350_v35  ;;  %v8084_v42 = vld [vmem:[%s10008_s7 + $0x398] sm:$0xff]  }
 0x39e   : > { %7288 = vmatprep.subr.bf16.mxu1 %v8350_v35 }
 0x39f   : > { %7569 = vmatpush3.bf16.msra.mxu0 %v8064_v43  ;;  %v8083_v43 = vld [vmem:[#allocation6 + $0x3d8] sm:$0xff]  }
 0x3a0   : > { %7570 = vmatprep.subr.bf16.mxu0 %v8350_v35 }
 0x3a1   : > { %7289 = vmatpush3.bf16.msra.mxu1 %v8063_v62  ;;  %v8086_v62 = vld [vmem:[%s10008_s7 + $0x3a0] sm:$0xff]  }
 0x3a2   : > { %7290 = vmatprep.subr.bf16.mxu1 %v8350_v35 }
 0x3a3   : > { %7571 = vmatpush3.bf16.msra.mxu0 %v8066_v28  ;;  %v8085_v28 = vld [vmem:[#allocation6 + $0x3e0] sm:$0xff]  }
 0x3a4   : > { %7572 = vmatprep.subr.bf16.mxu0 %v8350_v35 }
 0x3a5   : > { %7291 = vmatpush3.bf16.msra.mxu1 %v8065_v16  ;;  %v8088_v16 = vld [vmem:[%s10008_s7 + $0x3a8] sm:$0xff]  }
 0x3a6   : > { %7292 = vmatprep.subr.bf16.mxu1 %v8350_v35 }
 0x3a7   : > { %7573 = vmatpush3.bf16.msra.mxu0 %v8068_v18 }
 0x3a8   : > { %7574 = vmatprep.subr.bf16.mxu0 %v8350_v35 }
 0x3a9   : > { %7293 = vmatpush3.bf16.msra.mxu1 %v8067_v38  ;;  %v8087_v38 = vld [vmem:[#allocation6 + $0x3e8] sm:$0xff]  }
 0x3aa   : > { %7294 = vmatprep.subr.bf16.mxu1 %v8350_v35 }
 0x3ab   : > { %7575 = vmatpush3.bf16.msra.mxu0 %v8070_v63 }
 0x3ac   : > { %7576 = vmatprep.subr.bf16.mxu0 %v8350_v35 }
 0x3ad   : > { %7295 = vmatpush3.bf16.msra.mxu1 %v8069_v8  ;;  %v3289_v10 = vpop.f32.mrb[44].mxu0 }
 0x3ae   : > { %v3296_v14 = vadd.f32 %v3289_v10, %v3181_v53  ;;  %v7284_v15 = vpop.f32.mrb[45].mxu0  ;;  %7296 = vmatprep.subr.bf16.mxu1 %v8350_v35 }
 0x3af   : > { %v3292_v20 = vpop.f32.mrb[46].mxu0  ;;  %7577 = vmatpush3.bf16.msra.mxu0 %v8072_v9  ;;  %v8090_v9 = vld [vmem:[%s10008_s7 + $0x3b0] sm:$0xff]   ;;  %v8093_v15 = vld [vmem:[#allocation6 + $0x440] sm:$0xff]  }
 0x3b0   : > { %v3306_v0 = vadd.f32 %v6056_v5, %v3296_v14  ;;  %v3297_v31 = vadd.f32 %v3292_v20, %v3182_v11  ;;  %v7285_v19 = vpop.f32.mrb[47].mxu0  ;;  %7578 = vmatprep.subr.bf16.mxu0 %v8350_v35  ;;  %v8091_v14 = vld [vmem:[#allocation6 + $0x3f8] sm:$0xff]   ;;  %v8094_v20 = vld [vmem:[#allocation6 + $0x448] sm:$0xff]  }
 0x3b1   : > { %7297 = vmatpush3.bf16.msra.mxu1 %v8071_v6  ;;  %v8092_v6 = vld [vmem:[%s10008_s7 + $0x3b8] sm:$0xff]  }
 0x3b2   : > { %v9524_v39 = vmax.f32 %v3306_v0, 0.0  ;;  %v3307_v41 = vadd.f32 %v6056_v5, %v3297_v31  ;;  %7298 = vmatprep.subr.bf16.mxu1 %v8350_v35  ;;  %v8089_v5 = vld [vmem:[#allocation6 + $0x3f0] sm:$0xff]   ;;  %v8097_v0 = vld [vmem:[#allocation6 + $0x460] sm:$0xff]   ;;  %v8098_v31 = vld [vmem:[#allocation6 + $0x468] sm:$0xff]  }
 0x3b3   : > { %7579 = vmatpush3.bf16.msra.mxu0 %v8074_v21  ;;  %v8095_v21 = vld [vmem:[#allocation6 + $0x450] sm:$0xff]  }
 0x3b4   : > { %7580 = vmatprep.subr.bf16.mxu0 %v8350_v35  ;;  %v9531_v32 = vmax.f32 %v3307_v41, 0.0  ;;  %v3310_v54 = vrot.slane %v9524_v39, 6  ;;  %v3334_v44 = vrot.slane %v9524_v39, 7  ;;  %v3645_v26 = vrot.slane %v9524_v39, 1 }
 0x3b5   : > { %7299 = vmatpush3.bf16.msra.mxu1 %v8073_v23  ;;  %v3760_v30 = vrot.slane %v9524_v39, 2 }
 0x3b6   : > { %7300 = vmatprep.subr.bf16.mxu1 %v8350_v35  ;;  %v3311_v24 = vrot.slane %v9531_v32, 6  ;;  %v3335_v45 = vrot.slane %v9531_v32, 7  ;;  %v3646_v46 = vrot.slane %v9531_v32, 1  ;;  %v3761_v47 = vrot.slane %v9531_v32, 2 }
 0x3b7   : > { %7581 = vmatpush3.bf16.msra.mxu0 %v8076_v2  ;;  %v3536_v36 = vpack.c.bf16 %v9531_v32, %v9524_v39  ;;  %v6190_v32 = vld [vmem:[%s10009_s8 + $0x2] ss:$0 sm:$0xff] }
 0x3b8   : > { %7586 = vmatprep.subr.bf16.mxu0 %v8350_v35  ;;  %v3336_v61 = vsel %vm924_vm3, %v3334_v44, %v3335_v45  ;;  %v3337_v7 = vsel %vm924_vm3, %v3335_v45, %v3334_v44  ;;  %v9554_v49 = vsel %vm900_vm4, %v3310_v54, %v3311_v24  ;;  %v9558_v51 = vsel %vm900_vm4, %v3311_v24, %v3310_v54  ;;  %v8099_v54 = vld [vmem:[#allocation6 + $0x470] sm:$0xff]   ;;  %v8100_v44 = vld [vmem:[#allocation6 + $0x478] sm:$0xff]   ;;  %v8101_v24 = vld [vmem:[#allocation6 + $0x480] sm:$0xff]  }
 0x3b9   : > { %7301 = vmatpush3.bf16.msra.mxu1 %v8075_v33  ;;  %v6066_v52 = vpack.c.bf16 %v3336_v61, %v3337_v7  ;;  %v6077_v53 = vpack.c.bf16 %v9554_v49, %v9558_v51  ;;  %v9568_v57 = vsel %vm1236_vm9, %v3645_v26, %v3646_v46  ;;  %v9577_v4 = vsel %vm1236_vm9, %v3646_v46, %v3645_v26  ;;  %v8102_v45 = vld [vmem:[#allocation6 + $0x488] sm:$0xff]   ;;  %v8103_v46 = vld [vmem:[#allocation6 + $0x490] sm:$0xff]  }
 0x3ba   : > { %7306 = vmatprep.subr.bf16.mxu1 %v8350_v35  ;;  %7583 = vmatmul.mubr.msk.bf16.vlgmr.msra.gmra.mrb[72].mxu0 %vm8658_vm7, %v8679_v34  ;;  %v9581_v34 = vsel %vm1352_vm5, %v3760_v30, %v3761_v47  ;;  %v9585_v11 = vsel %vm1352_vm5, %v3761_v47, %v3760_v30  ;;  %v6096_v3 = vpack.c.bf16 %v9577_v4, %v9568_v57  ;;  %v8104_v47 = vld [vmem:[#allocation6 + $0x498] sm:$0xff]   ;;  %v8106_v26 = vld [vmem:[#allocation6 + $0x4a8] sm:$0xff]   ;;  %v8107_v51 = vld [vmem:[#allocation6 + $0x4b0] sm:$0xff]  }
 0x3bb   : > { %7587 = vmatpush3.bf16.msra.mxu0 %v8078_v48  ;;  %7602 = vmatprep.mubr.msk.bf16.mxu0 %vm8351_vm0, %v8350_v35  ;;  %v6107_v59 = vpack.c.bf16 %v9585_v11, %v9581_v34  ;;  %v8105_v48 = vld [vmem:[#allocation6 + $0x4a0] sm:$0xff]   ;;  %v8111_v57 = vld [vmem:[#allocation6 + $0x4d0] sm:$0xff]   ;;  %v8144_v4 = vld [vmem:[%s10008_s7 + $0x3c8] sm:$0xff]  }
 0x3bc   : > { %7303 = vmatmul.mubr.msk.bf16.vlgmr.msra.gmra.mrb[16].mxu1 %vm8658_vm7, %v6066_v52  ;;  %7588 = vmatprep.subr.bf16.mxu0 %v8350_v35  ;;  %v8121_v34 = vld [vmem:[%s10008_s7 + $0x2a0] sm:$0xff]  }
 0x3bd   : > { %7307 = vmatpush3.bf16.msra.mxu1 %v8077_v1  ;;  %7322 = vmatprep.mubr.msk.bf16.mxu1 %vm8351_vm0, %v8350_v35 }
 0x3be   : > { %7308 = vmatprep.subr.bf16.mxu1 %v8350_v35 }
 0x3bf   : > { %7589 = vmatpush3.bf16.msra.mxu0 %v8080_v58 }
 0x3c0   : > { %7590 = vmatprep.subr.bf16.mxu0 %v8350_v35 }
 0x3c1   : > { %7309 = vmatpush3.bf16.msra.mxu1 %v8079_v60 }
 0x3c2   : > { %7310 = vmatprep.subr.bf16.mxu1 %v8350_v35 }
 0x3c3   : > { %7591 = vmatpush3.bf16.msra.mxu0 %v8082_v40  ;;  %v8108_v40 = vld [vmem:[#allocation6 + $0x4b8] sm:$0xff]  }
 0x3c4   : > { %7592 = vmatprep.subr.bf16.mxu0 %v8350_v35 }
 0x3c5   : > { %7311 = vmatpush3.bf16.msra.mxu1 %v8081_v56 }
 0x3c6   : > { %7312 = vmatprep.subr.bf16.mxu1 %v8350_v35 }
 0x3c7   : > { %7593 = vmatpush3.bf16.msra.mxu0 %v8084_v42 }
 0x3c8   : > { %7594 = vmatprep.subr.bf16.mxu0 %v8350_v35 }
 0x3c9   : > { %7313 = vmatpush3.bf16.msra.mxu1 %v8083_v43 }
 0x3ca   : > { %7314 = vmatprep.subr.bf16.mxu1 %v8350_v35 }
 0x3cb   : > { %7595 = vmatpush3.bf16.msra.mxu0 %v8086_v62 }
 0x3cc   : > { %7596 = vmatprep.subr.bf16.mxu0 %v8350_v35 }
 0x3cd   : > { %7315 = vmatpush3.bf16.msra.mxu1 %v8085_v28  ;;  %v4001_v18 = vpop.f32.mrb[48].mxu0 }
 0x3ce   : > { %7316 = vmatprep.subr.bf16.mxu1 %v8350_v35  ;;  %v7404_v63 = vpop.f32.mrb[49].mxu0 }
 0x3cf   : > { %v4004_v8 = vpop.f32.mrb[50].mxu0  ;;  %7597 = vmatpush3.bf16.msra.mxu0 %v8088_v16  ;;  %v8109_v63 = vld [vmem:[#allocation6 + $0x4c0] sm:$0xff]  }
 0x3d0   : > { %v7405_v10 = vpop.f32.mrb[51].mxu0  ;;  %7598 = vmatprep.subr.bf16.mxu0 %v8350_v35 }
 0x3d1   : > { %7317 = vmatpush3.bf16.msra.mxu1 %v8087_v38  ;;  %v8110_v10 = vld [vmem:[#allocation6 + $0x4c8] sm:$0xff]  }
 0x3d2   : > { %7318 = vmatprep.subr.bf16.mxu1 %v8350_v35 }
 0x3d3   : > { %7599 = vmatpush3.bf16.msra.mxu0 %v8090_v9 }
 0x3d4   : > { %7600 = vmatprep.subr.bf16.mxu0 %v8350_v35 }
 0x3d5   : > { %7319 = vmatpush3.bf16.msra.mxu1 %v8089_v5  ;;  %v8142_v5 = vld [vmem:[%s10008_s7 + $0x3c0] sm:$0xff]  }
 0x3d6   : > { %7320 = vmatprep.subr.bf16.mxu1 %v8350_v35 }
 0x3d7   : > { %7601 = vmatpush3.bf16.msra.mxu0 %v8092_v6  ;;  %v8146_v6 = vld [vmem:[%s10008_s7 + $0x3d0] sm:$0xff]  }
 0x3d8   : > { %7626 = vmatprep.subr.bf16.mxu0 %v8350_v35 }
 0x3d9   : > { %7321 = vmatpush3.bf16.msra.mxu1 %v8091_v14  ;;  %v8113_v14 = vld [vmem:[#allocation6 + $0x4e0] sm:$0xff]  }
 0x3da   : > { %7326 = vmatprep.subr.bf16.mxu1 %v8350_v35  ;;  %7603 = vmatmul.mubr.msk.bf16.vlgmr.msra.gmra.mrb[76].mxu0 %vm8766_vm11, %v8774_v29  ;;  %v8096_v29 = vld [vmem:[#allocation6 + $0x458] sm:$0xff]  }
 0x3db   : > { %7642 = vmatprep.mubr.msk.bf16.mxu0 %vm8351_vm0, %v8350_v35  ;;  %7627 = vmatpush3.bf16.msra.mxu0 %v8142_v5 }
 0x3dc   : > { %7323 = vmatmul.mubr.msk.bf16.vlgmr.msra.gmra.mrb[16].mxu1 %vm8665_vm8, %v6077_v53  ;;  %7628 = vmatprep.subr.bf16.mxu0 %v8350_v35 }
 0x3dd   : > { %7327 = vmatpush3.bf16.msra.mxu1 %v8093_v15  ;;  %7342 = vmatprep.mubr.msk.bf16.mxu1 %vm8351_vm0, %v8350_v35  ;;  %v8148_v15 = vld [vmem:[%s10008_s7 + $0x3d8] sm:$0xff]  }
 0x3de   : > { %7328 = vmatprep.subr.bf16.mxu1 %v8350_v35 }
 0x3df   : > { %7629 = vmatpush3.bf16.msra.mxu0 %v8144_v4 }
 0x3e0   : > { %7630 = vmatprep.subr.bf16.mxu0 %v8350_v35 }
 0x3e1   : > { %7329 = vmatpush3.bf16.msra.mxu1 %v8094_v20  ;;  %v521_v20 = vld [vmem:[#allocation9] sm:$0xff] }
 0x3e2   : > { %7330 = vmatprep.subr.bf16.mxu1 %v8350_v35 }
 0x3e3   : > { %7631 = vmatpush3.bf16.msra.mxu0 %v8146_v6  ;;  %v8131_v6 = vld [vmem:[%s10008_s7 + $0x270] sm:$0xff]  }
 0x3e4   : > { %7632 = vmatprep.subr.bf16.mxu0 %v8350_v35 }
 0x3e5   : > { %7331 = vmatpush3.bf16.msra.mxu1 %v8095_v21 }
 0x3e6   : > { %7332 = vmatprep.subr.bf16.mxu1 %v8350_v35 }
 0x3e7   : > { %7633 = vmatpush3.bf16.msra.mxu0 %v8148_v15 }
 0x3e8   : > { %7634 = vmatprep.subr.bf16.mxu0 %v8350_v35 }
 0x3e9   : > { %7333 = vmatpush3.bf16.msra.mxu1 %v8096_v29  ;;  %v8114_v29 = vld [vmem:[#allocation6 + $0x4e8] sm:$0xff]  }
 0x3ea   : > { %7334 = vmatprep.subr.bf16.mxu1 %v8350_v35 }
 0x3ed   : > { %7335 = vmatpush3.bf16.msra.mxu1 %v8097_v0  ;;  %v4090_v27 = vpop.f32.mrb[52].mxu0  ;;  %v522_v0 = vld [vmem:[#allocation9 + $0x8] sm:$0xff] }
 0x3ee   : > { %v4091_v19 = vadd.f32 %v4090_v27, %v4001_v18  ;;  %7336 = vmatprep.subr.bf16.mxu1 %v8350_v35  ;;  %v7424_v23 = vpop.f32.mrb[53].mxu0  ;;  %v8150_v27 = vld [vmem:[%s10008_s7 + $0x3e0] sm:$0xff]  }
 0x3ef   : > { %v4093_v41 = vpop.f32.mrb[54].mxu0  ;;  %7635 = vmatpush3.bf16.msra.mxu0 %v8150_v27  ;;  %v8134_v27 = vld [vmem:[%s10008_s7 + $0x2c8] sm:$0xff]  }
 0x3f0   : > { %v4094_v2 = vadd.f32 %v4093_v41, %v4004_v8  ;;  %v7425_v33 = vpop.f32.mrb[55].mxu0  ;;  %7636 = vmatprep.subr.bf16.mxu0 %v8350_v35 }
 0x3f1   : > { %7337 = vmatpush3.bf16.msra.mxu1 %v8098_v31 }
 0x3f2   : > { %7338 = vmatprep.subr.bf16.mxu1 %v8350_v35 }
 0x3f5   : > { %7339 = vmatpush3.bf16.msra.mxu1 %v8099_v54  ;;  %v8115_v54 = vld [vmem:[#allocation6 + $0x4f0] sm:$0xff]  }
 0x3f6   : > { %7340 = vmatprep.subr.bf16.mxu1 %v8350_v35 }
 0x3f9   : > { %7341 = vmatpush3.bf16.msra.mxu1 %v8100_v44 }
 0x3fa   : > { %7346 = vmatprep.subr.bf16.mxu1 %v8350_v35 }
 0x3fc   : > { %7343 = vmatmul.mubr.bf16.vlgmr.msra.gmra.mrb[16].mxu1 %v3536_v36 }
 0x3fd   : > { %7347 = vmatpush3.bf16.msra.mxu1 %v8101_v24  ;;  %7362 = vmatprep.mubr.msk.bf16.mxu1 %vm8351_vm0, %v8350_v35  ;;  %v8152_v24 = vld [vmem:[%s10008_s7 + $0x3e8] sm:$0xff]  }
 0x3fe   : > { %7348 = vmatprep.subr.bf16.mxu1 %v8350_v35  ;;  %7637 = vmatpush3.bf16.msra.mxu0 %v8152_v24  ;;  %v8140_v24 = vld [vmem:[%s10008_s7 + $0x2f8] sm:$0xff]  }
 0x3ff   : > { %7638 = vmatprep.subr.bf16.mxu0 %v8350_v35 }
 0x401   : > { %7349 = vmatpush3.bf16.msra.mxu1 %v8102_v45  ;;  %v8154_v45 = vld [vmem:[%s10008_s7 + $0x3f0] sm:$0xff]  }
 0x402   : > { %7350 = vmatprep.subr.bf16.mxu1 %v8350_v35  ;;  %7639 = vmatpush3.bf16.msra.mxu0 %v8154_v45  ;;  %v8143_v45 = vld [vmem:[%s10008_s7 + $0x408] sm:$0xff]  }
 0x403   : > { %7640 = vmatprep.subr.bf16.mxu0 %v8350_v35 }
 0x405   : > { %7351 = vmatpush3.bf16.msra.mxu1 %v8103_v46  ;;  %v8156_v46 = vld [vmem:[%s10008_s7 + $0x3f8] sm:$0xff]  }
 0x406   : > { %7352 = vmatprep.subr.bf16.mxu1 %v8350_v35  ;;  %7641 = vmatpush3.bf16.msra.mxu0 %v8156_v46  ;;  %v6372_v46 = vld [vmem:[%s10009_s8 + $0x4] ss:$0 sm:$0xff] }
 0x409   : > { %7353 = vmatpush3.bf16.msra.mxu1 %v8104_v47  ;;  %v8118_v47 = vld [vmem:[%s10008_s7 + $0x288] sm:$0xff]  }
 0x40a   : > { %7354 = vmatprep.subr.bf16.mxu1 %v8350_v35 }
 0x40d   : > { %7355 = vmatpush3.bf16.msra.mxu1 %v8105_v48  ;;  %v4196_v39 = vpop.f32.mrb[56].mxu0  ;;  %v8119_v48 = vld [vmem:[%s10008_s7 + $0x290] sm:$0xff]  }
 0x40e   : > { %v4203_v30 = vadd.f32 %v4196_v39, %v4091_v19  ;;  %7356 = vmatprep.subr.bf16.mxu1 %v8350_v35  ;;  %v7444_v36 = vpop.f32.mrb[57].mxu0 }
 0x40f   : > { %v4199_v61 = vpop.f32.mrb[58].mxu0 }
 0x410   : > { %v4213_v7 = vadd.f32 %v6190_v32, %v4203_v30  ;;  %v4204_v1 = vadd.f32 %v4199_v61, %v4094_v2  ;;  %v7445_v49 = vpop.f32.mrb[59].mxu0 }
 0x411   : > { %7357 = vmatpush3.bf16.msra.mxu1 %v8106_v26  ;;  %v8124_v49 = vld [vmem:[%s10008_s7 + $0x2b8] sm:$0xff]  }
 0x412   : > { %v9662_v52 = vmax.f32 %v4213_v7, 0.0  ;;  %v4214_v53 = vadd.f32 %v6190_v32, %v4204_v1  ;;  %7358 = vmatprep.subr.bf16.mxu1 %v8350_v35  ;;  %v8123_v7 = vld [vmem:[%s10008_s7 + $0x2b0] sm:$0xff]  }
 0x414   : > { %v9665_v58 = vmax.f32 %v4214_v53, 0.0  ;;  %v4217_v60 = vrot.slane %v9662_v52, 7  ;;  %v4437_v56 = vrot.slane %v9662_v52, 1  ;;  %v8126_v53 = vld [vmem:[%s10008_s7 + $0x248] sm:$0xff]  }
 0x415   : > { %7359 = vmatpush3.bf16.msra.mxu1 %v8107_v51  ;;  %v8125_v51 = vld [vmem:[%s10008_s7 + $0x240] sm:$0xff]  }
 0x416   : > { %v4218_v42 = vrot.slane %v9665_v58, 7  ;;  %v4438_v43 = vrot.slane %v9665_v58, 1  ;;  %7360 = vmatprep.subr.bf16.mxu1 %v8350_v35  ;;  %v4241_v62 = vpack.c.bf16 %v9665_v58, %v9662_v52  ;;  %v8128_v52 = vld [vmem:[%s10008_s7 + $0x258] sm:$0xff]   ;;  %v8129_v58 = vld [vmem:[%s10008_s7 + $0x260] sm:$0xff]  }
 0x418   : > { %v9676_v28 = vsel %vm924_vm3, %v4217_v60, %v4218_v42  ;;  %v9680_v16 = vsel %vm924_vm3, %v4218_v42, %v4217_v60  ;;  %v9684_v18 = vsel %vm1236_vm9, %v4437_v56, %v4438_v43  ;;  %v9688_v38 = vsel %vm1236_vm9, %v4438_v43, %v4437_v56  ;;  %v8127_v60 = vld [vmem:[%s10008_s7 + $0x250] sm:$0xff]   ;;  %v8130_v42 = vld [vmem:[%s10008_s7 + $0x268] sm:$0xff]  }
 0x419   : > { %7361 = vmatpush3.bf16.msra.mxu1 %v8108_v40  ;;  %v6240_v8 = vpack.c.bf16 %v9676_v28, %v9680_v16  ;;  %v6267_v9 = vpack.c.bf16 %v9688_v38, %v9684_v18  ;;  %v5859_v40 = vld [vmem:[%s10007_s6 + $0x1] ss:$0 sm:$0xff]  ;;  %v8136_v28 = vld [vmem:[%s10008_s7 + $0x2d8] sm:$0xff]  }
 0x41a   : > { %7366 = vmatprep.subr.bf16.mxu1 %v8350_v35  ;;  %v8137_v16 = vld [vmem:[%s10008_s7 + $0x2e0] sm:$0xff]   ;;  %v8147_v18 = vld [vmem:[%s10008_s7 + $0x418] sm:$0xff]  }
 0x41b   : > { %v8149_v38 = vld [vmem:[%s10008_s7 + $0x420] sm:$0xff]  }
 0x41c   : > { %7363 = vmatmul.mubr.msk.bf16.vlgmr.msra.gmra.mrb[16].mxu1 %vm8766_vm11, %v6096_v3  ;;  %v8112_v3 = vld [vmem:[#allocation6 + $0x4d8] sm:$0xff]  }
 0x41d   : > { %7367 = vmatpush3.bf16.msra.mxu1 %v8109_v63  ;;  %7382 = vmatprep.mubr.msk.bf16.mxu1 %vm8351_vm0, %v8350_v35  ;;  %v6002_v63 = vld [vmem:[%s10009_s8 + $0x1] ss:$0 sm:$0xff] }
 0x41e   : > { %7368 = vmatprep.subr.bf16.mxu1 %v8350_v35 }
 0x421   : > { %7369 = vmatpush3.bf16.msra.mxu1 %v8110_v10 }
 0x422   : > { %7370 = vmatprep.subr.bf16.mxu1 %v8350_v35 }
 0x425   : > { %7371 = vmatpush3.bf16.msra.mxu1 %v8111_v57 }
 0x426   : > { %7372 = vmatprep.subr.bf16.mxu1 %v8350_v35 }
 0x429   : > { %7373 = vmatpush3.bf16.msra.mxu1 %v8112_v3 }
 0x42a   : > { %7374 = vmatprep.subr.bf16.mxu1 %v8350_v35 }
 0x42d   : > { %7375 = vmatpush3.bf16.msra.mxu1 %v8113_v14  ;;  %v4682_v21 = vpop.f32.mrb[60].mxu0 }
 0x42e   : > { %v4689_v31 = vmul.f32 %v4682_v21, %v521_v20  ;;  %7376 = vmatprep.subr.bf16.mxu1 %v8350_v35  ;;  %v7524_v19 = vpop.f32.mrb[61].mxu0 }
 0x42f   : > { %v4685_v23 = vpop.f32.mrb[62].mxu0  ;;  %v8138_v19 = vld [vmem:[%s10008_s7 + $0x2e8] sm:$0xff]  }
 0x430   : > { %v4691_v41 = vadd.f32 %v4689_v31, %v8707_v50  ;;  %v4690_v2 = vmul.f32 %v4685_v23, %v522_v0  ;;  %v7525_v33 = vpop.f32.mrb[63].mxu0  ;;  %v8116_v50 = vld [vmem:[#allocation6 + $0x4f8] sm:$0xff]   ;;  %v8135_v31 = vld [vmem:[%s10008_s7 + $0x2d0] sm:$0xff]  }
 0x431   : > { %7377 = vmatpush3.bf16.msra.mxu1 %v8114_v29  ;;  %v8132_v29 = vld [vmem:[%s10008_s7 + $0x278] sm:$0xff]  }
 0x432   : > { %6281 = vst [vmem:[%s9729_s24 + $0x20] sm:$0xff] %v4691_v41  ;;  %v4692_v44 = vadd.f32 %v4690_v2, %v8712_v55  ;;  %7378 = vmatprep.subr.bf16.mxu1 %v8350_v35  ;;  %v8117_v55 = vld [vmem:[%s10008_s7 + $0x280] sm:$0xff]  }
 0x434   : > { %6282 = vst [vmem:[%s9729_s24 + $0x28] sm:$0xff] %v4692_v44  ;;  %v8139_v44 = vld [vmem:[%s10008_s7 + $0x2f0] sm:$0xff]  }
 0x435   : > { %7379 = vmatpush3.bf16.msra.mxu1 %v8115_v54 }
 0x436   : > { %7380 = vmatprep.subr.bf16.mxu1 %v8350_v35 }
 0x439   : > { %7381 = vmatpush3.bf16.msra.mxu1 %v8116_v50  ;;  %v8141_v50 = vld [vmem:[%s10008_s7 + $0x400] sm:$0xff]  }
 0x43a   : > { %7446 = vmatprep.subr.bf16.mxu1 %v8350_v35 }
 0x43c   : > { %7383 = vmatmul.mubr.msk.bf16.vlgmr.msra.gmra.mrb[16].mxu1 %vm8794_vm13, %v6107_v59  ;;  %v8122_v59 = vld [vmem:[%s10008_s7 + $0x2a8] sm:$0xff]  }
 0x43d   : > { %7447 = vmatpush3.bf16.msra.mxu1 %v8117_v55  ;;  %7462 = vmatprep.mubr.msk.bf16.mxu1 %vm8351_vm0, %v8350_v35  ;;  %v8145_v55 = vld [vmem:[%s10008_s7 + $0x410] sm:$0xff]  }
 0x43e   : > { %7448 = vmatprep.subr.bf16.mxu1 %v8350_v35 }
 0x441   : > { %7449 = vmatpush3.bf16.msra.mxu1 %v8118_v47  ;;  %v8151_v47 = vld [vmem:[%s10008_s7 + $0x428] sm:$0xff]  }
 0x442   : > { %7450 = vmatprep.subr.bf16.mxu1 %v8350_v35 }
 0x445   : > { %7451 = vmatpush3.bf16.msra.mxu1 %v8119_v48 }
 0x446   : > { %7452 = vmatprep.subr.bf16.mxu1 %v8350_v35 }
 0x449   : > { %7453 = vmatpush3.bf16.msra.mxu1 %v8120_v37 }
 0x44a   : > { %7454 = vmatprep.subr.bf16.mxu1 %v8350_v35 }
 0x44d   : > { %7455 = vmatpush3.bf16.msra.mxu1 %v8121_v34  ;;  %v4811_v11 = vpop.f32.mrb[64].mxu0 }
 0x44e   : > { %v4818_v39 = vmul.f32 %v4811_v11, %v521_v20  ;;  %7456 = vmatprep.subr.bf16.mxu1 %v8350_v35  ;;  %v7544_v32 = vpop.f32.mrb[65].mxu0 }
 0x44f   : > { %v4814_v26 = vpop.f32.mrb[66].mxu0  ;;  %v8153_v32 = vld [vmem:[%s10008_s7 + $0x430] sm:$0xff]  }
 0x450   : > { %v4820_v30 = vmul.f32 2.0, %v4818_v39  ;;  %v4819_v36 = vmul.f32 %v4814_v26, %v522_v0  ;;  %v7545_v61 = vpop.f32.mrb[67].mxu0  ;;  %v8133_v0 = vld [vmem:[%s10008_s7 + $0x2c0] sm:$0xff]  }
 0x451   : > { %7457 = vmatpush3.bf16.msra.mxu1 %v8122_v59 }
 0x452   : > { %6291 = vst [vmem:[%s9729_s24 + $0x30] sm:$0xff] %v4820_v30  ;;  %v4821_v1 = vmul.f32 2.0, %v4819_v36  ;;  %7458 = vmatprep.subr.bf16.mxu1 %v8350_v35 }
 0x454   : > { %6292 = vst [vmem:[%s9729_s24 + $0x38] sm:$0xff] %v4821_v1 }
 0x455   : > { %7459 = vmatpush3.bf16.msra.mxu1 %v8123_v7  ;;  %v8155_v7 = vld [vmem:[%s10008_s7 + $0x438] sm:$0xff]  }
 0x456   : > { %7460 = vmatprep.subr.bf16.mxu1 %v8350_v35 }
 0x459   : > { %7461 = vmatpush3.bf16.msra.mxu1 %v8124_v49 }
 0x45a   : > { %7466 = vmatprep.subr.bf16.mxu1 %v8350_v35 }
 0x45c   : > { %7463 = vmatmul.mubr.bf16.vlgmr.msra.gmra.mrb[16].mxu1 %v4241_v62 }
 0x45d   : > { %7467 = vmatpush3.bf16.msra.mxu1 %v8125_v51  ;;  %7482 = vmatprep.mubr.msk.bf16.mxu1 %vm8351_vm0, %v8350_v35 }
 0x45e   : > { %7468 = vmatprep.subr.bf16.mxu1 %v8350_v35 }
 0x461   : > { %7469 = vmatpush3.bf16.msra.mxu1 %v8126_v53 }
 0x462   : > { %7470 = vmatprep.subr.bf16.mxu1 %v8350_v35 }
 0x465   : > { %7471 = vmatpush3.bf16.msra.mxu1 %v8127_v60 }
 0x466   : > { %7472 = vmatprep.subr.bf16.mxu1 %v8350_v35 }
 0x469   : > { %7473 = vmatpush3.bf16.msra.mxu1 %v8128_v52 }
 0x46a   : > { %7474 = vmatprep.subr.bf16.mxu1 %v8350_v35 }
 0x46d   : > { %7475 = vmatpush3.bf16.msra.mxu1 %v8129_v58  ;;  %v4941_v56 = vpop.f32.mrb[68].mxu0 }
 0x46e   : > { %7476 = vmatprep.subr.bf16.mxu1 %v8350_v35  ;;  %v7564_v43 = vpop.f32.mrb[69].mxu0 }
 0x46f   : > { %v2725_v62 = vpop.f32.mrb[12].mxu1  ;;  %v4944_v10 = vpop.f32.mrb[70].mxu0 }
 0x470   : > { %v7666_v5 = vadd.f32 %v5859_v40, %v2725_v62  ;;  %v7184_v57 = vpop.f32.mrb[13].mxu1  ;;  %v7565_v4 = vpop.f32.mrb[71].mxu0  ;;  %v8158_v62 = vld [vmem:[%s10008_s7 + $0x448] sm:$0xff]  }
 0x471   : > { %v2728_v3 = vpop.f32.mrb[14].mxu1  ;;  %7477 = vmatpush3.bf16.msra.mxu1 %v8130_v42  ;;  %v8157_v42 = vld [vmem:[%s10008_s7 + $0x440] sm:$0xff]   ;;  %v8164_v57 = vld [vmem:[%s10008_s7 + $0x478] sm:$0xff]  }
 0x472   : > { %v7667_v14 = vadd.f32 %v7666_v5, %v6002_v63  ;;  %v7668_v15 = vadd.f32 %v5859_v40, %v2728_v3  ;;  %v7185_v20 = vpop.f32.mrb[15].mxu1  ;;  %7478 = vmatprep.subr.bf16.mxu1 %v8350_v35  ;;  %v8163_v5 = vld [vmem:[%s10008_s7 + $0x470] sm:$0xff]   ;;  %v6110_v4 = vld [vmem:[%s10007_s6 + $0x3] ss:$0 sm:$0xff] }
 0x474   : > { %2746 = vst [vmem:[%s9729_s24] sm:$0xff] %v7667_v14  ;;  %v7669_v21 = vadd.f32 %v7668_v15, %v6002_v63  ;;  %v8161_v63 = vld [vmem:[%s10008_s7 + $0x460] sm:$0xff]  }
 0x475   : > { %7479 = vmatpush3.bf16.msra.mxu1 %v8131_v6  ;;  %v6270_v6 = vld [vmem:[%s10009_s8 + $0x3] ss:$0 sm:$0xff] }
 0x476   : > { %2747 = vst [vmem:[%s9729_s24 + $0x8] sm:$0xff] %v7669_v21  ;;  %7480 = vmatprep.subr.bf16.mxu1 %v8350_v35 }
 0x479   : > { %7481 = vmatpush3.bf16.msra.mxu1 %v8132_v29 }
 0x47a   : > { %7486 = vmatprep.subr.bf16.mxu1 %v8350_v35 }
 0x47c   : > { %7483 = vmatmul.mubr.msk.bf16.vlgmr.msra.gmra.mrb[16].mxu1 %vm8658_vm7, %v6240_v8 }
 0x47d   : > { %7487 = vmatpush3.bf16.msra.mxu1 %v8133_v0  ;;  %7502 = vmatprep.mubr.msk.bf16.mxu1 %vm8351_vm0, %v8350_v35 }
 0x47e   : > { %7488 = vmatprep.subr.bf16.mxu1 %v8350_v35 }
 0x481   : > { %7489 = vmatpush3.bf16.msra.mxu1 %v8134_v27 }
 0x482   : > { %7490 = vmatprep.subr.bf16.mxu1 %v8350_v35 }
 0x485   : > { %7491 = vmatpush3.bf16.msra.mxu1 %v8135_v31 }
 0x486   : > { %7492 = vmatprep.subr.bf16.mxu1 %v8350_v35 }
 0x489   : > { %7493 = vmatpush3.bf16.msra.mxu1 %v8136_v28 }
 0x48a   : > { %7494 = vmatprep.subr.bf16.mxu1 %v8350_v35 }
 0x48d   : > { %7495 = vmatpush3.bf16.msra.mxu1 %v8137_v16  ;;  %v5030_v8 = vpop.f32.mrb[72].mxu0 }
 0x48e   : > { %v5031_v23 = vadd.f32 %v5030_v8, %v4941_v56  ;;  %7496 = vmatprep.subr.bf16.mxu1 %v8350_v35  ;;  %v7584_v41 = vpop.f32.mrb[73].mxu0 }
 0x48f   : > { %v5033_v2 = vpop.f32.mrb[74].mxu0 }
 0x490   : > { %v5034_v33 = vadd.f32 %v5033_v2, %v4944_v10  ;;  %v7585_v54 = vpop.f32.mrb[75].mxu0  ;;  %v8162_v10 = vld [vmem:[%s10008_s7 + $0x468] sm:$0xff]  }
 0x491   : > { %7497 = vmatpush3.bf16.msra.mxu1 %v8138_v19  ;;  %v6452_v54 = vld [vmem:[%s10009_s8 + $0x5] ss:$0 sm:$0xff] }
 0x492   : > { %7498 = vmatprep.subr.bf16.mxu1 %v8350_v35 }
 0x495   : > { %7499 = vmatpush3.bf16.msra.mxu1 %v8139_v44 }
 0x496   : > { %7500 = vmatprep.subr.bf16.mxu1 %v8350_v35 }
 0x499   : > { %7501 = vmatpush3.bf16.msra.mxu1 %v8140_v24 }
 0x49a   : > { %7606 = vmatprep.subr.bf16.mxu1 %v8350_v35 }
 0x49c   : > { %7503 = vmatmul.mubr.msk.bf16.vlgmr.msra.gmra.mrb[16].mxu1 %vm8766_vm11, %v6267_v9 }
 0x49d   : > { %7607 = vmatpush3.bf16.msra.mxu1 %v8141_v50  ;;  %7622 = vmatprep.mubr.msk.bf16.mxu1 %vm8351_vm0, %v8350_v35 }
 0x49e   : > { %7608 = vmatprep.subr.bf16.mxu1 %v8350_v35 }
 0x4a1   : > { %7609 = vmatpush3.bf16.msra.mxu1 %v8143_v45 }
 0x4a2   : > { %7610 = vmatprep.subr.bf16.mxu1 %v8350_v35 }
 0x4a5   : > { %7611 = vmatpush3.bf16.msra.mxu1 %v8145_v55 }
 0x4a6   : > { %7612 = vmatprep.subr.bf16.mxu1 %v8350_v35 }
 0x4a9   : > { %7613 = vmatpush3.bf16.msra.mxu1 %v8147_v18 }
 0x4aa   : > { %7614 = vmatprep.subr.bf16.mxu1 %v8350_v35 }
 0x4ad   : > { %7615 = vmatpush3.bf16.msra.mxu1 %v8149_v38  ;;  %v5136_v9 = vpop.f32.mrb[76].mxu0 }
 0x4ae   : > { %v5143_v48 = vadd.f32 %v5136_v9, %v5031_v23  ;;  %v7604_v37 = vpop.f32.mrb[77].mxu0  ;;  %7616 = vmatprep.subr.bf16.mxu1 %v8350_v35 }
 0x4af   : > { %v5139_v34 = vpop.f32.mrb[78].mxu0  ;;  %v5570_v37 = vld [vmem:[%s9729_s24 + $0x20] sm:$0xff] (%p10047_p5) }
 0x4b0   : > { %v5153_v11 = vadd.f32 %v6372_v46, %v5143_v48  ;;  %v5144_v59 = vadd.f32 %v5139_v34, %v5034_v33  ;;  %v7605_v39 = vpop.f32.mrb[79].mxu0  ;;  %v5572_v34 = vld [vmem:[%s9729_s24 + $0x28] sm:$0xff] (%p10047_p5)  ;;  %5571 = vst [vmem:[%s5516_s27 + $0x40] sm:$0xff] (%p10047_p5), %v5570_v37 }
 0x4b1   : > { %7617 = vmatpush3.bf16.msra.mxu1 %v8151_v47  ;;  %v5564_v47 = vld [vmem:[%s9729_s24 + $0x8] sm:$0xff] (%p10047_p5)  ;;  %5573 = vst [vmem:[%s5516_s27 + $0x48] sm:$0xff] (%p10047_p5), %v5572_v34 }
 0x4b2   : > { %v5155_v26 = vmax.f32 %v5153_v11, 0.0  ;;  %v5154_v30 = vadd.f32 %v6372_v46, %v5144_v59  ;;  %7618 = vmatprep.subr.bf16.mxu1 %v8350_v35  ;;  %5565 = vst [vmem:[%s5516_s27 + $0x8] sm:$0xff] (%p10047_p5), %v5564_v47  ;;  %v5574_v11 = vld [vmem:[%s9729_s24 + $0x30] sm:$0xff] (%p10047_p5)  ;;  %v5576_v59 = vld [vmem:[%s9729_s24 + $0x38] sm:$0xff] (%p10047_p5) }
 0x4b3   : > { %5575 = vst [vmem:[%s5516_s27 + $0x60] sm:$0xff] (%p10047_p5), %v5574_v11  ;;  %5577 = vst [vmem:[%s5516_s27 + $0x68] sm:$0xff] (%p10047_p5), %v5576_v59 }
 0x4b4   : > { %v5156_v36 = vmax.f32 %v5154_v30, 0.0  ;;  %v5157_v61 = vrot.slane %v5155_v26, 7  ;;  %v5377_v1 = vrot.slane %v5155_v26, 1 }
 0x4b5   : > { %7619 = vmatpush3.bf16.msra.mxu1 %v8153_v32 }
 0x4b6   : > { %v5158_v49 = vrot.slane %v5156_v36, 7  ;;  %v5378_v51 = vrot.slane %v5156_v36, 1  ;;  %7620 = vmatprep.subr.bf16.mxu1 %v8350_v35  ;;  %v5181_v53 = vpack.c.bf16 %v5156_v36, %v5155_v26 }
 0x4b8   : > { %v5159_v60 = vsel %vm924_vm3, %v5157_v61, %v5158_v49  ;;  %v5160_v52 = vsel %vm924_vm3, %v5158_v49, %v5157_v61  ;;  %v5379_v58 = vsel %vm1236_vm9, %v5377_v1, %v5378_v51  ;;  %v5380_v40 = vsel %vm1236_vm9, %v5378_v51, %v5377_v1 }
 0x4b9   : > { %7621 = vmatpush3.bf16.msra.mxu1 %v8155_v7  ;;  %v6422_v56 = vpack.c.bf16 %v5159_v60, %v5160_v52  ;;  %v6449_v43 = vpack.c.bf16 %v5380_v40, %v5379_v58 }
 0x4ba   : > { %7646 = vmatprep.subr.bf16.mxu1 %v8350_v35 }
 0x4bb   : > { %7643 = vmatmul.mubr.msk.bf16.vlgmr.msra.gmra.mrb[80].mxu0 %vm8658_vm7, %v6422_v56 }
 0x4bc   : > { %7623 = vmatmul.mubr.bf16.vlgmr.msra.gmra.mrb[20].mxu1 %v5181_v53 }
 0x4bd   : > { %7647 = vmatpush3.bf16.msra.mxu1 %v8157_v42  ;;  %7662 = vmatprep.mubr.msk.bf16.mxu1 %vm8351_vm0, %v8350_v35 }
 0x4be   : > { %7648 = vmatprep.subr.bf16.mxu1 %v8350_v35 }
 0x4c1   : > { %7649 = vmatpush3.bf16.msra.mxu1 %v8158_v62 }
 0x4c2   : > { %7650 = vmatprep.subr.bf16.mxu1 %v8350_v35 }
 0x4c5   : > { %7651 = vmatpush3.bf16.msra.mxu1 %v8159_v12 }
 0x4c6   : > { %7652 = vmatprep.subr.bf16.mxu1 %v8350_v35 }
 0x4c9   : > { %7653 = vmatpush3.bf16.msra.mxu1 %v8160_v22 }
 0x4ca   : > { %7654 = vmatprep.subr.bf16.mxu1 %v8350_v35 }
 0x4cd   : > { %7655 = vmatpush3.bf16.msra.mxu1 %v8161_v63 }
 0x4ce   : > { %7656 = vmatprep.subr.bf16.mxu1 %v8350_v35 }
 0x4d1   : > { %7657 = vmatpush3.bf16.msra.mxu1 %v8162_v10 }
 0x4d2   : > { %7658 = vmatprep.subr.bf16.mxu1 %v8350_v35 }
 0x4d5   : > { %7659 = vmatpush3.bf16.msra.mxu1 %v8163_v5 }
 0x4d6   : > { %7660 = vmatprep.subr.bf16.mxu1 %v8350_v35 }
 0x4d9   : > { %7661 = vmatpush3.bf16.msra.mxu1 %v8164_v57 }
 0x4dc   : > { %7663 = vmatmul.mubr.msk.bf16.vlgmr.msra.gmra.mrb[24].mxu1 %vm8766_vm11, %v6449_v43 }
 0x56f   : > { %v4543_v3 = vpop.f32.mrb[16].mxu1 }
 0x570   : > { %v7670_v14 = vadd.f32 %v6110_v4, %v4543_v3  ;;  %v7504_v15 = vpop.f32.mrb[17].mxu1 }
 0x571   : > { %v4546_v20 = vpop.f32.mrb[18].mxu1 }
 0x572   : > { %v7671_v21 = vadd.f32 %v7670_v14, %v6270_v6  ;;  %v7672_v29 = vadd.f32 %v6110_v4, %v4546_v20  ;;  %v7505_v0 = vpop.f32.mrb[19].mxu1 }
 0x574   : > { %6271 = vst [vmem:[%s9729_s24 + $0x10] sm:$0xff] %v7671_v21  ;;  %v7673_v35 = vadd.f32 %v7672_v29, %v6270_v6 }
 0x576   : > { %6272 = vst [vmem:[%s9729_s24 + $0x18] sm:$0xff] %v7673_v35 }
 0x57b   : > { %v5566_v48 = vld [vmem:[%s9729_s24 + $0x10] sm:$0xff] (%p10047_p5) }
 0x57c   : > { %5567 = vst [vmem:[%s5516_s27 + $0x20] sm:$0xff] (%p10047_p5), %v5566_v48 }
 0x58e   : > { %v5370_v25 = vpop.f32.mrb[80].mxu0 }
 0x58f   : > { %v5281_v27 = vpop.f32.mrb[20].mxu1  ;;  %v7644_v31 = vpop.f32.mrb[81].mxu0 }
 0x590   : > { %v7624_v28 = vpop.f32.mrb[21].mxu1  ;;  %v5371_v16 = vadd.f32 %v5370_v25, %v5281_v27  ;;  %v5373_v8 = vpop.f32.mrb[82].mxu0 }
 0x591   : > { %v5284_v19 = vpop.f32.mrb[22].mxu1  ;;  %v7645_v23 = vpop.f32.mrb[83].mxu0 }
 0x592   : > { %v7625_v41 = vpop.f32.mrb[23].mxu1  ;;  %v5374_v2 = vadd.f32 %v5373_v8, %v5284_v19 }
 0x5af   : > { %v5483_v33 = vpop.f32.mrb[24].mxu1 }
 0x5b0   : > { %v5490_v44 = vadd.f32 %v5483_v33, %v5371_v16  ;;  %v7664_v24 = vpop.f32.mrb[25].mxu1 }
 0x5b1   : > { %v5486_v50 = vpop.f32.mrb[26].mxu1 }
 0x5b2   : > { %v5500_v45 = vadd.f32 %v6452_v54, %v5490_v44  ;;  %v5491_v55 = vadd.f32 %v5486_v50, %v5374_v2  ;;  %v7665_v18 = vpop.f32.mrb[27].mxu1  ;;  %5513 = sbr.rel (!%p10047_p5) target bundleno = 1473 (0x5c1), region = 88 }
 0x5b4   : > { %v5502_v38 = vadd.f32 %v5500_v45, %v8635_v13  ;;  %v5501_v9 = vadd.f32 %v6452_v54, %v5491_v55  ;;  %v5562_v13 = vld [vmem:[%s9729_s24] sm:$0xff] (%p10047_p5) }
 0x5b5   : > { %5563 = vst [vmem:[%s5516_s27] sm:$0xff] (%p10047_p5), %v5562_v13 }
 0x5b6   : > { %6453 = vst [vmem:[%s9729_s24 + $0x40] sm:$0xff] %v5502_v38  ;;  %v5503_v46 = vadd.f32 %v5501_v9, %v8641_v17  ;;  %v5568_v17 = vld [vmem:[%s9729_s24 + $0x18] sm:$0xff] (%p10047_p5) }
 0x5b7   : > { %5569 = vst [vmem:[%s5516_s27 + $0x28] sm:$0xff] (%p10047_p5), %v5568_v17 }
 0x5b8   : > { %6454 = vst [vmem:[%s9729_s24 + $0x48] sm:$0xff] %v5503_v46 }
 0x5bd   : > { %v5578_v39 = vld [vmem:[%s9729_s24 + $0x40] sm:$0xff] }
 0x5be   : > { %5579 = vst [vmem:[%s5516_s27 + $0x80] sm:$0xff] %v5578_v39 }
 0x5bf   : > { %v5580_v32 = vld [vmem:[%s9729_s24 + $0x48] sm:$0xff] }
 0x5c0   : > { %5581 = vst [vmem:[%s5516_s27 + $0x88] sm:$0xff] %v5580_v32 }
 0x5c1 PF: > { %s10049_s19 = sld [smem:[#allocation15_spill]]  ;;  %s10050_s17 = sld [smem:[#allocation14_spill]] }
 0x5c2   : > { %s10051_s18 = sld [smem:[#allocation16_spill]] }
 0x5c7   : > { %p21_p8 = scmp.ge.s32.totalorder %s10049_s19, 4  }
 0x5c9   :  { %23 = sbr.rel (!%p21_p8) target bundleno = 7 (0x7), region = 205 }
 0x5d0   :  { %5597 = vsyncpa [#allocation3], 1 }
 0x5d1   :  { %5599 = vsyncpa [#allocation3 + $0x1], 1 }
 0x5d2   :  { %5600 = vsyncpa [#allocation5], 1 }
 0x5d3   :  { %5601 = vsyncpa [#allocation8], 1 }

</bundles_post_ra>
